<compile_context>
chip_gen: v7x
topology: tpu7x:2x2x1
jax: 0.10.0
libtpu: 0.0.40
codegen_flags: <defaults>
</compile_context>

<pallas_src>
import functools

import jax
import jax.numpy as jnp
from jax.experimental import pallas as pl
from jax.experimental.pallas import tpu as pltpu


def attention_sdpa_kernel(x_ref, wqkv_ref, wo_ref, o_ref, *, n_heads, head_size):
    """One tile of tn tokens: QKV proj -> per-token causal attention over heads -> out proj."""
    tn, Ep = x_ref.shape
    H, d = n_heads, head_size
    Ek = H * d                                   # head-covered embedding (may include padding heads)

    # Single transpose: tokens go to the lane dim for the whole body.
    x_t = x_ref[...].T.astype(jnp.bfloat16)                                          # (Ep, tn)

    # Three MXU matmuls on static row-slices of the resident fused weight
    # (PyTorch row layout, so W @ x^T directly yields token-in-lanes outputs).
    q_t = jnp.dot(wqkv_ref[:Ep, :], x_t, preferred_element_type=jnp.float32)         # (Ep, tn)
    k_t = jnp.dot(wqkv_ref[Ep:2 * Ep, :], x_t, preferred_element_type=jnp.float32)   # (Ep, tn)
    v_t = jnp.dot(wqkv_ref[2 * Ep:, :], x_t, preferred_element_type=jnp.float32)     # (Ep, tn)

    qh = q_t[:Ek].reshape(H, d, tn)              # heads / head_dim on sublanes, tokens on lanes
    kh = k_t[:Ek].reshape(H, d, tn)
    vh = v_t[:Ek].reshape(H, d, tn)

    # Attention over the *head* axis (SDPA on (N, H, d): "sequence" == heads).
    # H is small, so unrolled loops over key-heads keep every tensor full-lane
    # (H, tn)/(H, d, tn) and everything stays on the VPU/XLU with dense lanes.
    neg = jnp.float32(-1e30)   # finite mask value; the diagonal is never masked -> no all-masked rows
    hq = jax.lax.broadcasted_iota(jnp.int32, (H, tn), 0)       # query-head index, per lane

    s_list = []
    for g in range(H):                                          # key-head g
        s_g = jnp.sum(qh * kh[g][None, :, :], axis=1)           # (H, tn); 1/sqrt(d) folded into Wq
        s_list.append(jnp.where(hq >= g, s_g, neg))             # causal over heads: keep g <= h

    m = s_list[0]                                               # g = 0 is unmasked for every h
    for s_g in s_list[1:]:
        m = jnp.maximum(m, s_g)

    denom = jnp.zeros((H, tn), jnp.float32)
    acc = jnp.zeros((H, d, tn), jnp.float32)
    for g in range(H):
        p_g = jnp.exp(s_list[g] - m)                            # (H, tn)
        denom = denom + p_g
        acc = acc + p_g[:, None, :] * vh[g][None, :, :]         # (H, d, tn)

    inv = pl.reciprocal(denom, approx=True)                     # EUP slot, ~free
    attn = (acc * inv[:, None, :]).reshape(Ek, tn)              # (Ek, tn)

    # Transpose back once, then the output projection on the MXU.
    attn = attn.T.astype(jnp.bfloat16)                          # (tn, Ek)
    o_ref[...] = jnp.dot(attn, wo_ref[...],
                         preferred_element_type=jnp.float32).astype(o_ref.dtype)


def _round_up(x, m):
    return ((x + m - 1) // m) * m


def _vmem_limit_bytes(needed_bytes):
    """Generation-aware VMEM request: as much as needed, capped below physical."""
    cap = 48 << 20                               # conservative fallback (v7x: 64 MiB physical)
    try:
        get_info = getattr(pltpu, "get_tpu_info", None)
        if get_info is not None:
            phys = getattr(get_info(), "vmem_capacity_bytes", None)
            if phys:                             # v5e/v6e: 128 MiB, v7x: 64 MiB
                cap = int(phys) - (16 << 20)     # headroom for compiler scratch / semaphores
    except Exception:
        pass
    cap = max(cap, 32 << 20)
    return int(max(32 << 20, min(needed_bytes, cap)))


def attention_sdpa(hidden_states, position_ids, qkv_proj, out_proj, *, num_heads):
    """Pallas implementation of AttentionSdpa.forward.

    hidden_states: (B, S, E) float32
    position_ids : (B, S) int32   (unused: RoPE in the reference is an identity)
    qkv_proj     : (3E, E) float32 (PyTorch F.linear weight layout, q/k/v stacked on dim 0)
    out_proj     : (E, E)  float32 (PyTorch F.linear weight layout)
    """
    del position_ids                              # RoPE is an identity in the reference module.
    B, S, E = hidden_states.shape
    head_size = E // num_heads
    N = B * S

    # Lane-pad the embedding dim so E sits on full 128-lane vregs.
    Ep = _round_up(max(E, 128), 128)

    # Process zero "padding heads" when that keeps every sublane extent 128-aligned
    # (no cost for real configs where E is already a multiple of 128).
    if Ep % head_size == 0:
        n_heads_k = Ep // head_size
    else:
        n_heads_k = num_heads
    Ek = n_heads_k * head_size

    # Token tile: MXU-edge aligned; pad tokens with zeros rather than shrinking the
    # tile, and keep >= 2 grid steps so both v7x TensorCores get work.
    tn = 256 if N >= 512 else 128
    n_tiles = max(pl.cdiv(N, tn), 2)
    Np = n_tiles * tn

    x = hidden_states.reshape(N, E).astype(jnp.float32)
    x = jnp.pad(x, ((0, Np - N), (0, Ep - E)))

    # Weight prep in f32: fold the SDPA scale into the Q rows, pad to (Ep, Ep), cast bf16.
    scale = 1.0 / float(head_size) ** 0.5
    pad2 = lambda w: jnp.pad(w, ((0, Ep - E), (0, Ep - E)))
    wqkv = jnp.concatenate(
        [pad2(qkv_proj[:E] * scale), pad2(qkv_proj[E:2 * E]), pad2(qkv_proj[2 * E:])],
        axis=0).astype(jnp.bfloat16)                                        # (3*Ep, Ep)
    # F.linear(attn, out_proj) = attn @ out_proj.T ; pad rows to Ek (zeros for the
    # padding heads, so their garbage contributes nothing) and columns to Ep.
    wo_t = jnp.pad(out_proj.T, ((0, Ek - E), (0, Ep - E))).astype(jnp.bfloat16)   # (Ek, Ep)

    # VMEM budget: resident bf16 weights (x2: BlockSpec double-buffers them),
    # double-buffered f32 token tiles, plus in-kernel intermediates + headroom.
    # TODO(synk): single-buffer the constant-index weight BlockSpecs (pipeline_mode
    # or a one-shot scratch DMA) to halve the weight footprint on v7x's 64 MiB VMEM.
    bytes_weights = (3 * Ep * Ep + Ek * Ep) * 2 * 2
    bytes_tiles = 2 * (tn * Ep * 4) * 2
    bytes_interm = (Ep * tn * 2) + 4 * (Ep * tn * 4) + (n_heads_k * n_heads_k * tn * 4) \
        + 3 * (n_heads_k * tn * 4) + (tn * Ek * 2) + (tn * Ep * 4)
    vmem_limit = _vmem_limit_bytes(bytes_weights + bytes_tiles + bytes_interm + (8 << 20))

    kernel = functools.partial(attention_sdpa_kernel,
                               n_heads=n_heads_k, head_size=head_size)

    out = pl.pallas_call(
        kernel,
        out_shape=jax.ShapeDtypeStruct((Np, Ep), hidden_states.dtype),
        grid_spec=pltpu.PrefetchScalarGridSpec(
            num_scalar_prefetch=0,
            grid=(n_tiles,),
            in_specs=[
                pl.BlockSpec((tn, Ep), lambda i: (i, 0)),        # token tile
                pl.BlockSpec((3 * Ep, Ep), lambda i: (0, 0)),    # fused qkv weight (resident)
                pl.BlockSpec((Ek, Ep), lambda i: (0, 0)),        # out-proj weight (resident)
            ],
            out_specs=pl.BlockSpec((tn, Ep), lambda i: (i, 0)),  # lane-dense (last dim = Ep >= 128)
        ),
        compiler_params=pltpu.CompilerParams(
            dimension_semantics=("parallel",),                    # token tiles shard across v7x TCs
            vmem_limit_bytes=vmem_limit,
        ),
    )(x, wqkv, wo_t)

    return out[:N, :E].reshape(B, S, E)


def reference_attention_sdpa(hidden_states, qkv_proj, out_proj, num_heads):
    """Pure-JAX f32 reference reproducing the PyTorch forward exactly."""
    B, S, E = hidden_states.shape
    hd = E // num_heads
    qkv = jnp.einsum('bse,fe->bsf', hidden_states, qkv_proj)             # F.linear
    q, k, v = jnp.split(qkv, 3, axis=-1)
    q = q.reshape(-1, num_heads, hd)
    k = k.reshape(-1, num_heads, hd)
    v = v.reshape(-1, num_heads, hd)
    s = jnp.einsum('nhd,ngd->nhg', q, k) / jnp.sqrt(jnp.float32(hd))
    causal = jnp.tril(jnp.ones((num_heads, num_heads), dtype=bool))
    s = jnp.where(causal[None], s, -jnp.inf)
    p = jax.nn.softmax(s, axis=-1)
    o = jnp.einsum('nhg,ngd->nhd', p, v).reshape(B, S, E)
    return jnp.einsum('bse,fe->bsf', o, out_proj)                         # F.linear


def xavier_normal(key, fan_out, fan_in):
    std = (2.0 / (fan_in + fan_out)) ** 0.5
    return std * jax.random.normal(key, (fan_out, fan_in), dtype=jnp.float32)


if __name__ == "__main__":
    # Small shapes consistent with the module: batch=2, seq=8, embedding_dim=32, heads=4.
    B, S, E, H = 2, 8, 32, 4

    key = jax.random.PRNGKey(0)
    k_x, k_q, k_k, k_v, k_o = jax.random.split(key, 5)

    hidden_states = jax.random.normal(k_x, (B, S, E), dtype=jnp.float32)
    position_ids = jnp.broadcast_to(jnp.arange(S, dtype=jnp.int32)[None, :], (B, S))

    # build_qkv_proj: three xavier_normal (E, E) blocks stacked on dim 0 -> (3E, E).
    qkv_proj = jnp.concatenate(
        [xavier_normal(k_q, E, E), xavier_normal(k_k, E, E), xavier_normal(k_v, E, E)],
        axis=0)
    out_proj = xavier_normal(k_o, E, E)

    out = attention_sdpa(hidden_states, position_ids, qkv_proj, out_proj, num_heads=H)
    out = jax.block_until_ready(out)

    ref = reference_attention_sdpa(hidden_states, qkv_proj, out_proj, H)
    assert out.shape == (B, S, E)
    # bf16 projection weights + approx EUP reciprocal in the softmax -> loose tolerance.
    assert jnp.allclose(out, ref, atol=5e-2, rtol=5e-2), "mismatch vs reference"

    print("KERNEL_OK")
</pallas_src>

<mosaic_0001>
module attributes {stable_mosaic.version = 11 : i64} {
  func.func @attention_sdpa_kernel(%arg0: i32, %arg1: memref<128x128xf32, #tpu.memory_space<vmem>>, %arg2: memref<384x128xbf16, #tpu.memory_space<vmem>>, %arg3: memref<128x128xbf16, #tpu.memory_space<vmem>>, %arg4: memref<128x128xf32, #tpu.memory_space<vmem>>) attributes {dimension_semantics = [#tpu.dimension_semantics<parallel>], iteration_bounds = array<i64: 2>, scalar_prefetch = 0 : i64, scratch_operands = 0 : i64, tpu.core_type = #tpu.core_type<tc>, window_params = [{transform_indices = @transform_0, window_bounds = array<i64: 128, 128>}, {pipeline_mode = #tpu.pipeline_mode<synchronous>, transform_indices = @transform_1, window_bounds = array<i64: 384, 128>}, {pipeline_mode = #tpu.pipeline_mode<synchronous>, transform_indices = @transform_2, window_bounds = array<i64: 128, 128>}, {transform_indices = @transform_3, window_bounds = array<i64: 128, 128>}]} {
    %c0 = arith.constant 0 : index
    %c0_0 = arith.constant 0 : index
    %0 = vector.load %arg1[%c0, %c0_0] : memref<128x128xf32, #tpu.memory_space<vmem>>, vector<128x128xf32>
    %1 = tpu.transpose %0, [1, 0] : vector<128x128xf32> -> vector<128x128xf32>
    %2 = arith.truncf %1 : vector<128x128xf32> to vector<128x128xbf16>
    %c0_1 = arith.constant 0 : index
    %c0_2 = arith.constant 0 : index
    %3 = vector.load %arg2[%c0_1, %c0_2] : memref<384x128xbf16, #tpu.memory_space<vmem>>, vector<128x128xbf16>
    %cst = arith.constant dense<0.000000e+00> : vector<128x128xf32>
    %4 = tpu.matmul %3, %2, %cst {dimension_numbers = #tpu.dot_dimension_numbers<[1], [0], [0], [1], [0, 0, 1, 1], [], []>} : vector<128x128xbf16>, vector<128x128xbf16>, vector<128x128xf32> -> vector<128x128xf32>
    %c128 = arith.constant 128 : index
    %c0_3 = arith.constant 0 : index
    %5 = vector.load %arg2[%c128, %c0_3] : memref<384x128xbf16, #tpu.memory_space<vmem>>, vector<128x128xbf16>
    %cst_4 = arith.constant dense<0.000000e+00> : vector<128x128xf32>
    %6 = tpu.matmul %5, %2, %cst_4 {dimension_numbers = #tpu.dot_dimension_numbers<[1], [0], [0], [1], [0, 0, 1, 1], [], []>} : vector<128x128xbf16>, vector<128x128xbf16>, vector<128x128xf32> -> vector<128x128xf32>
    %c256 = arith.constant 256 : index
    %c0_5 = arith.constant 0 : index
    %7 = vector.load %arg2[%c256, %c0_5] : memref<384x128xbf16, #tpu.memory_space<vmem>>, vector<128x128xbf16>
    %cst_6 = arith.constant dense<0.000000e+00> : vector<128x128xf32>
    %8 = tpu.matmul %7, %2, %cst_6 {dimension_numbers = #tpu.dot_dimension_numbers<[1], [0], [0], [1], [0, 0, 1, 1], [], []>} : vector<128x128xbf16>, vector<128x128xbf16>, vector<128x128xf32> -> vector<128x128xf32>
    %9 = vector.shape_cast %4 : vector<128x128xf32> to vector<16x8x128xf32>
    %10 = vector.shape_cast %6 : vector<128x128xf32> to vector<16x8x128xf32>
    %11 = vector.shape_cast %8 : vector<128x128xf32> to vector<16x8x128xf32>
    %12 = tpu.iota {dimensions = array<i32: 0>} : vector<16x128xi32>
    %13 = vector.extract_strided_slice %10 {offsets = [0, 0, 0], sizes = [1, 8, 128], strides = [1, 1, 1]} : vector<16x8x128xf32> to vector<1x8x128xf32>
    %14 = vector.shape_cast %13 : vector<1x8x128xf32> to vector<8x128xf32>
    %15 = vector.shape_cast %14 : vector<8x128xf32> to vector<1x8x128xf32>
    %16 = vector.broadcast %15 : vector<1x8x128xf32> to vector<16x8x128xf32>
    %17 = arith.mulf %9, %16 : vector<16x8x128xf32>
    %cst_7 = arith.constant dense<0.000000e+00> : vector<16x128xf32>
    %18 = vector.multi_reduction <add>, %17, %cst_7 [1] : vector<16x8x128xf32> to vector<16x128xf32>
    %c0_i32 = arith.constant 0 : i32
    %19 = vector.broadcast %c0_i32 : i32 to vector<16x128xi32>
    %20 = arith.cmpi sge, %12, %19 : vector<16x128xi32>
    %cst_8 = arith.constant -1.000000e+30 : f32
    %21 = vector.broadcast %cst_8 : f32 to vector<16x128xf32>
    %22 = arith.select %20, %18, %21 : vector<16x128xi1>, vector<16x128xf32>
    %23 = vector.extract_strided_slice %10 {offsets = [1, 0, 0], sizes = [1, 8, 128], strides = [1, 1, 1]} : vector<16x8x128xf32> to vector<1x8x128xf32>
    %24 = vector.shape_cast %23 : vector<1x8x128xf32> to vector<8x128xf32>
    %25 = vector.shape_cast %24 : vector<8x128xf32> to vector<1x8x128xf32>
    %26 = vector.broadcast %25 : vector<1x8x128xf32> to vector<16x8x128xf32>
    %27 = arith.mulf %9, %26 : vector<16x8x128xf32>
    %cst_9 = arith.constant dense<0.000000e+00> : vector<16x128xf32>
    %28 = vector.multi_reduction <add>, %27, %cst_9 [1] : vector<16x8x128xf32> to vector<16x128xf32>
    %c1_i32 = arith.constant 1 : i32
    %29 = vector.broadcast %c1_i32 : i32 to vector<16x128xi32>
    %30 = arith.cmpi sge, %12, %29 : vector<16x128xi32>
    %cst_10 = arith.constant -1.000000e+30 : f32
    %31 = vector.broadcast %cst_10 : f32 to vector<16x128xf32>
    %32 = arith.select %30, %28, %31 : vector<16x128xi1>, vector<16x128xf32>
    %33 = vector.extract_strided_slice %10 {offsets = [2, 0, 0], sizes = [1, 8, 128], strides = [1, 1, 1]} : vector<16x8x128xf32> to vector<1x8x128xf32>
    %34 = vector.shape_cast %33 : vector<1x8x128xf32> to vector<8x128xf32>
    %35 = vector.shape_cast %34 : vector<8x128xf32> to vector<1x8x128xf32>
    %36 = vector.broadcast %35 : vector<1x8x128xf32> to vector<16x8x128xf32>
    %37 = arith.mulf %9, %36 : vector<16x8x128xf32>
    %cst_11 = arith.constant dense<0.000000e+00> : vector<16x128xf32>
    %38 = vector.multi_reduction <add>, %37, %cst_11 [1] : vector<16x8x128xf32> to vector<16x128xf32>
    %c2_i32 = arith.constant 2 : i32
    %39 = vector.broadcast %c2_i32 : i32 to vector<16x128xi32>
    %40 = arith.cmpi sge, %12, %39 : vector<16x128xi32>
    %cst_12 = arith.constant -1.000000e+30 : f32
    %41 = vector.broadcast %cst_12 : f32 to vector<16x128xf32>
    %42 = arith.select %40, %38, %41 : vector<16x128xi1>, vector<16x128xf32>
    %43 = vector.extract_strided_slice %10 {offsets = [3, 0, 0], sizes = [1, 8, 128], strides = [1, 1, 1]} : vector<16x8x128xf32> to vector<1x8x128xf32>
    %44 = vector.shape_cast %43 : vector<1x8x128xf32> to vector<8x128xf32>
    %45 = vector.shape_cast %44 : vector<8x128xf32> to vector<1x8x128xf32>
    %46 = vector.broadcast %45 : vector<1x8x128xf32> to vector<16x8x128xf32>
    %47 = arith.mulf %9, %46 : vector<16x8x128xf32>
    %cst_13 = arith.constant dense<0.000000e+00> : vector<16x128xf32>
    %48 = vector.multi_reduction <add>, %47, %cst_13 [1] : vector<16x8x128xf32> to vector<16x128xf32>
    %c3_i32 = arith.constant 3 : i32
    %49 = vector.broadcast %c3_i32 : i32 to vector<16x128xi32>
    %50 = arith.cmpi sge, %12, %49 : vector<16x128xi32>
    %cst_14 = arith.constant -1.000000e+30 : f32
    %51 = vector.broadcast %cst_14 : f32 to vector<16x128xf32>
    %52 = arith.select %50, %48, %51 : vector<16x128xi1>, vector<16x128xf32>
    %53 = vector.extract_strided_slice %10 {offsets = [4, 0, 0], sizes = [1, 8, 128], strides = [1, 1, 1]} : vector<16x8x128xf32> to vector<1x8x128xf32>
    %54 = vector.shape_cast %53 : vector<1x8x128xf32> to vector<8x128xf32>
    %55 = vector.shape_cast %54 : vector<8x128xf32> to vector<1x8x128xf32>
    %56 = vector.broadcast %55 : vector<1x8x128xf32> to vector<16x8x128xf32>
    %57 = arith.mulf %9, %56 : vector<16x8x128xf32>
    %cst_15 = arith.constant dense<0.000000e+00> : vector<16x128xf32>
    %58 = vector.multi_reduction <add>, %57, %cst_15 [1] : vector<16x8x128xf32> to vector<16x128xf32>
    %c4_i32 = arith.constant 4 : i32
    %59 = vector.broadcast %c4_i32 : i32 to vector<16x128xi32>
    %60 = arith.cmpi sge, %12, %59 : vector<16x128xi32>
    %cst_16 = arith.constant -1.000000e+30 : f32
    %61 = vector.broadcast %cst_16 : f32 to vector<16x128xf32>
    %62 = arith.select %60, %58, %61 : vector<16x128xi1>, vector<16x128xf32>
    %63 = vector.extract_strided_slice %10 {offsets = [5, 0, 0], sizes = [1, 8, 128], strides = [1, 1, 1]} : vector<16x8x128xf32> to vector<1x8x128xf32>
    %64 = vector.shape_cast %63 : vector<1x8x128xf32> to vector<8x128xf32>
    %65 = vector.shape_cast %64 : vector<8x128xf32> to vector<1x8x128xf32>
    %66 = vector.broadcast %65 : vector<1x8x128xf32> to vector<16x8x128xf32>
    %67 = arith.mulf %9, %66 : vector<16x8x128xf32>
    %cst_17 = arith.constant dense<0.000000e+00> : vector<16x128xf32>
    %68 = vector.multi_reduction <add>, %67, %cst_17 [1] : vector<16x8x128xf32> to vector<16x128xf32>
    %c5_i32 = arith.constant 5 : i32
    %69 = vector.broadcast %c5_i32 : i32 to vector<16x128xi32>
    %70 = arith.cmpi sge, %12, %69 : vector<16x128xi32>
    %cst_18 = arith.constant -1.000000e+30 : f32
    %71 = vector.broadcast %cst_18 : f32 to vector<16x128xf32>
    %72 = arith.select %70, %68, %71 : vector<16x128xi1>, vector<16x128xf32>
    %73 = vector.extract_strided_slice %10 {offsets = [6, 0, 0], sizes = [1, 8, 128], strides = [1, 1, 1]} : vector<16x8x128xf32> to vector<1x8x128xf32>
    %74 = vector.shape_cast %73 : vector<1x8x128xf32> to vector<8x128xf32>
    %75 = vector.shape_cast %74 : vector<8x128xf32> to vector<1x8x128xf32>
    %76 = vector.broadcast %75 : vector<1x8x128xf32> to vector<16x8x128xf32>
    %77 = arith.mulf %9, %76 : vector<16x8x128xf32>
    %cst_19 = arith.constant dense<0.000000e+00> : vector<16x128xf32>
    %78 = vector.multi_reduction <add>, %77, %cst_19 [1] : vector<16x8x128xf32> to vector<16x128xf32>
    %c6_i32 = arith.constant 6 : i32
    %79 = vector.broadcast %c6_i32 : i32 to vector<16x128xi32>
    %80 = arith.cmpi sge, %12, %79 : vector<16x128xi32>
    %cst_20 = arith.constant -1.000000e+30 : f32
    %81 = vector.broadcast %cst_20 : f32 to vector<16x128xf32>
    %82 = arith.select %80, %78, %81 : vector<16x128xi1>, vector<16x128xf32>
    %83 = vector.extract_strided_slice %10 {offsets = [7, 0, 0], sizes = [1, 8, 128], strides = [1, 1, 1]} : vector<16x8x128xf32> to vector<1x8x128xf32>
    %84 = vector.shape_cast %83 : vector<1x8x128xf32> to vector<8x128xf32>
    %85 = vector.shape_cast %84 : vector<8x128xf32> to vector<1x8x128xf32>
    %86 = vector.broadcast %85 : vector<1x8x128xf32> to vector<16x8x128xf32>
    %87 = arith.mulf %9, %86 : vector<16x8x128xf32>
    %cst_21 = arith.constant dense<0.000000e+00> : vector<16x128xf32>
    %88 = vector.multi_reduction <add>, %87, %cst_21 [1] : vector<16x8x128xf32> to vector<16x128xf32>
    %c7_i32 = arith.constant 7 : i32
    %89 = vector.broadcast %c7_i32 : i32 to vector<16x128xi32>
    %90 = arith.cmpi sge, %12, %89 : vector<16x128xi32>
    %cst_22 = arith.constant -1.000000e+30 : f32
    %91 = vector.broadcast %cst_22 : f32 to vector<16x128xf32>
    %92 = arith.select %90, %88, %91 : vector<16x128xi1>, vector<16x128xf32>
    %93 = vector.extract_strided_slice %10 {offsets = [8, 0, 0], sizes = [1, 8, 128], strides = [1, 1, 1]} : vector<16x8x128xf32> to vector<1x8x128xf32>
    %94 = vector.shape_cast %93 : vector<1x8x128xf32> to vector<8x128xf32>
    %95 = vector.shape_cast %94 : vector<8x128xf32> to vector<1x8x128xf32>
    %96 = vector.broadcast %95 : vector<1x8x128xf32> to vector<16x8x128xf32>
    %97 = arith.mulf %9, %96 : vector<16x8x128xf32>
    %cst_23 = arith.constant dense<0.000000e+00> : vector<16x128xf32>
    %98 = vector.multi_reduction <add>, %97, %cst_23 [1] : vector<16x8x128xf32> to vector<16x128xf32>
    %c8_i32 = arith.constant 8 : i32
    %99 = vector.broadcast %c8_i32 : i32 to vector<16x128xi32>
    %100 = arith.cmpi sge, %12, %99 : vector<16x128xi32>
    %cst_24 = arith.constant -1.000000e+30 : f32
    %101 = vector.broadcast %cst_24 : f32 to vector<16x128xf32>
    %102 = arith.select %100, %98, %101 : vector<16x128xi1>, vector<16x128xf32>
    %103 = vector.extract_strided_slice %10 {offsets = [9, 0, 0], sizes = [1, 8, 128], strides = [1, 1, 1]} : vector<16x8x128xf32> to vector<1x8x128xf32>
    %104 = vector.shape_cast %103 : vector<1x8x128xf32> to vector<8x128xf32>
    %105 = vector.shape_cast %104 : vector<8x128xf32> to vector<1x8x128xf32>
    %106 = vector.broadcast %105 : vector<1x8x128xf32> to vector<16x8x128xf32>
    %107 = arith.mulf %9, %106 : vector<16x8x128xf32>
    %cst_25 = arith.constant dense<0.000000e+00> : vector<16x128xf32>
    %108 = vector.multi_reduction <add>, %107, %cst_25 [1] : vector<16x8x128xf32> to vector<16x128xf32>
    %c9_i32 = arith.constant 9 : i32
    %109 = vector.broadcast %c9_i32 : i32 to vector<16x128xi32>
    %110 = arith.cmpi sge, %12, %109 : vector<16x128xi32>
    %cst_26 = arith.constant -1.000000e+30 : f32
    %111 = vector.broadcast %cst_26 : f32 to vector<16x128xf32>
    %112 = arith.select %110, %108, %111 : vector<16x128xi1>, vector<16x128xf32>
    %113 = vector.extract_strided_slice %10 {offsets = [10, 0, 0], sizes = [1, 8, 128], strides = [1, 1, 1]} : vector<16x8x128xf32> to vector<1x8x128xf32>
    %114 = vector.shape_cast %113 : vector<1x8x128xf32> to vector<8x128xf32>
    %115 = vector.shape_cast %114 : vector<8x128xf32> to vector<1x8x128xf32>
    %116 = vector.broadcast %115 : vector<1x8x128xf32> to vector<16x8x128xf32>
    %117 = arith.mulf %9, %116 : vector<16x8x128xf32>
    %cst_27 = arith.constant dense<0.000000e+00> : vector<16x128xf32>
    %118 = vector.multi_reduction <add>, %117, %cst_27 [1] : vector<16x8x128xf32> to vector<16x128xf32>
    %c10_i32 = arith.constant 10 : i32
    %119 = vector.broadcast %c10_i32 : i32 to vector<16x128xi32>
    %120 = arith.cmpi sge, %12, %119 : vector<16x128xi32>
    %cst_28 = arith.constant -1.000000e+30 : f32
    %121 = vector.broadcast %cst_28 : f32 to vector<16x128xf32>
    %122 = arith.select %120, %118, %121 : vector<16x128xi1>, vector<16x128xf32>
    %123 = vector.extract_strided_slice %10 {offsets = [11, 0, 0], sizes = [1, 8, 128], strides = [1, 1, 1]} : vector<16x8x128xf32> to vector<1x8x128xf32>
    %124 = vector.shape_cast %123 : vector<1x8x128xf32> to vector<8x128xf32>
    %125 = vector.shape_cast %124 : vector<8x128xf32> to vector<1x8x128xf32>
    %126 = vector.broadcast %125 : vector<1x8x128xf32> to vector<16x8x128xf32>
    %127 = arith.mulf %9, %126 : vector<16x8x128xf32>
    %cst_29 = arith.constant dense<0.000000e+00> : vector<16x128xf32>
    %128 = vector.multi_reduction <add>, %127, %cst_29 [1] : vector<16x8x128xf32> to vector<16x128xf32>
    %c11_i32 = arith.constant 11 : i32
    %129 = vector.broadcast %c11_i32 : i32 to vector<16x128xi32>
    %130 = arith.cmpi sge, %12, %129 : vector<16x128xi32>
    %cst_30 = arith.constant -1.000000e+30 : f32
    %131 = vector.broadcast %cst_30 : f32 to vector<16x128xf32>
    %132 = arith.select %130, %128, %131 : vector<16x128xi1>, vector<16x128xf32>
    %133 = vector.extract_strided_slice %10 {offsets = [12, 0, 0], sizes = [1, 8, 128], strides = [1, 1, 1]} : vector<16x8x128xf32> to vector<1x8x128xf32>
    %134 = vector.shape_cast %133 : vector<1x8x128xf32> to vector<8x128xf32>
    %135 = vector.shape_cast %134 : vector<8x128xf32> to vector<1x8x128xf32>
    %136 = vector.broadcast %135 : vector<1x8x128xf32> to vector<16x8x128xf32>
    %137 = arith.mulf %9, %136 : vector<16x8x128xf32>
    %cst_31 = arith.constant dense<0.000000e+00> : vector<16x128xf32>
    %138 = vector.multi_reduction <add>, %137, %cst_31 [1] : vector<16x8x128xf32> to vector<16x128xf32>
    %c12_i32 = arith.constant 12 : i32
    %139 = vector.broadcast %c12_i32 : i32 to vector<16x128xi32>
    %140 = arith.cmpi sge, %12, %139 : vector<16x128xi32>
    %cst_32 = arith.constant -1.000000e+30 : f32
    %141 = vector.broadcast %cst_32 : f32 to vector<16x128xf32>
    %142 = arith.select %140, %138, %141 : vector<16x128xi1>, vector<16x128xf32>
    %143 = vector.extract_strided_slice %10 {offsets = [13, 0, 0], sizes = [1, 8, 128], strides = [1, 1, 1]} : vector<16x8x128xf32> to vector<1x8x128xf32>
    %144 = vector.shape_cast %143 : vector<1x8x128xf32> to vector<8x128xf32>
    %145 = vector.shape_cast %144 : vector<8x128xf32> to vector<1x8x128xf32>
    %146 = vector.broadcast %145 : vector<1x8x128xf32> to vector<16x8x128xf32>
    %147 = arith.mulf %9, %146 : vector<16x8x128xf32>
    %cst_33 = arith.constant dense<0.000000e+00> : vector<16x128xf32>
    %148 = vector.multi_reduction <add>, %147, %cst_33 [1] : vector<16x8x128xf32> to vector<16x128xf32>
    %c13_i32 = arith.constant 13 : i32
    %149 = vector.broadcast %c13_i32 : i32 to vector<16x128xi32>
    %150 = arith.cmpi sge, %12, %149 : vector<16x128xi32>
    %cst_34 = arith.constant -1.000000e+30 : f32
    %151 = vector.broadcast %cst_34 : f32 to vector<16x128xf32>
    %152 = arith.select %150, %148, %151 : vector<16x128xi1>, vector<16x128xf32>
    %153 = vector.extract_strided_slice %10 {offsets = [14, 0, 0], sizes = [1, 8, 128], strides = [1, 1, 1]} : vector<16x8x128xf32> to vector<1x8x128xf32>
    %154 = vector.shape_cast %153 : vector<1x8x128xf32> to vector<8x128xf32>
    %155 = vector.shape_cast %154 : vector<8x128xf32> to vector<1x8x128xf32>
    %156 = vector.broadcast %155 : vector<1x8x128xf32> to vector<16x8x128xf32>
    %157 = arith.mulf %9, %156 : vector<16x8x128xf32>
    %cst_35 = arith.constant dense<0.000000e+00> : vector<16x128xf32>
    %158 = vector.multi_reduction <add>, %157, %cst_35 [1] : vector<16x8x128xf32> to vector<16x128xf32>
    %c14_i32 = arith.constant 14 : i32
    %159 = vector.broadcast %c14_i32 : i32 to vector<16x128xi32>
    %160 = arith.cmpi sge, %12, %159 : vector<16x128xi32>
    %cst_36 = arith.constant -1.000000e+30 : f32
    %161 = vector.broadcast %cst_36 : f32 to vector<16x128xf32>
    %162 = arith.select %160, %158, %161 : vector<16x128xi1>, vector<16x128xf32>
    %163 = vector.extract_strided_slice %10 {offsets = [15, 0, 0], sizes = [1, 8, 128], strides = [1, 1, 1]} : vector<16x8x128xf32> to vector<1x8x128xf32>
    %164 = vector.shape_cast %163 : vector<1x8x128xf32> to vector<8x128xf32>
    %165 = vector.shape_cast %164 : vector<8x128xf32> to vector<1x8x128xf32>
    %166 = vector.broadcast %165 : vector<1x8x128xf32> to vector<16x8x128xf32>
    %167 = arith.mulf %9, %166 : vector<16x8x128xf32>
    %cst_37 = arith.constant dense<0.000000e+00> : vector<16x128xf32>
    %168 = vector.multi_reduction <add>, %167, %cst_37 [1] : vector<16x8x128xf32> to vector<16x128xf32>
    %c15_i32 = arith.constant 15 : i32
    %169 = vector.broadcast %c15_i32 : i32 to vector<16x128xi32>
    %170 = arith.cmpi sge, %12, %169 : vector<16x128xi32>
    %cst_38 = arith.constant -1.000000e+30 : f32
    %171 = vector.broadcast %cst_38 : f32 to vector<16x128xf32>
    %172 = arith.select %170, %168, %171 : vector<16x128xi1>, vector<16x128xf32>
    %173 = arith.maximumf %22, %32 : vector<16x128xf32>
    %174 = arith.maximumf %173, %42 : vector<16x128xf32>
    %175 = arith.maximumf %174, %52 : vector<16x128xf32>
    %176 = arith.maximumf %175, %62 : vector<16x128xf32>
    %177 = arith.maximumf %176, %72 : vector<16x128xf32>
    %178 = arith.maximumf %177, %82 : vector<16x128xf32>
    %179 = arith.maximumf %178, %92 : vector<16x128xf32>
    %180 = arith.maximumf %179, %102 : vector<16x128xf32>
    %181 = arith.maximumf %180, %112 : vector<16x128xf32>
    %182 = arith.maximumf %181, %122 : vector<16x128xf32>
    %183 = arith.maximumf %182, %132 : vector<16x128xf32>
    %184 = arith.maximumf %183, %142 : vector<16x128xf32>
    %185 = arith.maximumf %184, %152 : vector<16x128xf32>
    %186 = arith.maximumf %185, %162 : vector<16x128xf32>
    %187 = arith.maximumf %186, %172 : vector<16x128xf32>
    %cst_39 = arith.constant 0.000000e+00 : f32
    %188 = vector.broadcast %cst_39 : f32 to vector<16x128xf32>
    %cst_40 = arith.constant 0.000000e+00 : f32
    %189 = vector.broadcast %cst_40 : f32 to vector<16x8x128xf32>
    %190 = arith.subf %22, %187 : vector<16x128xf32>
    %191 = math.exp %190 : vector<16x128xf32>
    %192 = arith.addf %188, %191 : vector<16x128xf32>
    %193 = vector.shape_cast %191 : vector<16x128xf32> to vector<16x1x128xf32>
    %194 = vector.extract_strided_slice %11 {offsets = [0, 0, 0], sizes = [1, 8, 128], strides = [1, 1, 1]} : vector<16x8x128xf32> to vector<1x8x128xf32>
    %195 = vector.shape_cast %194 : vector<1x8x128xf32> to vector<8x128xf32>
    %196 = vector.shape_cast %195 : vector<8x128xf32> to vector<1x8x128xf32>
    %197 = vector.broadcast %193 : vector<16x1x128xf32> to vector<16x8x128xf32>
    %198 = vector.broadcast %196 : vector<1x8x128xf32> to vector<16x8x128xf32>
    %199 = arith.mulf %197, %198 : vector<16x8x128xf32>
    %200 = arith.addf %189, %199 : vector<16x8x128xf32>
    %201 = arith.subf %32, %187 : vector<16x128xf32>
    %202 = math.exp %201 : vector<16x128xf32>
    %203 = arith.addf %192, %202 : vector<16x128xf32>
    %204 = vector.shape_cast %202 : vector<16x128xf32> to vector<16x1x128xf32>
    %205 = vector.extract_strided_slice %11 {offsets = [1, 0, 0], sizes = [1, 8, 128], strides = [1, 1, 1]} : vector<16x8x128xf32> to vector<1x8x128xf32>
    %206 = vector.shape_cast %205 : vector<1x8x128xf32> to vector<8x128xf32>
    %207 = vector.shape_cast %206 : vector<8x128xf32> to vector<1x8x128xf32>
    %208 = vector.broadcast %204 : vector<16x1x128xf32> to vector<16x8x128xf32>
    %209 = vector.broadcast %207 : vector<1x8x128xf32> to vector<16x8x128xf32>
    %210 = arith.mulf %208, %209 : vector<16x8x128xf32>
    %211 = arith.addf %200, %210 : vector<16x8x128xf32>
    %212 = arith.subf %42, %187 : vector<16x128xf32>
    %213 = math.exp %212 : vector<16x128xf32>
    %214 = arith.addf %203, %213 : vector<16x128xf32>
    %215 = vector.shape_cast %213 : vector<16x128xf32> to vector<16x1x128xf32>
    %216 = vector.extract_strided_slice %11 {offsets = [2, 0, 0], sizes = [1, 8, 128], strides = [1, 1, 1]} : vector<16x8x128xf32> to vector<1x8x128xf32>
    %217 = vector.shape_cast %216 : vector<1x8x128xf32> to vector<8x128xf32>
    %218 = vector.shape_cast %217 : vector<8x128xf32> to vector<1x8x128xf32>
    %219 = vector.broadcast %215 : vector<16x1x128xf32> to vector<16x8x128xf32>
    %220 = vector.broadcast %218 : vector<1x8x128xf32> to vector<16x8x128xf32>
    %221 = arith.mulf %219, %220 : vector<16x8x128xf32>
    %222 = arith.addf %211, %221 : vector<16x8x128xf32>
    %223 = arith.subf %52, %187 : vector<16x128xf32>
    %224 = math.exp %223 : vector<16x128xf32>
    %225 = arith.addf %214, %224 : vector<16x128xf32>
    %226 = vector.shape_cast %224 : vector<16x128xf32> to vector<16x1x128xf32>
    %227 = vector.extract_strided_slice %11 {offsets = [3, 0, 0], sizes = [1, 8, 128], strides = [1, 1, 1]} : vector<16x8x128xf32> to vector<1x8x128xf32>
    %228 = vector.shape_cast %227 : vector<1x8x128xf32> to vector<8x128xf32>
    %229 = vector.shape_cast %228 : vector<8x128xf32> to vector<1x8x128xf32>
    %230 = vector.broadcast %226 : vector<16x1x128xf32> to vector<16x8x128xf32>
    %231 = vector.broadcast %229 : vector<1x8x128xf32> to vector<16x8x128xf32>
    %232 = arith.mulf %230, %231 : vector<16x8x128xf32>
    %233 = arith.addf %222, %232 : vector<16x8x128xf32>
    %234 = arith.subf %62, %187 : vector<16x128xf32>
    %235 = math.exp %234 : vector<16x128xf32>
    %236 = arith.addf %225, %235 : vector<16x128xf32>
    %237 = vector.shape_cast %235 : vector<16x128xf32> to vector<16x1x128xf32>
    %238 = vector.extract_strided_slice %11 {offsets = [4, 0, 0], sizes = [1, 8, 128], strides = [1, 1, 1]} : vector<16x8x128xf32> to vector<1x8x128xf32>
    %239 = vector.shape_cast %238 : vector<1x8x128xf32> to vector<8x128xf32>
    %240 = vector.shape_cast %239 : vector<8x128xf32> to vector<1x8x128xf32>
    %241 = vector.broadcast %237 : vector<16x1x128xf32> to vector<16x8x128xf32>
    %242 = vector.broadcast %240 : vector<1x8x128xf32> to vector<16x8x128xf32>
    %243 = arith.mulf %241, %242 : vector<16x8x128xf32>
    %244 = arith.addf %233, %243 : vector<16x8x128xf32>
    %245 = arith.subf %72, %187 : vector<16x128xf32>
    %246 = math.exp %245 : vector<16x128xf32>
    %247 = arith.addf %236, %246 : vector<16x128xf32>
    %248 = vector.shape_cast %246 : vector<16x128xf32> to vector<16x1x128xf32>
    %249 = vector.extract_strided_slice %11 {offsets = [5, 0, 0], sizes = [1, 8, 128], strides = [1, 1, 1]} : vector<16x8x128xf32> to vector<1x8x128xf32>
    %250 = vector.shape_cast %249 : vector<1x8x128xf32> to vector<8x128xf32>
    %251 = vector.shape_cast %250 : vector<8x128xf32> to vector<1x8x128xf32>
    %252 = vector.broadcast %248 : vector<16x1x128xf32> to vector<16x8x128xf32>
    %253 = vector.broadcast %251 : vector<1x8x128xf32> to vector<16x8x128xf32>
    %254 = arith.mulf %252, %253 : vector<16x8x128xf32>
    %255 = arith.addf %244, %254 : vector<16x8x128xf32>
    %256 = arith.subf %82, %187 : vector<16x128xf32>
    %257 = math.exp %256 : vector<16x128xf32>
    %258 = arith.addf %247, %257 : vector<16x128xf32>
    %259 = vector.shape_cast %257 : vector<16x128xf32> to vector<16x1x128xf32>
    %260 = vector.extract_strided_slice %11 {offsets = [6, 0, 0], sizes = [1, 8, 128], strides = [1, 1, 1]} : vector<16x8x128xf32> to vector<1x8x128xf32>
    %261 = vector.shape_cast %260 : vector<1x8x128xf32> to vector<8x128xf32>
    %262 = vector.shape_cast %261 : vector<8x128xf32> to vector<1x8x128xf32>
    %263 = vector.broadcast %259 : vector<16x1x128xf32> to vector<16x8x128xf32>
    %264 = vector.broadcast %262 : vector<1x8x128xf32> to vector<16x8x128xf32>
    %265 = arith.mulf %263, %264 : vector<16x8x128xf32>
    %266 = arith.addf %255, %265 : vector<16x8x128xf32>
    %267 = arith.subf %92, %187 : vector<16x128xf32>
    %268 = math.exp %267 : vector<16x128xf32>
    %269 = arith.addf %258, %268 : vector<16x128xf32>
    %270 = vector.shape_cast %268 : vector<16x128xf32> to vector<16x1x128xf32>
    %271 = vector.extract_strided_slice %11 {offsets = [7, 0, 0], sizes = [1, 8, 128], strides = [1, 1, 1]} : vector<16x8x128xf32> to vector<1x8x128xf32>
    %272 = vector.shape_cast %271 : vector<1x8x128xf32> to vector<8x128xf32>
    %273 = vector.shape_cast %272 : vector<8x128xf32> to vector<1x8x128xf32>
    %274 = vector.broadcast %270 : vector<16x1x128xf32> to vector<16x8x128xf32>
    %275 = vector.broadcast %273 : vector<1x8x128xf32> to vector<16x8x128xf32>
    %276 = arith.mulf %274, %275 : vector<16x8x128xf32>
    %277 = arith.addf %266, %276 : vector<16x8x128xf32>
    %278 = arith.subf %102, %187 : vector<16x128xf32>
    %279 = math.exp %278 : vector<16x128xf32>
    %280 = arith.addf %269, %279 : vector<16x128xf32>
    %281 = vector.shape_cast %279 : vector<16x128xf32> to vector<16x1x128xf32>
    %282 = vector.extract_strided_slice %11 {offsets = [8, 0, 0], sizes = [1, 8, 128], strides = [1, 1, 1]} : vector<16x8x128xf32> to vector<1x8x128xf32>
    %283 = vector.shape_cast %282 : vector<1x8x128xf32> to vector<8x128xf32>
    %284 = vector.shape_cast %283 : vector<8x128xf32> to vector<1x8x128xf32>
    %285 = vector.broadcast %281 : vector<16x1x128xf32> to vector<16x8x128xf32>
    %286 = vector.broadcast %284 : vector<1x8x128xf32> to vector<16x8x128xf32>
    %287 = arith.mulf %285, %286 : vector<16x8x128xf32>
    %288 = arith.addf %277, %287 : vector<16x8x128xf32>
    %289 = arith.subf %112, %187 : vector<16x128xf32>
    %290 = math.exp %289 : vector<16x128xf32>
    %291 = arith.addf %280, %290 : vector<16x128xf32>
    %292 = vector.shape_cast %290 : vector<16x128xf32> to vector<16x1x128xf32>
    %293 = vector.extract_strided_slice %11 {offsets = [9, 0, 0], sizes = [1, 8, 128], strides = [1, 1, 1]} : vector<16x8x128xf32> to vector<1x8x128xf32>
    %294 = vector.shape_cast %293 : vector<1x8x128xf32> to vector<8x128xf32>
    %295 = vector.shape_cast %294 : vector<8x128xf32> to vector<1x8x128xf32>
    %296 = vector.broadcast %292 : vector<16x1x128xf32> to vector<16x8x128xf32>
    %297 = vector.broadcast %295 : vector<1x8x128xf32> to vector<16x8x128xf32>
    %298 = arith.mulf %296, %297 : vector<16x8x128xf32>
    %299 = arith.addf %288, %298 : vector<16x8x128xf32>
    %300 = arith.subf %122, %187 : vector<16x128xf32>
    %301 = math.exp %300 : vector<16x128xf32>
    %302 = arith.addf %291, %301 : vector<16x128xf32>
    %303 = vector.shape_cast %301 : vector<16x128xf32> to vector<16x1x128xf32>
    %304 = vector.extract_strided_slice %11 {offsets = [10, 0, 0], sizes = [1, 8, 128], strides = [1, 1, 1]} : vector<16x8x128xf32> to vector<1x8x128xf32>
    %305 = vector.shape_cast %304 : vector<1x8x128xf32> to vector<8x128xf32>
    %306 = vector.shape_cast %305 : vector<8x128xf32> to vector<1x8x128xf32>
    %307 = vector.broadcast %303 : vector<16x1x128xf32> to vector<16x8x128xf32>
    %308 = vector.broadcast %306 : vector<1x8x128xf32> to vector<16x8x128xf32>
    %309 = arith.mulf %307, %308 : vector<16x8x128xf32>
    %310 = arith.addf %299, %309 : vector<16x8x128xf32>
    %311 = arith.subf %132, %187 : vector<16x128xf32>
    %312 = math.exp %311 : vector<16x128xf32>
    %313 = arith.addf %302, %312 : vector<16x128xf32>
    %314 = vector.shape_cast %312 : vector<16x128xf32> to vector<16x1x128xf32>
    %315 = vector.extract_strided_slice %11 {offsets = [11, 0, 0], sizes = [1, 8, 128], strides = [1, 1, 1]} : vector<16x8x128xf32> to vector<1x8x128xf32>
    %316 = vector.shape_cast %315 : vector<1x8x128xf32> to vector<8x128xf32>
    %317 = vector.shape_cast %316 : vector<8x128xf32> to vector<1x8x128xf32>
    %318 = vector.broadcast %314 : vector<16x1x128xf32> to vector<16x8x128xf32>
    %319 = vector.broadcast %317 : vector<1x8x128xf32> to vector<16x8x128xf32>
    %320 = arith.mulf %318, %319 : vector<16x8x128xf32>
    %321 = arith.addf %310, %320 : vector<16x8x128xf32>
    %322 = arith.subf %142, %187 : vector<16x128xf32>
    %323 = math.exp %322 : vector<16x128xf32>
    %324 = arith.addf %313, %323 : vector<16x128xf32>
    %325 = vector.shape_cast %323 : vector<16x128xf32> to vector<16x1x128xf32>
    %326 = vector.extract_strided_slice %11 {offsets = [12, 0, 0], sizes = [1, 8, 128], strides = [1, 1, 1]} : vector<16x8x128xf32> to vector<1x8x128xf32>
    %327 = vector.shape_cast %326 : vector<1x8x128xf32> to vector<8x128xf32>
    %328 = vector.shape_cast %327 : vector<8x128xf32> to vector<1x8x128xf32>
    %329 = vector.broadcast %325 : vector<16x1x128xf32> to vector<16x8x128xf32>
    %330 = vector.broadcast %328 : vector<1x8x128xf32> to vector<16x8x128xf32>
    %331 = arith.mulf %329, %330 : vector<16x8x128xf32>
    %332 = arith.addf %321, %331 : vector<16x8x128xf32>
    %333 = arith.subf %152, %187 : vector<16x128xf32>
    %334 = math.exp %333 : vector<16x128xf32>
    %335 = arith.addf %324, %334 : vector<16x128xf32>
    %336 = vector.shape_cast %334 : vector<16x128xf32> to vector<16x1x128xf32>
    %337 = vector.extract_strided_slice %11 {offsets = [13, 0, 0], sizes = [1, 8, 128], strides = [1, 1, 1]} : vector<16x8x128xf32> to vector<1x8x128xf32>
    %338 = vector.shape_cast %337 : vector<1x8x128xf32> to vector<8x128xf32>
    %339 = vector.shape_cast %338 : vector<8x128xf32> to vector<1x8x128xf32>
    %340 = vector.broadcast %336 : vector<16x1x128xf32> to vector<16x8x128xf32>
    %341 = vector.broadcast %339 : vector<1x8x128xf32> to vector<16x8x128xf32>
    %342 = arith.mulf %340, %341 : vector<16x8x128xf32>
    %343 = arith.addf %332, %342 : vector<16x8x128xf32>
    %344 = arith.subf %162, %187 : vector<16x128xf32>
    %345 = math.exp %344 : vector<16x128xf32>
    %346 = arith.addf %335, %345 : vector<16x128xf32>
    %347 = vector.shape_cast %345 : vector<16x128xf32> to vector<16x1x128xf32>
    %348 = vector.extract_strided_slice %11 {offsets = [14, 0, 0], sizes = [1, 8, 128], strides = [1, 1, 1]} : vector<16x8x128xf32> to vector<1x8x128xf32>
    %349 = vector.shape_cast %348 : vector<1x8x128xf32> to vector<8x128xf32>
    %350 = vector.shape_cast %349 : vector<8x128xf32> to vector<1x8x128xf32>
    %351 = vector.broadcast %347 : vector<16x1x128xf32> to vector<16x8x128xf32>
    %352 = vector.broadcast %350 : vector<1x8x128xf32> to vector<16x8x128xf32>
    %353 = arith.mulf %351, %352 : vector<16x8x128xf32>
    %354 = arith.addf %343, %353 : vector<16x8x128xf32>
    %355 = arith.subf %172, %187 : vector<16x128xf32>
    %356 = math.exp %355 : vector<16x128xf32>
    %357 = arith.addf %346, %356 : vector<16x128xf32>
    %358 = vector.shape_cast %356 : vector<16x128xf32> to vector<16x1x128xf32>
    %359 = vector.extract_strided_slice %11 {offsets = [15, 0, 0], sizes = [1, 8, 128], strides = [1, 1, 1]} : vector<16x8x128xf32> to vector<1x8x128xf32>
    %360 = vector.shape_cast %359 : vector<1x8x128xf32> to vector<8x128xf32>
    %361 = vector.shape_cast %360 : vector<8x128xf32> to vector<1x8x128xf32>
    %362 = vector.broadcast %358 : vector<16x1x128xf32> to vector<16x8x128xf32>
    %363 = vector.broadcast %361 : vector<1x8x128xf32> to vector<16x8x128xf32>
    %364 = arith.mulf %362, %363 : vector<16x8x128xf32>
    %365 = arith.addf %354, %364 : vector<16x8x128xf32>
    %366 = tpu.reciprocal %357 {approx = true} : vector<16x128xf32> -> vector<16x128xf32>
    %367 = vector.shape_cast %366 : vector<16x128xf32> to vector<16x1x128xf32>
    %368 = vector.broadcast %367 : vector<16x1x128xf32> to vector<16x8x128xf32>
    %369 = arith.mulf %365, %368 : vector<16x8x128xf32>
    %370 = vector.shape_cast %369 : vector<16x8x128xf32> to vector<128x128xf32>
    %371 = tpu.transpose %370, [1, 0] : vector<128x128xf32> -> vector<128x128xf32>
    %372 = arith.truncf %371 : vector<128x128xf32> to vector<128x128xbf16>
    %c0_41 = arith.constant 0 : index
    %c0_42 = arith.constant 0 : index
    %373 = vector.load %arg3[%c0_41, %c0_42] : memref<128x128xbf16, #tpu.memory_space<vmem>>, vector<128x128xbf16>
    %cst_43 = arith.constant dense<0.000000e+00> : vector<128x128xf32>
    %374 = tpu.matmul %372, %373, %cst_43 {dimension_numbers = #tpu.dot_dimension_numbers<[1], [0], [0], [1], [0, 0, 1, 1], [], []>} : vector<128x128xbf16>, vector<128x128xbf16>, vector<128x128xf32> -> vector<128x128xf32>
    %c0_44 = arith.constant 0 : index
    %c0_45 = arith.constant 0 : index
    %375 = vector.load %arg4[%c0_44, %c0_45] : memref<128x128xf32, #tpu.memory_space<vmem>>, vector<128x128xf32>
    tpu.vector_store %arg4[%c0_44, %c0_45], %374 {strides = array<i32>} : memref<128x128xf32, #tpu.memory_space<vmem>>, vector<128x128xf32>,
    return
  }
  func.func @transform_0(%arg0: i32) -> (i32, i32) {
    %c0_i32 = arith.constant 0 : i32
    %c0_i32_0 = arith.constant 0 : i32
    return %arg0, %c0_i32 : i32, i32
  }
  func.func @transform_1(%arg0: i32) -> (i32, i32) {
    %c0_i32 = arith.constant 0 : i32
    %c0_i32_0 = arith.constant 0 : i32
    %c0_i32_1 = arith.constant 0 : i32
    return %c0_i32, %c0_i32_0 : i32, i32
  }
  func.func @transform_2(%arg0: i32) -> (i32, i32) {
    %c0_i32 = arith.constant 0 : i32
    %c0_i32_0 = arith.constant 0 : i32
    %c0_i32_1 = arith.constant 0 : i32
    return %c0_i32, %c0_i32_0 : i32, i32
  }
  func.func @transform_3(%arg0: i32) -> (i32, i32) {
    %c0_i32 = arith.constant 0 : i32
    %c0_i32_0 = arith.constant 0 : i32
    return %arg0, %c0_i32 : i32, i32
  }
}

</mosaic_0001>

<bundles_post_ra>
// kernel: tpu_custom_call.1
= control target key start
LH: loop header
LB: loop body
LE: loop exit
PB: predicated region body
PF: predicated region fallthrough
CT: control target
= control target key end

     0   :  { %8 = vsyncpa [#allocation3], 0  ;;  %s10845_s0 = inlined_call_operand.hbm [shape: f32[256,128], index: 0, kind: input, shape index: {}]   ;;  %s10846_s1 = inlined_call_operand.hbm [shape: bf16[384,128], index: 1, kind: input, shape index: {}]   ;;  %s10847_s2 = inlined_call_operand.hbm [shape: bf16[128,128], index: 2, kind: input, shape index: {}]   ;;  %s10848_s3 = inlined_call_operand.hbm [shape: f32[256,128], index: 3, kind: output, shape index: {}]  }
   0x1   :  { %10 = vsyncpa [#allocation3 + $0x1], 0 }
   0x2   :  { %11 = vsyncpa [#allocation6], 0 }
   0x3   :  { %12 = vsyncpa [#allocation4], 0 }
   0x4   :  { %14 = vsyncpa [#allocation4 + $0x1], 0  ;;  %s7802_s12 = smov 0   ;;  %s7804_s13 = smov 0  }
   0x5   :  { %s7806_s14 = smov 0   ;;  %s7808_s15 = smov 0  }
   0x6 LB: > { %s7823_s16 = sadd.s32 4294967295, %s7769_s15   ;;  %s7209_s17 = sadd.s32 4294967294, %s7769_s15   ;;  %s7769_s15 = sphi %s7808_s15, %s11268_s15   ;;  %s7765_s14 = sphi %s7806_s14, %s11267_s14   ;;  %s7761_s13 = sphi %s7804_s13, %s11266_s13   ;;  %s7757_s12 = sphi %s7802_s12, %s11265_s12  }
   0x7   : > { %p40_p0 = scmp.ne.s32.totalorder %s7761_s13, %s7757_s12  ;;  %p10849_p1 = scmp.eq.s32.totalorder %s7823_s16, 0 }
   0x8   : > { %p112_p3 = scmp.eq.s32.totalorder %s7209_s17, 1  ;;  %p7210_p5 = scmp.ge.s32.totalorder %s7769_s15, 1 }
   0x9   : > { %p7832_p4 = por %p10849_p1, %p40_p0  ;;  %p119_p7 = scmp.lt.s32.totalorder %s7769_s15, 3 }
   0xa   : > { %p7837_p6 = por %p112_p3, %p40_p0  ;;  %s7771_s21 = smov [#allocation5]  }
   0xb   : > { %s10984_s18 = scalar_select %p7832_p4, 1, 0 }
   0xc   : > { %s10985_s19 = scalar_select %p7837_p6, 1, 0 }
   0xd   : > { %p7842_p8 = pnand %p7210_p5, %p119_p7  ;;  %s131_s22 = sshll.u32 %s7771_s21, 4  ;;  %s7846_s22 = int_to_ptr.vmem [resolvable:$true] %s131_s22 }
   0xe   : > { %s7772_s24 = smov [#allocation7]   ;;  %s7613_s28 = scalar_lea.hbm %s10846_s1, 3072 }
   0xf   : > { %p7465_p9 = pneg %p7842_p8  ;;  %s144_s25 = sshll.u32 %s7772_s24, 4  ;;  %s7857_s25 = int_to_ptr.vmem [resolvable:$true] %s144_s25 }
  0x10   : > { %p7614_p12 = scmp.ne.s32.totalorder %s10846_s1, %s7613_s28  ;;  %p7620_p5 = scmp.lt.u32.totalorder %s7613_s28, %s10846_s1 }
  0x11   : > { %p7853_p11 = pnand %p7465_p9, %p10849_p1 }
  0x13   : > { %p7615_p13 = pneg %p7853_p11 }
  0x15   : > { %p7616_p0 = pnand %p7615_p13, %p7614_p12 }
  0x17   : > { %p7617_p3 = pneg %p7616_p0 }
  0x19   : > { %p7622_p7 = pnand %p7620_p5, %p7617_p3 }
  0x1b   : > { %7625 = shalt.err (!%p7622_p7)
}
  0x1c   : > { %s7626_s6 = scalar_lea.vmem %s7846_s22, 3072  ;;  %p7634_p2 = scmp.lt.s32.totalorder %s7846_s22, %s7846_s22 }
  0x1d   : > { %p7627_p9 = scmp.ne.s32.totalorder %s7846_s22, %s7626_s6  ;;  %p7635_p12 = scmp.lt.s32.totalorder %s7626_s6, %s7626_s6 }
  0x1f   : > { %p7629_p10 = pnand %p7627_p9, %p7615_p13  ;;  %p7636_p0 = por %p7635_p12, %p7634_p2 }
  0x21   : > { %p7630_p1 = pneg %p7629_p10 }
  0x23   : > { %p7637_p6 = pnand %p7636_p0, %p7630_p1 }
  0x25   : > { %7640 = shalt.err (!%p7637_p6)
}
  0x26   : > { %s7773_s7 = smov 64   ;;  %s7774_s8 = smov 4  }
  0x27   : > { %7468 = dma.hbm_to_vmem [thread:$0]  (!%p7853_p11), %s10846_s1, 3072, %s7846_s22, [#allocation6], %s7773_s7, %s7773_s7, %s7774_s8  }
  0x28   : > { %s7641_s21 = scalar_lea.hbm %s10847_s2, 1024 }
  0x29   : > { %p7642_p2 = scmp.ne.s32.totalorder %s10847_s2, %s7641_s21  ;;  %p7648_p10 = scmp.lt.u32.totalorder %s7641_s21, %s10847_s2 }
  0x2b   : > { %p7644_p1 = pnand %p7642_p2, %p7615_p13 }
  0x2d   : > { %p7645_p6 = pneg %p7644_p1 }
  0x2f   : > { %p7650_p3 = pnand %p7648_p10, %p7645_p6 }
  0x31   : > { %7653 = shalt.err (!%p7650_p3)
}
  0x32   : > { %s7654_s22 = scalar_lea.vmem %s7857_s25, 1024  ;;  %p7662_p12 = scmp.lt.s32.totalorder %s7857_s25, %s7857_s25 }
  0x33   : > { %p7655_p5 = scmp.ne.s32.totalorder %s7857_s25, %s7654_s22  ;;  %p7663_p0 = scmp.lt.s32.totalorder %s7654_s22, %s7654_s22 }
  0x35   : > { %p7657_p7 = pnand %p7655_p5, %p7615_p13  ;;  %p7664_p2 = por %p7663_p0, %p7662_p12 }
  0x37   : > { %p7658_p9 = pneg %p7657_p7 }
  0x39   : > { %p7665_p1 = pnand %p7664_p2, %p7658_p9 }
  0x3b   : > { %7668 = shalt.err (!%p7665_p1)
}
  0x3c   : > { %7471 = dma.hbm_to_vmem [thread:$0]  (!%p7853_p11), %s10847_s2, 1024, %s7857_s25, [#allocation6], %s7773_s7, %s7773_s7, %s7774_s8  }
  0x3d   : > { %s7912_s4 = sadd.s32 1, %s7769_s15   ;;  %s27_s23 = sadd.s32 1, %s7765_s14 }
  0x3e   : > { %s24_s5 = ssub.s32 %s7769_s15, %s7912_s4  ;;  %p34_p13 = scmp.ne.s32.totalorder %s7765_s14, %s7761_s13 }
  0x3f   : > { %p25_p6 = scmp.eq.s32.totalorder %s24_s5, 0  ;;  %p35_p10 = scmp.eq.s32.totalorder %s7769_s15, 0 }
  0x40   : > { %p10988_p3 = scmp.eq.s32.totalorder %s7823_s16, 1  ;;  %p7482_p7 = scmp.lt.s32.totalorder %s7769_s15, 2 }
  0x41   : > { %s7928_s9 = scalar_select %p25_p6, %s7765_s14, %s27_s23  }
  0x42   : > { %p7922_p5 = por %p10988_p3, %p34_p13  ;;  %p36_p9 = por %p35_p10, %p34_p13 }
  0x43   : > { %s158_s10 = sand.u32 1, %s7765_s14   ;;  %s7259_s25 = sshll.u32 %s7769_s15, 11 }
  0x44   : > { %s10989_s6 = scalar_select %p7922_p5, 1, 0 }
  0x45   : > { %s7214_s11 = sshll.u32 %s158_s10, 7  ;;  %s7935_s17 = scalar_lea.hbm %s10845_s0, %s7259_s25 }
  0x46   : > { %s162_s21 = scalar_lea.vmem [#allocation2], %s7214_s11  ;;  %p7939_p11 = pnand %p7482_p7, %p36_p9 }
  0x47   : > { %s169_s24 = sshll.u32 %s162_s21, 4  ;;  %s7943_s27 = scalar_lea.sflag [#allocation3], %s158_s10  ;;  %s7937_s24 = int_to_ptr.vmem [resolvable:$true] %s169_s24 }
  0x48   : > { %s7669_s28 = scalar_lea.hbm %s7935_s17, 2048  ;;  %p7671_p0 = pneg %p7939_p11 }
  0x49   : > { %p7670_p12 = scmp.ne.s32.totalorder %s7935_s17, %s7669_s28  ;;  %s7674_s30 = scalar_lea.hbm %s10845_s0, 4096 }
  0x4a   : > { %p7675_p13 = scmp.lt.u32.totalorder %s7935_s17, %s10845_s0  ;;  %p7676_p6 = scmp.lt.u32.totalorder %s7674_s30, %s7669_s28 }
  0x4b   : > { %p7672_p2 = pnand %p7671_p0, %p7670_p12  ;;  %p7678_p3 = scmp.lt.u32.totalorder %s7669_s28, %s7935_s17 }
  0x4c   : > { %p7677_p10 = por %p7676_p6, %p7675_p13 }
  0x4d   : > { %p7673_p1 = pneg %p7672_p2 }
  0x4e   : > { %p7679_p7 = por %p7678_p3, %p7677_p10 }
  0x50   : > { %p7680_p9 = pnand %p7679_p7, %p7673_p1 }
  0x52   : > { %7683 = shalt.err (!%p7680_p9)
}
  0x53   : > { %s7684_s10 = scalar_lea.vmem %s7937_s24, 2048  ;;  %s7775_s11 = smov [#allocation2]  }
  0x54   : > { %p7685_p12 = scmp.ne.s32.totalorder %s7937_s24, %s7684_s10  ;;  %s7689_s25 = sshll.u32 %s7775_s11, 4  ;;  %s7690_s25 = int_to_ptr.vmem [resolvable:$false] %s7689_s25 }
  0x55   : > { %s7691_s7 = scalar_lea.vmem %s7690_s25, 4096  ;;  %p7692_p4 = scmp.lt.s32.totalorder %s7937_s24, %s7690_s25 }
  0x56   : > { %p7687_p2 = pnand %p7685_p12, %p7671_p0  ;;  %p7693_p13 = scmp.lt.s32.totalorder %s7691_s7, %s7684_s10 }
  0x58   : > { %p7688_p5 = pneg %p7687_p2  ;;  %p7694_p6 = por %p7693_p13, %p7692_p4 }
  0x5a   : > { %p7695_p10 = pnand %p7694_p6, %p7688_p5 }
  0x5c   : > { %7698 = shalt.err (!%p7695_p10)
}
  0x5d   : > { %s7776_s8 = smov 128   ;;  %s7777_s21 = smov 8  }
  0x5e   : > { %7475 = dma.hbm_to_vmem [thread:$0]  (!%p7939_p11), %s7935_s17, 2048, %s7937_s24, %s7943_s27, %s7776_s8, %s7776_s8, %s7777_s21  }
  0x5f   : > { %181 = sbr.rel (%p7842_p8) target bundleno = 1600 (0x640), region = 32 }
  0x66   : > { %s7974_s28 = sand.u32 1, %s7761_s13   ;;  %p10991_p4 = scmp.ne.s32.totalorder %s10984_s18, 0 }
  0x67   : > { %s7218_s22 = sshll.u32 %s7974_s28, 7  ;;  %s184_s29 = scalar_lea.sflag [#allocation3], %s7974_s28 }
  0x68   : > { %s7980_s30 = scalar_lea.vmem [#allocation2], %s7218_s22 }
  0x69   : > { %7744 = dma.done.wait (%p10991_p4), %s184_s29, 2048  }
  0x6a   : > { %7746 = vsyncadd (%p10991_p4), %s184_s29, 4294965248  ;;  %p10992_p5 = scmp.eq.s32.totalorder %s7823_s16, 0 }
  0x6c   : > { %7748 = dma.done.wait (%p10992_p5), [#allocation6], 4096   ;;  %p10993_p8 = pmov %p10992_p5 }
  0x6d   : > { %v221_v0 = vld [vmem:[%s7980_s30] sm:$0xff]  ;;  %v222_v1 = vld [vmem:[%s7980_s30 + $0x8] sm:$0xff]  ;;  %v223_v2 = vld [vmem:[%s7980_s30 + $0x10] sm:$0xff]  ;;  %vm893_vm0 = vcmask 1041409   ;;  %vm895_vm1 = vcmask 1042434   ;;  %vm897_vm2 = vcmask 1043459  }
  0x6e   : > { %7750 = vsyncadd (%p10993_p8), [#allocation6], 4294963200  ;;  %237 = vxpose.xlu0.b32.start [1/16] %v221_v0, 128  ;;  %v224_v3 = vld [vmem:[%s7980_s30 + $0x18] sm:$0xff]  ;;  %v225_v4 = vld [vmem:[%s7980_s30 + $0x20] sm:$0xff]  ;;  %vm899_vm3 = vcmask 1044484   ;;  %vm901_vm4 = vcmask 1045509  }
  0x6f   : > { %v226_v5 = vld [vmem:[%s7980_s30 + $0x28] sm:$0xff]  ;;  %v227_v6 = vld [vmem:[%s7980_s30 + $0x30] sm:$0xff]  ;;  %v228_v7 = vld [vmem:[%s7980_s30 + $0x38] sm:$0xff]  ;;  %vm903_vm5 = vcmask 1046534   ;;  %vm905_vm6 = vcmask 1047559   ;;  %s10776_s18 = scalar_lea.vmem [#allocation8], %s7218_s22 }
  0x70   : > { %v229_v8 = vld [vmem:[%s7980_s30 + $0x40] sm:$0xff]  ;;  %v230_v9 = vld [vmem:[%s7980_s30 + $0x48] sm:$0xff]  ;;  %v231_v10 = vld [vmem:[%s7980_s30 + $0x50] sm:$0xff]  ;;  %s7260_s20 = sshll.u32 %s7823_s16, 11  ;;  %s7117_s17 = sshll.u32 %s10776_s18, 4  ;;  %s10798_s17 = int_to_ptr.vmem [resolvable:$true] %s7117_s17 }
  0x71   : > { %v232_v11 = vld [vmem:[%s7980_s30 + $0x58] sm:$0xff]  ;;  %v233_v12 = vld [vmem:[%s7980_s30 + $0x60] sm:$0xff]  ;;  %v234_v13 = vld [vmem:[%s7980_s30 + $0x68] sm:$0xff]  ;;  %s10796_s27 = scalar_lea.hbm %s10848_s3, %s7260_s20  ;;  %s7104_s16 = scalar_lea.sflag [#allocation4], %s7974_s28 }
  0x72   : > { %238 = vxpose.xlu0.b32.cont [2/16] %v222_v1, 128  ;;  %v235_v14 = vld [vmem:[%s7980_s30 + $0x70] sm:$0xff]  ;;  %v236_v15 = vld [vmem:[%s7980_s30 + $0x78] sm:$0xff]  ;;  %v7527_v16 = vld [vmem:[#allocation5] sm:$0xff]   ;;  %s7699_s23 = scalar_lea.vmem %s10798_s17, 2048  ;;  %p11262_p0 = scmp.ne.s32.totalorder %s10989_s6, 0 }
  0x73   : > { %v7528_v17 = vld [vmem:[#allocation5 + $0x40] sm:$0xff]   ;;  %7341 = vmatprep.mubr.bf16.mxu0 %v7527_v16  ;;  %v7529_v42 = vld [vmem:[#allocation5 + $0x8] sm:$0xff]   ;;  %v7531_v44 = vld [vmem:[#allocation5 + $0x10] sm:$0xff]   ;;  %p7700_p11 = scmp.ne.s32.totalorder %s10798_s17, %s7699_s23  ;;  %s7779_s5 = smov [#allocation8]  }
  0x74   : > { %7373 = vmatprep.mubr.bf16.mxu1 %v7528_v17  ;;  %v7530_v43 = vld [vmem:[#allocation5 + $0x48] sm:$0xff]   ;;  %v7532_v45 = vld [vmem:[#allocation5 + $0x50] sm:$0xff]   ;;  %v7533_v46 = vld [vmem:[#allocation5 + $0x18] sm:$0xff]   ;;  %s7703_s10 = sshll.u32 %s7779_s5, 4  ;;  %s7704_s10 = int_to_ptr.vmem [resolvable:$false] %s7703_s10 }
  0x75   : > { %v7534_v47 = vld [vmem:[#allocation5 + $0x58] sm:$0xff]   ;;  %v7535_v48 = vld [vmem:[#allocation5 + $0x20] sm:$0xff]   ;;  %v7537_v50 = vld [vmem:[#allocation5 + $0x28] sm:$0xff]   ;;  %p7701_p1 = pnand %p7700_p11, %p11262_p0  ;;  %s7705_s11 = scalar_lea.vmem %s7704_s10, 4096 }
  0x76   : > { %239 = vxpose.xlu0.b32.cont [3/16] %v223_v2, 128  ;;  %v7536_v49 = vld [vmem:[#allocation5 + $0x60] sm:$0xff]   ;;  %v7538_v51 = vld [vmem:[#allocation5 + $0x68] sm:$0xff]   ;;  %v7539_v52 = vld [vmem:[#allocation5 + $0x30] sm:$0xff]   ;;  %p7706_p7 = scmp.lt.s32.totalorder %s10798_s17, %s7704_s10  ;;  %p7707_p9 = scmp.lt.s32.totalorder %s7705_s11, %s7699_s23 }
  0x77   : > { %v7540_v53 = vld [vmem:[#allocation5 + $0x70] sm:$0xff]   ;;  %v7541_v54 = vld [vmem:[#allocation5 + $0x38] sm:$0xff]   ;;  %v7543_v56 = vld [vmem:[#allocation5 + $0x80] sm:$0xff]   ;;  %p7702_p3 = pneg %p7701_p1 }
  0x78   : > { %v7542_v55 = vld [vmem:[#allocation5 + $0x78] sm:$0xff]   ;;  %v7544_v57 = vld [vmem:[#allocation5 + $0x88] sm:$0xff]   ;;  %v7545_v58 = vld [vmem:[#allocation5 + $0x90] sm:$0xff]   ;;  %p7708_p12 = por %p7707_p9, %p7706_p7 }
  0x79   : > { %v7546_v59 = vld [vmem:[#allocation5 + $0x98] sm:$0xff]   ;;  %v7547_v60 = vld [vmem:[#allocation5 + $0xa0] sm:$0xff]   ;;  %v7548_v61 = vld [vmem:[#allocation5 + $0xa8] sm:$0xff]  }
  0x7a   : > { %240 = vxpose.xlu0.b32.cont [4/16] %v224_v3, 128  ;;  %v7549_v62 = vld [vmem:[#allocation5 + $0xb0] sm:$0xff]   ;;  %v7550_v63 = vld [vmem:[#allocation5 + $0xb8] sm:$0xff]   ;;  %p7709_p2 = pnand %p7708_p12, %p7702_p3 }
  0x7e   : > { %241 = vxpose.xlu0.b32.cont [5/16] %v225_v4, 128 }
  0x82   : > { %242 = vxpose.xlu0.b32.cont [6/16] %v226_v5, 128 }
  0x86   : > { %243 = vxpose.xlu0.b32.cont [7/16] %v227_v6, 128 }
  0x8a   : > { %244 = vxpose.xlu0.b32.cont [8/16] %v228_v7, 128 }
  0x8e   : > { %245 = vxpose.xlu0.b32.cont [9/16] %v229_v8, 128 }
  0x92   : > { %246 = vxpose.xlu0.b32.cont [10/16] %v230_v9, 128 }
  0x96   : > { %247 = vxpose.xlu0.b32.cont [11/16] %v231_v10, 128  ;;  %v760_v10 = vlaneseq }
  0x9a   : > { %248 = vxpose.xlu0.b32.cont [12/16] %v232_v11, 128 }
  0x9e   : > { %249 = vxpose.xlu0.b32.cont [13/16] %v233_v12, 128 }
  0xa2   : > { %250 = vxpose.xlu0.b32.cont [14/16] %v234_v13, 128 }
  0xa6   : > { %251 = vxpose.xlu0.b32.cont [15/16] %v235_v14, 128 }
  0xaa   : > { %252 = vxpose.xlu0.b32.end [16/16] %v236_v15, 128 }
  0xee   : > { %v253_v18 = vpop.trf.xlu0 }
  0xf2   : > { %v254_v19 = vpop.trf.xlu0 }
  0xf3   : > { %v269_v20 = vpack.c.bf16 %v254_v19, %v253_v18 }
  0xf5   : > { %7325 = vmatprep.subr.bf16.mxu0 %v269_v20  ;;  %7357 = vmatprep.subr.bf16.mxu1 %v269_v20 }
  0xf6   : > { %7326 = vmatpush3.bf16.msra.mxu0 %v269_v20  ;;  %7358 = vmatpush3.bf16.msra.mxu1 %v269_v20  ;;  %v255_v21 = vpop.trf.xlu0 }
  0xfa   : > { %v256_v22 = vpop.trf.xlu0 }
  0xfb   : > { %v270_v23 = vpack.c.bf16 %v256_v22, %v255_v21 }
  0xfd   : > { %7327 = vmatprep.subr.bf16.mxu0 %v270_v23  ;;  %7359 = vmatprep.subr.bf16.mxu1 %v270_v23 }
  0xfe   : > { %7328 = vmatpush3.bf16.msra.mxu0 %v270_v23  ;;  %7360 = vmatpush3.bf16.msra.mxu1 %v270_v23  ;;  %v257_v24 = vpop.trf.xlu0 }
 0x102   : > { %v258_v25 = vpop.trf.xlu0 }
 0x103   : > { %v271_v26 = vpack.c.bf16 %v258_v25, %v257_v24 }
 0x105   : > { %7329 = vmatprep.subr.bf16.mxu0 %v271_v26  ;;  %7361 = vmatprep.subr.bf16.mxu1 %v271_v26 }
 0x106   : > { %7330 = vmatpush3.bf16.msra.mxu0 %v271_v26  ;;  %7362 = vmatpush3.bf16.msra.mxu1 %v271_v26  ;;  %v259_v27 = vpop.trf.xlu0 }
 0x10a   : > { %v260_v28 = vpop.trf.xlu0 }
 0x10b   : > { %v272_v29 = vpack.c.bf16 %v260_v28, %v259_v27 }
 0x10d   : > { %7331 = vmatprep.subr.bf16.mxu0 %v272_v29  ;;  %7363 = vmatprep.subr.bf16.mxu1 %v272_v29 }
 0x10e   : > { %7332 = vmatpush3.bf16.msra.mxu0 %v272_v29  ;;  %7364 = vmatpush3.bf16.msra.mxu1 %v272_v29  ;;  %v261_v30 = vpop.trf.xlu0 }
 0x112   : > { %v262_v31 = vpop.trf.xlu0 }
 0x113   : > { %v273_v32 = vpack.c.bf16 %v262_v31, %v261_v30 }
 0x115   : > { %7333 = vmatprep.subr.bf16.mxu0 %v273_v32  ;;  %7365 = vmatprep.subr.bf16.mxu1 %v273_v32 }
 0x116   : > { %7334 = vmatpush3.bf16.msra.mxu0 %v273_v32  ;;  %7366 = vmatpush3.bf16.msra.mxu1 %v273_v32  ;;  %v263_v33 = vpop.trf.xlu0 }
 0x11a   : > { %v264_v34 = vpop.trf.xlu0 }
 0x11b   : > { %v274_v35 = vpack.c.bf16 %v264_v34, %v263_v33 }
 0x11d   : > { %7335 = vmatprep.subr.bf16.mxu0 %v274_v35  ;;  %7367 = vmatprep.subr.bf16.mxu1 %v274_v35 }
 0x11e   : > { %7336 = vmatpush3.bf16.msra.mxu0 %v274_v35  ;;  %7368 = vmatpush3.bf16.msra.mxu1 %v274_v35  ;;  %v265_v36 = vpop.trf.xlu0 }
 0x122   : > { %v266_v37 = vpop.trf.xlu0 }
 0x123   : > { %v275_v38 = vpack.c.bf16 %v266_v37, %v265_v36 }
 0x125   : > { %7337 = vmatprep.subr.bf16.mxu0 %v275_v38  ;;  %7369 = vmatprep.subr.bf16.mxu1 %v275_v38 }
 0x126   : > { %7338 = vmatpush3.bf16.msra.mxu0 %v275_v38  ;;  %7370 = vmatpush3.bf16.msra.mxu1 %v275_v38  ;;  %v267_v39 = vpop.trf.xlu0 }
 0x12a   : > { %v268_v40 = vpop.trf.xlu0 }
 0x12b   : > { %v276_v41 = vpack.c.bf16 %v268_v40, %v267_v39 }
 0x12d   : > { %7339 = vmatprep.subr.bf16.mxu0 %v276_v41  ;;  %7371 = vmatprep.subr.bf16.mxu1 %v276_v41 }
 0x12e   : > { %7340 = vmatpush3.bf16.msra.mxu0 %v276_v41  ;;  %7372 = vmatpush3.bf16.msra.mxu1 %v276_v41 }
 0x12f   : > { %7389 = vmatprep.subr.bf16.mxu0 %v269_v20 }
 0x131   : > { %7342 = vmatmul.mubr.bf16.vlgmr.msra.gmra.mrb[0].mxu0 %v7529_v42  ;;  %7374 = vmatmul.mubr.bf16.vlgmr.msra.gmra.mrb[0].mxu1 %v7530_v43 }
 0x132   : > { %7390 = vmatpush3.bf16.msra.mxu0 %v269_v20  ;;  %7345 = vmatprep.mubr.bf16.mxu0 %v7531_v44 }
 0x133   : > { %7391 = vmatprep.subr.bf16.mxu0 %v270_v23  ;;  %7377 = vmatprep.mubr.bf16.mxu1 %v7532_v45 }
 0x136   : > { %7392 = vmatpush3.bf16.msra.mxu0 %v270_v23 }
 0x137   : > { %7393 = vmatprep.subr.bf16.mxu0 %v271_v26 }
 0x139   : > { %7346 = vmatmul.mubr.bf16.gmra.mrb[4].mxu0 %v7533_v46  ;;  %7378 = vmatmul.mubr.bf16.gmra.mrb[4].mxu1 %v7534_v47 }
 0x13a   : > { %7394 = vmatpush3.bf16.msra.mxu0 %v271_v26  ;;  %7349 = vmatprep.mubr.bf16.mxu0 %v7535_v48 }
 0x13b   : > { %7395 = vmatprep.subr.bf16.mxu0 %v272_v29  ;;  %7381 = vmatprep.mubr.bf16.mxu1 %v7536_v49 }
 0x13e   : > { %7396 = vmatpush3.bf16.msra.mxu0 %v272_v29 }
 0x13f   : > { %7397 = vmatprep.subr.bf16.mxu0 %v273_v32 }
 0x141   : > { %7350 = vmatmul.mubr.bf16.gmra.mrb[8].mxu0 %v7537_v50  ;;  %7382 = vmatmul.mubr.bf16.gmra.mrb[8].mxu1 %v7538_v51 }
 0x142   : > { %7398 = vmatpush3.bf16.msra.mxu0 %v273_v32  ;;  %7353 = vmatprep.mubr.bf16.mxu0 %v7539_v52 }
 0x143   : > { %7399 = vmatprep.subr.bf16.mxu0 %v274_v35  ;;  %7385 = vmatprep.mubr.bf16.mxu1 %v7540_v53 }
 0x146   : > { %7400 = vmatpush3.bf16.msra.mxu0 %v274_v35 }
 0x147   : > { %7401 = vmatprep.subr.bf16.mxu0 %v275_v38 }
 0x149   : > { %7354 = vmatmul.mubr.bf16.gmra.mrb[12].mxu0 %v7541_v54  ;;  %7386 = vmatmul.mubr.bf16.gmra.mrb[12].mxu1 %v7542_v55 }
 0x14a   : > { %7402 = vmatpush3.bf16.msra.mxu0 %v275_v38  ;;  %7405 = vmatprep.mubr.bf16.mxu0 %v7543_v56 }
 0x14b   : > { %7403 = vmatprep.subr.bf16.mxu0 %v276_v41 }
 0x14e   : > { %7404 = vmatpush3.bf16.msra.mxu0 %v276_v41 }
 0x151   : > { %7406 = vmatmul.mubr.bf16.vlgmr.msra.gmra.mrb[16].mxu0 %v7544_v57 }
 0x152   : > { %7409 = vmatprep.mubr.bf16.mxu0 %v7545_v58 }
 0x159   : > { %7410 = vmatmul.mubr.bf16.gmra.mrb[20].mxu0 %v7546_v59 }
 0x15a   : > { %7413 = vmatprep.mubr.bf16.mxu0 %v7547_v60 }
 0x161   : > { %7414 = vmatmul.mubr.bf16.gmra.mrb[24].mxu0 %v7548_v61 }
 0x162   : > { %7417 = vmatprep.mubr.bf16.mxu0 %v7549_v62 }
 0x169   : > { %7418 = vmatmul.mubr.bf16.gmra.mrb[28].mxu0 %v7550_v63 }
 0x204   : > { %v8006_v0 = vpop.f32.mrb[0].mxu0  ;;  %v8008_v1 = vpop.f32.mrb[0].mxu1 }
 0x205   : > { %v8010_v2 = vpop.f32.mrb[1].mxu0  ;;  %v8012_v3 = vpop.f32.mrb[1].mxu1  ;;  %v1068_v4 = vmul.f32 %v8008_v1, %v8006_v0 }
 0x206   : > { %v1066_v5 = vmul.f32 %v8008_v1, %v8010_v2  ;;  %v8018_v6 = vpop.f32.mrb[2].mxu0  ;;  %v8020_v7 = vpop.f32.mrb[2].mxu1  ;;  %v763_v8 = vmul.f32 %v8012_v3, %v8010_v2  ;;  %v765_v9 = vmul.f32 %v8006_v0, %v8012_v3 }
 0x207   : > { %v766_v11 = vmul.f32 %v8018_v6, %v8012_v3  ;;  %v1069_v12 = vmul.f32 %v8008_v1, %v8018_v6  ;;  %v8030_v13 = vpop.f32.mrb[3].mxu0  ;;  %v1094_v14 = vrot.slane %v1068_v4, 4  ;;  %v8034_v15 = vmul.f32 %v8020_v7, %v8010_v2  ;;  %v8036_v16 = vpop.f32.mrb[3].mxu1 }
 0x208   : > { %v1082_v17 = vrot.slane %v1066_v5, 4  ;;  %v764_v18 = vmul.f32 %v8012_v3, %v8030_v13  ;;  %v779_v19 = vrot.slane %v763_v8, 4  ;;  %v791_v20 = vrot.slane %v765_v9, 4 }
 0x209   : > { %v797_v21 = vrot.slane %v766_v11, 4  ;;  %v1100_v22 = vrot.slane %v1069_v12, 4  ;;  %v1067_v23 = vmul.f32 %v8008_v1, %v8030_v13  ;;  %v1095_v24 = vadd.f32 %v1094_v14, %v1068_v4 }
 0x20a   : > { %v1083_v25 = vadd.f32 %v1082_v17, %v1066_v5  ;;  %v780_v26 = vadd.f32 %v779_v19, %v763_v8  ;;  %v785_v27 = vrot.slane %v764_v18, 4  ;;  %v792_v28 = vadd.f32 %v791_v20, %v765_v9 }
 0x20b   : > { %v798_v29 = vadd.f32 %v797_v21, %v766_v11  ;;  %v1101_v30 = vadd.f32 %v1100_v22, %v1069_v12  ;;  %v1088_v31 = vrot.slane %v1067_v23, 4  ;;  %v1096_v32 = vrot.slane %v1095_v24, 2 }
 0x20c   : > { %v1084_v33 = vrot.slane %v1083_v25, 2  ;;  %v781_v34 = vrot.slane %v780_v26, 2  ;;  %v786_v35 = vadd.f32 %v785_v27, %v764_v18  ;;  %v793_v36 = vrot.slane %v792_v28, 2  ;;  %v8042_v37 = vpop.f32.mrb[4].mxu0  ;;  %v8044_v38 = vpop.f32.mrb[4].mxu1 }
 0x20d   : > { %10994 = vst [vmem:[#allocation12_spill] sm:$0xff] %v8042_v37  ;;  %10995 = vst [vmem:[#allocation13_spill] sm:$0xff] %v8044_v38  ;;  %v799_v39 = vrot.slane %v798_v29, 2  ;;  %v1102_v40 = vrot.slane %v1101_v30, 2  ;;  %v1089_v41 = vadd.f32 %v1088_v31, %v1067_v23  ;;  %v1097_v42 = vadd.f32 %v1096_v32, %v1095_v24  ;;  %v8046_v43 = vpop.f32.mrb[5].mxu0  ;;  %v8048_v44 = vpop.f32.mrb[5].mxu1 }
 0x20e   : > { %v1085_v45 = vadd.f32 %v1084_v33, %v1083_v25  ;;  %v782_v46 = vadd.f32 %v781_v34, %v780_v26  ;;  %v787_v47 = vrot.slane %v786_v35, 2  ;;  %v794_v48 = vadd.f32 %v793_v36, %v792_v28  ;;  %v8050_v49 = vpop.f32.mrb[6].mxu0  ;;  %v8052_v50 = vpop.f32.mrb[6].mxu1 }
 0x20f   : > { %10996 = vst [vmem:[#allocation14_spill] sm:$0xff] %v8050_v49  ;;  %10997 = vst [vmem:[#allocation15_spill] sm:$0xff] %v8052_v50  ;;  %v800_v51 = vadd.f32 %v799_v39, %v798_v29  ;;  %v8054_v52 = vadd.f32 %v1102_v40, %v1101_v30  ;;  %v1090_v53 = vrot.slane %v1089_v41, 2  ;;  %v1098_v54 = vrot.slane %v1097_v42, 1  ;;  %v8056_v55 = vpop.f32.mrb[7].mxu0  ;;  %v8058_v56 = vpop.f32.mrb[7].mxu1 }
 0x210   : > { %10998 = vst [vmem:[#allocation16_spill] sm:$0xff] %v8058_v56  ;;  %v1086_v57 = vrot.slane %v1085_v45, 1  ;;  %v783_v58 = vrot.slane %v782_v46, 1  ;;  %v788_v59 = vadd.f32 %v787_v47, %v786_v35  ;;  %v795_v60 = vrot.slane %v794_v48, 1 }
 0x211   : > { %v801_v61 = vrot.slane %v800_v51, 1  ;;  %v1104_v62 = vrot.slane %v8054_v52, 1  ;;  %v1091_v63 = vadd.f32 %v1090_v53, %v1089_v41  ;;  %v8061_v4 = vshrl.u32 %v760_v10, 7 }
 0x212   : > { %v1087_v5 = vadd.f32 %v1086_v57, %v1085_v45  ;;  %v784_v8 = vadd.f32 %v783_v58, %v782_v46  ;;  %v789_v9 = vrot.slane %v788_v59, 1  ;;  %v1099_v11 = vadd.f32 %v1098_v54, %v1097_v42 }
 0x213   : > { %v8063_v12 = vadd.f32 %v801_v61, %v800_v51  ;;  %v796_v14 = vadd.f32 %v795_v60, %v794_v48  ;;  %v1092_v17 = vrot.slane %v1091_v63, 1  ;;  %v1215_v18 = vmul.f32 %v8020_v7, %v8030_v13 }
 0x214   : > { %v790_v19 = vadd.f32 %v789_v9, %v788_v59  ;;  %v1216_v20 = vmul.f32 %v8020_v7, %v8006_v0  ;;  %v1230_v21 = vrot.slane %v8034_v15, 4  ;;  %v769_v10 = vmul.f32 %v8042_v37, %v8012_v3  ;;  %v8072_v22 = vpop.f32.mrb[8].mxu0  ;;  %v8074_v23 = vpop.f32.mrb[8].mxu1 }
 0x215   : > { %10999 = vst [vmem:[#allocation17_spill] sm:$0xff] %v8072_v22  ;;  %11000 = vst [vmem:[#allocation18_spill] sm:$0xff] %v8074_v23  ;;  %v1093_v24 = vadd.f32 %v1092_v17, %v1091_v63  ;;  %v1236_v25 = vrot.slane %v1215_v18, 4  ;;  %v924_v26 = vmul.f32 %v8042_v37, %v8036_v16  ;;  %v1072_v27 = vmul.f32 %v8008_v1, %v8042_v37  ;;  %v8080_v28 = vpop.f32.mrb[9].mxu0  ;;  %v8082_v29 = vpop.f32.mrb[9].mxu1 }
 0x216   : > { %11001 = vst [vmem:[#allocation19_spill] sm:$0xff] %v8080_v28  ;;  %11002 = vst [vmem:[#allocation20_spill] sm:$0xff] %v8082_v29  ;;  %v894_v30 = vsel %vm893_vm0, %v790_v19, %v784_v8  ;;  %v1231_v31 = vadd.f32 %v1230_v21, %v8034_v15  ;;  %v1242_v32 = vrot.slane %v1216_v20, 4  ;;  %v815_v33 = vrot.slane %v769_v10, 4  ;;  %v8086_v34 = vpop.f32.mrb[10].mxu0  ;;  %v8088_v35 = vpop.f32.mrb[10].mxu1 }
 0x217   : > { %11003 = vst [vmem:[#allocation21_spill] sm:$0xff] %v8086_v34  ;;  %11004 = vst [vmem:[#allocation22_spill] sm:$0xff] %v8088_v35  ;;  %v896_v36 = vsel %vm895_vm1, %v796_v14, %v894_v30  ;;  %v1196_v39 = vsel %vm893_vm0, %v1093_v24, %v1087_v5  ;;  %v1237_v40 = vadd.f32 %v1236_v25, %v1215_v18  ;;  %v970_v41 = vrot.slane %v924_v26, 4  ;;  %v8092_v42 = vpop.f32.mrb[11].mxu0  ;;  %v8094_v45 = vpop.f32.mrb[11].mxu1 }
 0x218   : > { %11005 = vst [vmem:[#allocation23_spill] sm:$0xff] %v8092_v42  ;;  %11006 = vst [vmem:[#allocation24_spill] sm:$0xff] %v8094_v45  ;;  %v8097_v46 = vsel %vm895_vm1, %v1099_v11, %v1196_v39  ;;  %v1232_v15 = vrot.slane %v1231_v31, 2  ;;  %v1243_v47 = vadd.f32 %v1242_v32, %v1216_v20  ;;  %v816_v48 = vadd.f32 %v815_v33, %v769_v10 }
 0x219   : > { %v1238_v51 = vrot.slane %v1237_v40, 2  ;;  %v971_v53 = vadd.f32 %v970_v41, %v924_v26  ;;  %v1118_v54 = vrot.slane %v1072_v27, 4  ;;  %v1220_v57 = vmul.f32 %v8020_v7, %v8042_v37 }
 0x21a   : > { %v1233_v58 = vadd.f32 %v1232_v15, %v1231_v31  ;;  %v1244_v59 = vrot.slane %v1243_v47, 2  ;;  %v817_v60 = vrot.slane %v816_v48, 2  ;;  %v767_v61 = vmul.f32 %v8012_v3, %v8046_v43 }
 0x21b   : > { %v1239_v63 = vadd.f32 %v1238_v51, %v1237_v40  ;;  %v972_v5 = vrot.slane %v971_v53, 2  ;;  %v1119_v8 = vadd.f32 %v1118_v54, %v1072_v27  ;;  %v1266_v9 = vrot.slane %v1220_v57, 4 }
 0x21c   : > { %v1234_v11 = vrot.slane %v1233_v58, 1  ;;  %v1245_v14 = vadd.f32 %v1244_v59, %v1243_v47  ;;  %v818_v17 = vadd.f32 %v817_v60, %v816_v48  ;;  %v803_v18 = vrot.slane %v767_v61, 4  ;;  %v8103_v19 = vpop.f32.mrb[12].mxu0  ;;  %v8105_v20 = vpop.f32.mrb[12].mxu1 }
 0x21d   : > { %11007 = vst [vmem:[#allocation25_spill] sm:$0xff] %v8103_v19  ;;  %11008 = vst [vmem:[#allocation26_spill] sm:$0xff] %v8105_v20  ;;  %v1240_v21 = vrot.slane %v1239_v63, 1  ;;  %v973_v10 = vadd.f32 %v972_v5, %v971_v53  ;;  %v1120_v24 = vrot.slane %v1119_v8, 2  ;;  %v1267_v25 = vadd.f32 %v1266_v9, %v1220_v57 }
 0x21e   : > { %v1235_v26 = vadd.f32 %v1234_v11, %v1233_v58  ;;  %v1246_v30 = vrot.slane %v1245_v14, 1  ;;  %v819_v31 = vrot.slane %v818_v17, 1  ;;  %v804_v32 = vadd.f32 %v803_v18, %v767_v61 }
 0x21f   : > { %v1241_v33 = vadd.f32 %v1240_v21, %v1239_v63  ;;  %v974_v27 = vrot.slane %v973_v10, 1  ;;  %v1121_v39 = vadd.f32 %v1120_v24, %v1119_v8  ;;  %v1268_v40 = vrot.slane %v1267_v25, 2 }
 0x220   : > { %v1105_v41 = vadd.f32 %v1104_v62, %v8054_v52  ;;  %v1247_v15 = vadd.f32 %v1246_v30, %v1245_v14  ;;  %v805_v47 = vrot.slane %v804_v32, 2  ;;  %v898_v48 = vsel %vm897_vm2, %v8063_v12, %v896_v36 }
 0x221   : > { %v1344_v51 = vsel %vm893_vm0, %v1241_v33, %v1235_v26  ;;  %v8113_v53 = vadd.f32 %v819_v31, %v818_v17  ;;  %v1122_v54 = vrot.slane %v1121_v39, 1  ;;  %v8115_v57 = vadd.f32 %v1268_v40, %v1267_v25  ;;  %v8137_v26 = vpop.f32.mrb[13].mxu0 }
 0x222   : > { %v8118_v58 = vsel %vm895_vm1, %v1247_v15, %v1344_v51  ;;  %v806_v59 = vadd.f32 %v805_v47, %v804_v32  ;;  %v918_v60 = vmul.f32 %v8036_v16, %v8010_v2  ;;  %v919_v52 = vmul.f32 %v8036_v16, %v8030_v13  ;;  %11009 = vst [vmem:[#allocation27_spill] sm:$0xff] %v8137_v26 }
 0x223   : > { %v8124_v62 = vadd.f32 %v974_v27, %v973_v10  ;;  %v8126_v12 = vadd.f32 %v1122_v54, %v1121_v39  ;;  %v920_v36 = vmul.f32 %v8006_v0, %v8036_v16  ;;  %v921_v61 = vmul.f32 %v8018_v6, %v8036_v16 }
 0x224   : > { %v807_v63 = vrot.slane %v806_v59, 1  ;;  %v922_v5 = vmul.f32 %v8036_v16, %v8046_v43  ;;  %v934_v8 = vrot.slane %v918_v60, 4  ;;  %v940_v9 = vrot.slane %v919_v52, 4 }
 0x225   : > { %v946_v14 = vrot.slane %v920_v36, 4  ;;  %v952_v17 = vrot.slane %v921_v61, 4  ;;  %v1070_v18 = vmul.f32 %v8008_v1, %v8046_v43  ;;  %v1198_v33 = vsel %vm897_vm2, %v1105_v41, %v8097_v46 }
 0x226   : > { %v808_v21 = vadd.f32 %v807_v63, %v806_v59  ;;  %v935_v10 = vadd.f32 %v934_v8, %v918_v60  ;;  %v941_v24 = vadd.f32 %v940_v9, %v919_v52  ;;  %v958_v25 = vrot.slane %v922_v5, 4 }
 0x227   : > { %v947_v30 = vadd.f32 %v946_v14, %v920_v36  ;;  %v953_v31 = vadd.f32 %v952_v17, %v921_v61  ;;  %v1106_v32 = vrot.slane %v1070_v18, 4  ;;  %v1217_v59 = vmul.f32 %v8020_v7, %v8018_v6 }
 0x228   : > { %v8142_v27 = vsel %vm899_vm3, %v808_v21, %v898_v48  ;;  %v936_v39 = vrot.slane %v935_v10, 2  ;;  %v942_v40 = vrot.slane %v941_v24, 2  ;;  %v959_v15 = vadd.f32 %v958_v25, %v922_v5 }
 0x229   : > { %v948_v47 = vrot.slane %v947_v30, 2  ;;  %v954_v51 = vrot.slane %v953_v31, 2  ;;  %v1107_v54 = vadd.f32 %v1106_v32, %v1070_v18  ;;  %v1218_v61 = vmul.f32 %v8020_v7, %v8046_v43 }
 0x22a   : > { %v937_v60 = vadd.f32 %v936_v39, %v935_v10  ;;  %v943_v52 = vadd.f32 %v942_v40, %v941_v24  ;;  %v960_v36 = vrot.slane %v959_v15, 2  ;;  %v1248_v48 = vrot.slane %v1217_v59, 4 }
 0x22b   : > { %v949_v63 = vadd.f32 %v948_v47, %v947_v30  ;;  %v955_v46 = vadd.f32 %v954_v51, %v953_v31  ;;  %v1108_v41 = vrot.slane %v1107_v54, 2  ;;  %v1254_v5 = vrot.slane %v1218_v61, 4  ;;  %v8148_v30 = vpop.f32.mrb[13].mxu1 }
 0x22c   : > { %v938_v8 = vrot.slane %v937_v60, 1  ;;  %v944_v9 = vrot.slane %v943_v52, 1  ;;  %v961_v14 = vadd.f32 %v960_v36, %v959_v15  ;;  %v1249_v25 = vadd.f32 %v1248_v48, %v1217_v59  ;;  %11010 = vst [vmem:[#allocation28_spill] sm:$0xff] %v8148_v30 }
 0x22d   : > { %v950_v17 = vrot.slane %v949_v63, 1  ;;  %v956_v21 = vrot.slane %v955_v46, 1  ;;  %v1109_v18 = vadd.f32 %v1108_v41, %v1107_v54  ;;  %v1255_v24 = vadd.f32 %v1254_v5, %v1218_v61  ;;  %v8163_v41 = vpop.f32.mrb[14].mxu1 }
 0x22e   : > { %v939_v32 = vadd.f32 %v938_v8, %v937_v60  ;;  %v945_v11 = vadd.f32 %v944_v9, %v943_v52  ;;  %v962_v10 = vrot.slane %v961_v14, 1  ;;  %v1250_v19 = vrot.slane %v1249_v25, 2  ;;  %11012 = vst [vmem:[#allocation30_spill] sm:$0xff] %v8163_v41 }
 0x22f   : > { %v951_v39 = vadd.f32 %v950_v17, %v949_v63  ;;  %v957_v40 = vadd.f32 %v956_v21, %v955_v46  ;;  %v1110_v26 = vrot.slane %v1109_v18, 1  ;;  %v1256_v51 = vrot.slane %v1255_v24, 2  ;;  %v8161_v46 = vpop.f32.mrb[14].mxu0 }
 0x230   : > { %v963_v31 = vadd.f32 %v962_v10, %v961_v14  ;;  %v1048_v47 = vsel %vm893_vm0, %v945_v11, %v939_v32  ;;  %v1658_v15 = vmul.f32 %v8044_v38, %v8010_v2  ;;  %v1251_v60 = vadd.f32 %v1250_v19, %v1249_v25  ;;  %11011 = vst [vmem:[#allocation29_spill] sm:$0xff] %v8161_v46 }
 0x231   : > { %v1049_v54 = vsel %vm895_vm1, %v951_v39, %v1048_v47  ;;  %v1111_v59 = vadd.f32 %v1110_v26, %v1109_v18  ;;  %v1659_v52 = vmul.f32 %v8044_v38, %v8030_v13  ;;  %v1257_v61 = vadd.f32 %v1256_v51, %v1255_v24 }
 0x232   : > { %v1050_v36 = vsel %vm897_vm2, %v957_v40, %v1049_v54  ;;  %v1660_v63 = vmul.f32 %v8044_v38, %v8006_v0  ;;  %v1661_v11 = vmul.f32 %v8044_v38, %v8018_v6  ;;  %v1252_v26 = vrot.slane %v1251_v60, 1 }
 0x233   : > { %v8166_v48 = vsel %vm899_vm3, %v963_v31, %v1050_v36  ;;  %v8169_v19 = vsel %vm899_vm3, %v1111_v59, %v1198_v33  ;;  %v1662_v8 = vmul.f32 %v8044_v38, %v8046_v43  ;;  %v1258_v9 = vrot.slane %v1257_v61, 1 }
 0x234   : > { %v1674_v14 = vrot.slane %v1658_v15, 4  ;;  %v1680_v5 = vrot.slane %v1659_v52, 4  ;;  %v1686_v17 = vrot.slane %v1660_v63, 4  ;;  %v1253_v21 = vadd.f32 %v1252_v26, %v1251_v60 }
 0x235   : > { %v1692_v18 = vrot.slane %v1661_v11, 4  ;;  %v1698_v25 = vrot.slane %v1662_v8, 4  ;;  %v770_v32 = vmul.f32 %v8050_v49, %v8012_v3  ;;  %v1259_v10 = vadd.f32 %v1258_v9, %v1257_v61 }
 0x236   : > { %v1675_v24 = vadd.f32 %v1674_v14, %v1658_v15  ;;  %v1681_v39 = vadd.f32 %v1680_v5, %v1659_v52  ;;  %v1687_v40 = vadd.f32 %v1686_v17, %v1660_v63  ;;  %v1346_v33 = vsel %vm897_vm2, %v1253_v21, %v8118_v58 }
 0x237   : > { %v1693_v31 = vadd.f32 %v1692_v18, %v1661_v11  ;;  %v1699_v47 = vadd.f32 %v1698_v25, %v1662_v8  ;;  %v821_v51 = vrot.slane %v770_v32, 4  ;;  %v8178_v54 = vsel %vm899_vm3, %v1259_v10, %v1346_v33 }
 0x238   : > { %v1676_v59 = vrot.slane %v1675_v24, 2  ;;  %v1682_v60 = vrot.slane %v1681_v39, 2  ;;  %v1688_v36 = vrot.slane %v1687_v40, 2  ;;  %v925_v15 = vmul.f32 %v8050_v49, %v8036_v16 }
 0x239   : > { %v1694_v26 = vrot.slane %v1693_v31, 2  ;;  %v1700_v46 = vrot.slane %v1699_v47, 2  ;;  %v822_v41 = vadd.f32 %v821_v51, %v770_v32  ;;  %v1073_v58 = vmul.f32 %v8008_v1, %v8050_v49 }
 0x23a   : > { %v1677_v52 = vadd.f32 %v1676_v59, %v1675_v24  ;;  %v1683_v61 = vadd.f32 %v1682_v60, %v1681_v39  ;;  %v1689_v63 = vadd.f32 %v1688_v36, %v1687_v40  ;;  %v976_v14 = vrot.slane %v925_v15, 4  ;;  %v8184_v40 = vpop.f32.mrb[15].mxu0 }
 0x23b   : > { %v1695_v11 = vadd.f32 %v1694_v26, %v1693_v31  ;;  %v1701_v8 = vadd.f32 %v1700_v46, %v1699_v47  ;;  %v823_v9 = vrot.slane %v822_v41, 2  ;;  %v1124_v18 = vrot.slane %v1073_v58, 4  ;;  %11013 = vst [vmem:[#allocation31_spill] sm:$0xff] %v8184_v40 }
 0x23c   : > { %v1678_v5 = vrot.slane %v1677_v52, 1  ;;  %v1684_v17 = vrot.slane %v1683_v61, 1  ;;  %v1690_v21 = vrot.slane %v1689_v63, 1  ;;  %v977_v33 = vadd.f32 %v976_v14, %v925_v15 }
 0x23d   : > { %v1696_v25 = vrot.slane %v1695_v11, 1  ;;  %v1702_v10 = vrot.slane %v1701_v8, 1  ;;  %v824_v32 = vadd.f32 %v823_v9, %v822_v41  ;;  %v1125_v39 = vadd.f32 %v1124_v18, %v1073_v58 }
 0x23e   : > { %v1679_v51 = vadd.f32 %v1678_v5, %v1677_v52  ;;  %v1685_v30 = vadd.f32 %v1684_v17, %v1683_v61  ;;  %v1691_v24 = vadd.f32 %v1690_v21, %v1689_v63  ;;  %v11014_v31 = vrot.slane %v8115_v57, 1 }
 0x23f   : > { %v1697_v47 = vadd.f32 %v1696_v25, %v1695_v11  ;;  %v825_v59 = vrot.slane %v824_v32, 1  ;;  %v978_v60 = vrot.slane %v977_v33, 2  ;;  %v1126_v26 = vrot.slane %v1125_v39, 2 }
 0x240   : > { %v8189_v46 = vadd.f32 %v11014_v31, %v8115_v57  ;;  %v1788_v36 = vsel %vm893_vm0, %v1685_v30, %v1679_v51  ;;  %v1221_v41 = vmul.f32 %v8020_v7, %v8050_v49  ;;  %v1369_v15 = vmul.f32 %v8050_v49, %v8048_v44 }
 0x241   : > { %v1703_v52 = vadd.f32 %v1702_v10, %v1701_v8  ;;  %v1789_v61 = vsel %vm895_vm1, %v1691_v24, %v1788_v36  ;;  %v979_v63 = vadd.f32 %v978_v60, %v977_v33  ;;  %v1665_v57 = vmul.f32 %v8044_v38, %v8050_v49 }
 0x242   : > { %v1790_v58 = vsel %vm897_vm2, %v1697_v47, %v1789_v61  ;;  %v1127_v11 = vadd.f32 %v1126_v26, %v1125_v39  ;;  %v1272_v9 = vrot.slane %v1221_v41, 4  ;;  %v1420_v14 = vrot.slane %v1369_v15, 4 }
 0x243   : > { %v8201_v30 = vsel %vm899_vm3, %v1703_v52, %v1790_v58  ;;  %v980_v5 = vrot.slane %v979_v63, 1  ;;  %v1716_v17 = vrot.slane %v1665_v57, 4  ;;  %v768_v21 = vmul.f32 %v8012_v3, %v8056_v55 }
 0x244   : > { %v8205_v8 = vadd.f32 %v825_v59, %v824_v32  ;;  %v1273_v18 = vadd.f32 %v1272_v9, %v1221_v41  ;;  %v1421_v25 = vadd.f32 %v1420_v14, %v1369_v15  ;;  %v923_v10 = vmul.f32 %v8036_v16, %v8056_v55 }
 0x245   : > { %v1128_v33 = vrot.slane %v1127_v11, 1  ;;  %v1717_v51 = vadd.f32 %v1716_v17, %v1665_v57  ;;  %v809_v24 = vrot.slane %v768_v21, 4  ;;  %v1071_v39 = vmul.f32 %v8008_v1, %v8056_v55 }
 0x246   : > { %v8211_v31 = vadd.f32 %v980_v5, %v979_v63  ;;  %v1274_v47 = vrot.slane %v1273_v18, 2  ;;  %v1422_v60 = vrot.slane %v1421_v25, 2  ;;  %v964_v36 = vrot.slane %v923_v10, 4  ;;  %v8217_v63 = vpop.f32.mrb[15].mxu1 }
 0x247   : > { %v1718_v26 = vrot.slane %v1717_v51, 2  ;;  %v810_v32 = vadd.f32 %v809_v24, %v768_v21  ;;  %v1112_v59 = vrot.slane %v1071_v39, 4  ;;  %v1219_v41 = vmul.f32 %v8020_v7, %v8056_v55  ;;  %11015 = vst [vmem:[#allocation32_spill] sm:$0xff] %v8217_v63 }
 0x248   : > { %v1275_v15 = vadd.f32 %v1274_v47, %v1273_v18  ;;  %v1423_v52 = vadd.f32 %v1422_v60, %v1421_v25  ;;  %v965_v61 = vadd.f32 %v964_v36, %v923_v10  ;;  %v1362_v57 = vmul.f32 %v8048_v44, %v8010_v2 }
 0x249   : > { %v1719_v58 = vadd.f32 %v1718_v26, %v1717_v51  ;;  %v811_v9 = vrot.slane %v810_v32, 2  ;;  %v1113_v14 = vadd.f32 %v1112_v59, %v1071_v39  ;;  %v1260_v5 = vrot.slane %v1219_v41, 4 }
 0x24a   : > { %v1276_v17 = vrot.slane %v1275_v15, 1  ;;  %v1424_v21 = vrot.slane %v1423_v52, 1  ;;  %v966_v24 = vrot.slane %v965_v61, 2  ;;  %v1363_v40 = vmul.f32 %v8048_v44, %v8030_v13 }
 0x24b   : > { %v1129_v20 = vadd.f32 %v1128_v33, %v1127_v11  ;;  %v812_v18 = vadd.f32 %v811_v9, %v810_v32  ;;  %vm1030_vm7 = vcmp.ge.s32.totalorder %v8061_v4, 1  ;;  %v1114_v25 = vrot.slane %v1113_v14, 2 }
 0x24c   : > { %v1261_v10 = vadd.f32 %v1260_v5, %v1219_v41  ;;  %v1277_v47 = vadd.f32 %v1276_v17, %v1275_v15  ;;  %v1720_v60 = vrot.slane %v1719_v58, 1  ;;  %v967_v36 = vadd.f32 %v966_v24, %v965_v61 }
 0x24d   : > { %v1364_v51 = vmul.f32 %v8006_v0, %v8048_v44  ;;  %v8224_v39 = vadd.f32 %v1424_v21, %v1423_v52  ;;  %v813_v26 = vrot.slane %v812_v18, 1  ;;  %v1115_v59 = vadd.f32 %v1114_v25, %v1113_v14 }
 0x24e   : > { %vm1178_vm8 = vcmp.ge.s32.totalorder %v8061_v4, 2  ;;  %v1262_v63 = vrot.slane %v1261_v10, 2  ;;  %v968_v45 = vrot.slane %v967_v36, 1  ;;  %v1365_v11 = vmul.f32 %v8018_v6, %v8048_v44 }
 0x24f   : > { %v1366_v33 = vmul.f32 %v8048_v44, %v8046_v43  ;;  %v1367_v32 = vmul.f32 %v8048_v44, %v8056_v55  ;;  %v814_v41 = vadd.f32 %v813_v26, %v812_v18  ;;  %v1116_v15 = vrot.slane %v1115_v59, 1 }
 0x250   : > { %v1263_v61 = vadd.f32 %v1262_v63, %v1261_v10  ;;  %v1368_v52 = vmul.f32 %v8042_v37, %v8048_v44  ;;  %v969_v9 = vadd.f32 %v968_v45, %v967_v36  ;;  %v1378_v14 = vrot.slane %v1362_v57, 4 }
 0x251   : > { %v1384_v5 = vrot.slane %v1363_v40, 4  ;;  %v1390_v17 = vrot.slane %v1364_v51, 4  ;;  %v902_v21 = vsel %vm901_vm4, %v814_v41, %v8142_v27  ;;  %v1117_v24 = vadd.f32 %v1116_v15, %v1115_v59 }
 0x252   : > { %v1264_v25 = vrot.slane %v1263_v61, 1  ;;  %v1396_v35 = vrot.slane %v1365_v11, 4  ;;  %v904_v29 = vsel %vm903_vm5, %v8113_v53, %v902_v21  ;;  %v1052_v18 = vsel %vm901_vm4, %v969_v9, %v8166_v48 }
 0x253   : > { %v1379_v63 = vadd.f32 %v1378_v14, %v1362_v57  ;;  %v1385_v10 = vadd.f32 %v1384_v5, %v1363_v40  ;;  %v8243_v45 = vsel %vm905_vm6, %v8205_v8, %v904_v29  ;;  %v1053_v36 = vsel %vm903_vm5, %v8124_v62, %v1052_v18 }
 0x254   : > { %11016 = vst [vmem:[#allocation33_spill] sm:$0xff] %v8243_v45  ;;  %v1200_v27 = vsel %vm901_vm4, %v1117_v24, %v8169_v19  ;;  %v1265_v26 = vadd.f32 %v1264_v25, %v1263_v61  ;;  %v1054_v59 = vsel %vm905_vm6, %v8211_v31, %v1053_v36  ;;  %v8253_v40 = vadd.f32 %v1720_v60, %v1719_v58 }
 0x255   : > { %v1201_v53 = vsel %vm903_vm5, %v8126_v12, %v1200_v27  ;;  %v1380_v48 = vrot.slane %v1379_v63, 2  ;;  %v1386_v57 = vrot.slane %v1385_v10, 2  ;;  %v1391_v62 = vadd.f32 %v1390_v17, %v1364_v51 }
 0x256   : > { %v1202_v29 = vsel %vm905_vm6, %v1129_v20, %v1201_v53  ;;  %v1348_v8 = vsel %vm901_vm4, %v1265_v26, %v8178_v54  ;;  %v8260_v19 = vsel %vm1030_vm7, %v1054_v59, -1e+30  ;;  %v1397_v60 = vadd.f32 %v1396_v35, %v1365_v11 }
 0x257   : > { %11017 = vst [vmem:[#allocation34_spill] sm:$0xff] %v8260_v19  ;;  %v1349_v31 = vsel %vm903_vm5, %v8189_v46, %v1348_v8  ;;  %v1381_v41 = vadd.f32 %v1380_v48, %v1379_v63  ;;  %v1387_v15 = vadd.f32 %v1386_v57, %v1385_v10  ;;  %v1392_v58 = vrot.slane %v1391_v62, 2 }
 0x258   : > { %v8265_v12 = vsel %vm905_vm6, %v1277_v47, %v1349_v31  ;;  %v1402_v61 = vrot.slane %v1366_v33, 4  ;;  %v8269_v20 = vsel %vm1178_vm8, %v1202_v29, -1e+30  ;;  %v1408_v9 = vrot.slane %v1367_v32, 4 }
 0x259   : > { %11018 = vst [vmem:[#allocation35_spill] sm:$0xff] %v8269_v20  ;;  %v1382_v54 = vrot.slane %v1381_v41, 1  ;;  %v1388_v51 = vrot.slane %v1387_v15, 1  ;;  %v1393_v14 = vadd.f32 %v1392_v58, %v1391_v62  ;;  %v1398_v5 = vrot.slane %v1397_v60, 2 }
 0x25a   : > { %v1403_v17 = vadd.f32 %v1402_v61, %v1366_v33  ;;  %v1414_v21 = vrot.slane %v1368_v52, 4  ;;  %v1409_v25 = vadd.f32 %v1408_v9, %v1367_v32  ;;  %v1663_v47 = vmul.f32 %v8044_v38, %v8056_v55 }
 0x25b   : > { %v1383_v46 = vadd.f32 %v1382_v54, %v1381_v41  ;;  %v1389_v24 = vadd.f32 %v1388_v51, %v1387_v15  ;;  %v1394_v18 = vrot.slane %v1393_v14, 1  ;;  %v1399_v35 = vadd.f32 %v1398_v5, %v1397_v60 }
 0x25c   : > { %v1404_v11 = vrot.slane %v1403_v17, 2  ;;  %v1415_v63 = vadd.f32 %v1414_v21, %v1368_v52  ;;  %vm1326_vm9 = vcmp.ge.s32.totalorder %v8061_v4, 3  ;;  %v1410_v10 = vrot.slane %v1409_v25, 2 }
 0x25d   : > { %v1492_v36 = vsel %vm893_vm0, %v1389_v24, %v1383_v46  ;;  %v1664_v27 = vmul.f32 %v8044_v38, %v8042_v37  ;;  %v1704_v33 = vrot.slane %v1663_v47, 4  ;;  %v1395_v26 = vadd.f32 %v1394_v18, %v1393_v14 }
 0x25e   : > { %v1400_v59 = vrot.slane %v1399_v35, 1  ;;  %v1405_v53 = vadd.f32 %v1404_v11, %v1403_v17  ;;  %v1416_v32 = vrot.slane %v1415_v63, 2  ;;  %v1411_v48 = vadd.f32 %v1410_v10, %v1409_v25 }
 0x25f   : > { %v1705_v57 = vadd.f32 %v1704_v33, %v1663_v47  ;;  %v1710_v29 = vrot.slane %v1664_v27, 4  ;;  %v1806_v8 = vmul.f32 %v8052_v50, %v8010_v2  ;;  %v1493_v41 = vsel %vm895_vm1, %v1395_v26, %v1492_v36 }
 0x260   : > { %v1401_v52 = vadd.f32 %v1400_v59, %v1399_v35  ;;  %v1406_v62 = vrot.slane %v1405_v53, 1  ;;  %v1417_v31 = vadd.f32 %v1416_v32, %v1415_v63  ;;  %v1412_v15 = vrot.slane %v1411_v48, 1 }
 0x261   : > { %v1706_v58 = vrot.slane %v1705_v57, 2  ;;  %v1711_v60 = vadd.f32 %v1710_v29, %v1664_v27  ;;  %v1807_v61 = vmul.f32 %v8052_v50, %v8030_v13  ;;  %vm1474_vm10 = vcmp.ge.s32.totalorder %v8061_v4, 4 }
 0x262   : > { %v1407_v54 = vadd.f32 %v1406_v62, %v1405_v53  ;;  %v1418_v51 = vrot.slane %v1417_v31, 1  ;;  %v1494_v9 = vsel %vm897_vm2, %v1401_v52, %v1493_v41  ;;  %v1808_v14 = vmul.f32 %v8052_v50, %v8006_v0 }
 0x263   : > { %v1413_v5 = vadd.f32 %v1412_v15, %v1411_v48  ;;  %v1707_v17 = vadd.f32 %v1706_v58, %v1705_v57  ;;  %v1712_v21 = vrot.slane %v1711_v60, 2  ;;  %v1809_v46 = vmul.f32 %v8052_v50, %v8018_v6 }
 0x264   : > { %v1419_v24 = vadd.f32 %v1418_v51, %v1417_v31  ;;  %v1495_v25 = vsel %vm899_vm3, %v1407_v54, %v1494_v9  ;;  %v1810_v47 = vmul.f32 %v8052_v50, %v8046_v43  ;;  %v1811_v18 = vmul.f32 %v8052_v50, %v8056_v55 }
 0x265   : > { %v1496_v35 = vsel %vm901_vm4, %v1413_v5, %v1495_v25  ;;  %v1708_v11 = vrot.slane %v1707_v17, 1  ;;  %v1713_v63 = vadd.f32 %v1712_v21, %v1711_v60  ;;  %v1812_v10 = vmul.f32 %v8052_v50, %v8042_v37 }
 0x266   : > { %v1497_v36 = vsel %vm903_vm5, %v1419_v24, %v1496_v35  ;;  %v1813_v27 = vmul.f32 %v8052_v50, %v8050_v49  ;;  %v1822_v33 = vrot.slane %v1806_v8, 4  ;;  %v1828_v26 = vrot.slane %v1807_v61, 4 }
 0x267   : > { %v1498_v59 = vsel %vm905_vm6, %v8224_v39, %v1497_v36  ;;  %v1709_v53 = vadd.f32 %v1708_v11, %v1707_v17  ;;  %v1714_v32 = vrot.slane %v1713_v63, 1  ;;  %v1834_v48 = vrot.slane %v1808_v14, 4 }
 0x268   : > { %v8304_v57 = vsel %vm1326_vm9, %v8265_v12, -1e+30  ;;  %v1823_v29 = vadd.f32 %v1822_v33, %v1806_v8  ;;  %v1829_v52 = vadd.f32 %v1828_v26, %v1807_v61  ;;  %v1840_v62 = vrot.slane %v1809_v46, 4 }
 0x269   : > { %11019 = vst [vmem:[#allocation36_spill] sm:$0xff] %v8304_v57  ;;  %v1715_v31 = vadd.f32 %v1714_v32, %v1713_v63  ;;  %v1792_v41 = vsel %vm901_vm4, %v1709_v53, %v8201_v30  ;;  %v1835_v15 = vadd.f32 %v1834_v48, %v1808_v14  ;;  %v1846_v58 = vrot.slane %v1810_v47, 4 }
 0x26a   : > { %v1824_v60 = vrot.slane %v1823_v29, 2  ;;  %v1830_v54 = vrot.slane %v1829_v52, 2  ;;  %v1841_v39 = vadd.f32 %v1840_v62, %v1809_v46  ;;  %v1852_v51 = vrot.slane %v1811_v18, 4 }
 0x26b   : > { %v1793_v9 = vsel %vm903_vm5, %v1715_v31, %v1792_v41  ;;  %v1836_v5 = vrot.slane %v1835_v15, 2  ;;  %v1847_v17 = vadd.f32 %v1846_v58, %v1810_v47  ;;  %v1858_v21 = vrot.slane %v1812_v10, 4 }
 0x26c   : > { %v8311_v12 = vsel %vm905_vm6, %v8253_v40, %v1793_v9  ;;  %v1825_v8 = vadd.f32 %v1824_v60, %v1823_v29  ;;  %v1831_v61 = vadd.f32 %v1830_v54, %v1829_v52  ;;  %v1842_v24 = vrot.slane %v1841_v39, 2 }
 0x26d   : > { %11020 = vst [vmem:[#allocation37_spill] sm:$0xff] %v8311_v12  ;;  %v8315_v30 = vsel %vm1474_vm10, %v1498_v59, -1e+30  ;;  %v1837_v14 = vadd.f32 %v1836_v5, %v1835_v15  ;;  %v1848_v25 = vrot.slane %v1847_v17, 2  ;;  %v1853_v46 = vadd.f32 %v1852_v51, %v1811_v18  ;;  %v11035_v12 = vld [vmem:[#allocation20_spill] sm:$0xff] }
 0x26e   : > { %11021 = vst [vmem:[#allocation38_spill] sm:$0xff] %v8315_v30  ;;  %v1826_v35 = vrot.slane %v1825_v8, 1  ;;  %v1832_v11 = vrot.slane %v1831_v61, 1  ;;  %v1843_v63 = vadd.f32 %v1842_v24, %v1841_v39  ;;  %v1859_v36 = vadd.f32 %v1858_v21, %v1812_v10 }
 0x26f   : > { %v1838_v47 = vrot.slane %v1837_v14, 1  ;;  %v1849_v33 = vadd.f32 %v1848_v25, %v1847_v17  ;;  %v1854_v26 = vrot.slane %v1853_v46, 2  ;;  %v1864_v53 = vrot.slane %v1813_v27, 4 }
 0x270   : > { %v1827_v40 = vadd.f32 %v1826_v35, %v1825_v8  ;;  %v1833_v32 = vadd.f32 %v1832_v11, %v1831_v61  ;;  %v1844_v48 = vrot.slane %v1843_v63, 1  ;;  %v1860_v29 = vrot.slane %v1859_v36, 2 }
 0x271   : > { %v1839_v52 = vadd.f32 %v1838_v47, %v1837_v14  ;;  %v1850_v62 = vrot.slane %v1849_v33, 1  ;;  %v1855_v31 = vadd.f32 %v1854_v26, %v1853_v46  ;;  %v1865_v59 = vadd.f32 %v1864_v53, %v1813_v27 }
 0x272   : > { %v1845_v41 = vadd.f32 %v1844_v48, %v1843_v63  ;;  %v1861_v15 = vadd.f32 %v1860_v29, %v1859_v36  ;;  %v1936_v18 = vsel %vm893_vm0, %v1833_v32, %v1827_v40  ;;  %v3138_v58 = vmax.f32 %v8243_v45, %v8260_v19 }
 0x273   : > { %v1851_v10 = vadd.f32 %v1850_v62, %v1849_v33  ;;  %v1856_v60 = vrot.slane %v1855_v31, 1  ;;  %v1866_v54 = vrot.slane %v1865_v59, 2  ;;  %v1937_v39 = vsel %vm895_vm1, %v1839_v52, %v1936_v18 }
 0x274   : > { %v1862_v51 = vrot.slane %v1861_v15, 1  ;;  %v1938_v9 = vsel %vm897_vm2, %v1845_v41, %v1937_v39  ;;  %v3140_v5 = vmax.f32 %v3138_v58, %v8269_v20  ;;  %v1510_v27 = vmul.f32 %v8058_v56, %v8010_v2 }
 0x275   : > { %v1857_v17 = vadd.f32 %v1856_v60, %v1855_v31  ;;  %v1867_v21 = vadd.f32 %v1866_v54, %v1865_v59  ;;  %v1939_v8 = vsel %vm899_vm3, %v1851_v10, %v1938_v9  ;;  %v1511_v61 = vmul.f32 %v8058_v56, %v8030_v13 }
 0x276   : > { %v1863_v24 = vadd.f32 %v1862_v51, %v1861_v15  ;;  %v3142_v14 = vmax.f32 %v3140_v5, %v8304_v57  ;;  %v1512_v25 = vmul.f32 %v8006_v0, %v8058_v56  ;;  %v1513_v46 = vmul.f32 %v8018_v6, %v8058_v56 }
 0x277   : > { %v1868_v35 = vrot.slane %v1867_v21, 1  ;;  %v1940_v11 = vsel %vm901_vm4, %v1857_v17, %v1939_v8  ;;  %v8336_v2 = vmul.f32 %v8058_v56, %v8046_v43  ;;  %v8340_v63 = vmul.f32 %v8058_v56, %v8056_v55 }
 0x278   : > { %v1941_v13 = vsel %vm903_vm5, %v1863_v24, %v1940_v11  ;;  %v8344_v36 = vmax.f32 %v3142_v14, %v8315_v30  ;;  %v1526_v0 = vrot.slane %v1510_v27, 4  ;;  %v1532_v47 = vrot.slane %v1511_v61, 4 }
 0x279   : > { %11022 = vst [vmem:[#allocation39_spill] sm:$0xff] %v8336_v2  ;;  %11023 = vst [vmem:[#allocation40_spill] sm:$0xff] %v8340_v63  ;;  %v1869_v33 = vadd.f32 %v1868_v35, %v1867_v21  ;;  %v1538_v6 = vrot.slane %v1512_v25, 4  ;;  %v1544_v53 = vrot.slane %v1513_v46, 4  ;;  %v773_v40 = vmul.f32 %v8072_v22, %v8012_v3 }
 0x27a   : > { %11024 = vst [vmem:[#allocation41_spill] sm:$0xff] %v8344_v36  ;;  %v1527_v26 = vadd.f32 %v1526_v0, %v1510_v27  ;;  %v928_v43 = vmul.f32 %v8072_v22, %v8036_v16  ;;  %v1533_v32 = vadd.f32 %v1532_v47, %v1511_v61  ;;  %v1076_v29 = vmul.f32 %v8008_v1, %v8072_v22 }
 0x27b   : > { %v8351_v55 = vsel %vm905_vm6, %v1869_v33, %v1941_v13  ;;  %v8353_v48 = vadd.f32 %v1538_v6, %v1512_v25  ;;  %v839_v52 = vrot.slane %v773_v40, 4  ;;  %v8359_v31 = vmul.f32 %v8020_v7, %v8072_v22 }
 0x27c   : > { %11025 = vst [vmem:[#allocation42_spill] sm:$0xff] %v8351_v55  ;;  %v994_v62 = vrot.slane %v928_v43, 4  ;;  %v1528_v59 = vrot.slane %v1527_v26, 2  ;;  %v8361_v41 = vadd.f32 %v1544_v53, %v1513_v46  ;;  %v8366_v18 = vmul.f32 %v8072_v22, %v8048_v44 }
 0x27d   : > { %11026 = vst [vmem:[#allocation43_spill] sm:$0xff] %v8353_v48  ;;  %v1534_v58 = vrot.slane %v1533_v32, 2  ;;  %v1142_v60 = vrot.slane %v1076_v29, 4  ;;  %v771_v54 = vmul.f32 %v8012_v3, %v8080_v28  ;;  %v8371_v39 = vadd.f32 %v839_v52, %v773_v40 }
 0x27e   : > { %11027 = vst [vmem:[#allocation44_spill] sm:$0xff] %v8361_v41  ;;  %11028 = vst [vmem:[#allocation45_spill] sm:$0xff] %v8366_v18  ;;  %v926_v51 = vmul.f32 %v8036_v16, %v8080_v28  ;;  %v1074_v9 = vmul.f32 %v8008_v1, %v8080_v28  ;;  %v1222_v5 = vmul.f32 %v8020_v7, %v8080_v28 }
 0x27f   : > { %v8379_v27 = vadd.f32 %v994_v62, %v928_v43  ;;  %v827_v17 = vrot.slane %v771_v54, 4  ;;  %v8383_v21 = vmul.f32 %v8048_v44, %v8080_v28  ;;  %v8387_v8 = vmul.f32 %v8058_v56, %v8080_v28 }
 0x280   : > { %v8389_v61 = vadd.f32 %v1528_v59, %v1527_v26  ;;  %v982_v24 = vrot.slane %v926_v51, 4  ;;  %v1130_v14 = vrot.slane %v1074_v9, 4  ;;  %v774_v25 = vmul.f32 %v8086_v34, %v8012_v3 }
 0x281   : > { %11029 = vst [vmem:[#allocation46_spill] sm:$0xff] %v8383_v21  ;;  %11030 = vst [vmem:[#allocation47_spill] sm:$0xff] %v8387_v8  ;;  %v828_v46 = vadd.f32 %v827_v17, %v771_v54  ;;  %v1278_v35 = vrot.slane %v1222_v5, 4  ;;  %v929_v11 = vmul.f32 %v8086_v34, %v8036_v16  ;;  %v8397_v13 = vmul.f32 %v8008_v1, %v8086_v34 }
 0x282   : > { %11031 = vst [vmem:[#allocation48_spill] sm:$0xff] %v8389_v61  ;;  %v8399_v0 = vadd.f32 %v1534_v58, %v1533_v32  ;;  %v8401_v47 = vadd.f32 %v1142_v60, %v1076_v29  ;;  %v983_v6 = vadd.f32 %v982_v24, %v926_v51  ;;  %v8406_v40 = vadd.f32 %v1130_v14, %v1074_v9 }
 0x283   : > { %v8410_v43 = vmul.f32 %v8020_v7, %v8086_v34  ;;  %v829_v52 = vrot.slane %v828_v46, 2  ;;  %v845_v32 = vrot.slane %v774_v25, 4  ;;  %v772_v29 = vmul.f32 %v8012_v3, %v8092_v42 }
 0x284   : > { %11032 = vst [vmem:[#allocation49_spill] sm:$0xff] %v8399_v0  ;;  %v8415_v59 = vadd.f32 %v1278_v35, %v1222_v5  ;;  %v1000_v58 = vrot.slane %v929_v11, 4  ;;  %v927_v60 = vmul.f32 %v8036_v16, %v8092_v42  ;;  %v1075_v54 = vmul.f32 %v8008_v1, %v8092_v42 }
 0x285   : > { %v984_v51 = vrot.slane %v983_v6, 2  ;;  %v833_v9 = vrot.slane %v772_v29, 4  ;;  %v8423_v17 = vmul.f32 %v8020_v7, %v8092_v42  ;;  %v8427_v24 = vmul.f32 %v8048_v44, %v8092_v42 }
 0x286   : > { %v8433_v35 = vmul.f32 %v8058_v56, %v8092_v42  ;;  %v2258_v15 = vmul.f32 %v8074_v23, %v8080_v28  ;;  %v8437_v10 = vadd.f32 %v829_v52, %v828_v46  ;;  %v8439_v62 = vadd.f32 %v845_v32, %v774_v25 }
 0x287   : > { %11033 = vst [vmem:[#allocation50_spill] sm:$0xff] %v8427_v24  ;;  %v988_v33 = vrot.slane %v927_v60, 4  ;;  %v2259_v53 = vmul.f32 %v8074_v23, %v8092_v42  ;;  %v8443_v26 = vadd.f32 %v1000_v58, %v929_v11  ;;  %v1136_v5 = vrot.slane %v1075_v54, 4 }
 0x288   : > { %11034 = vst [vmem:[#allocation51_spill] sm:$0xff] %v8433_v35  ;;  %v2260_v14 = vmul.f32 %v8074_v23, %v8072_v22  ;;  %v2261_v30 = vmul.f32 %v8074_v23, %v8086_v34  ;;  %v8449_v57 = vadd.f32 %v984_v51, %v983_v6  ;;  %v8451_v20 = vadd.f32 %v833_v9, %v772_v29 }
 0x289   : > { %v2314_v46 = vrot.slane %v2258_v15, 4  ;;  %v2320_v25 = vrot.slane %v2259_v53, 4  ;;  %v8455_v58 = vadd.f32 %v988_v33, %v927_v60  ;;  %v1962_v36 = vmul.f32 %v11035_v12, %v8080_v28 }
 0x28a   : > { %v2326_v19 = vrot.slane %v2260_v14, 4  ;;  %v2332_v11 = vrot.slane %v2261_v30, 4  ;;  %v8459_v2 = vadd.f32 %v1136_v5, %v1075_v54  ;;  %v1963_v51 = vmul.f32 %v11035_v12, %v8092_v42 }
 0x28b   : > { %v2315_v45 = vadd.f32 %v2314_v46, %v2258_v15  ;;  %v2321_v55 = vadd.f32 %v2320_v25, %v2259_v53  ;;  %v1964_v32 = vmul.f32 %v8072_v22, %v11035_v12  ;;  %v1965_v33 = vmul.f32 %v8086_v34, %v11035_v12 }
 0x28c   : > { %v2327_v6 = vadd.f32 %v2326_v19, %v2260_v14  ;;  %v2333_v29 = vadd.f32 %v2332_v11, %v2261_v30  ;;  %v2018_v60 = vrot.slane %v1962_v36, 4  ;;  %v2024_v46 = vrot.slane %v1963_v51, 4 }
 0x28d   : > { %v2316_v9 = vrot.slane %v2315_v45, 2  ;;  %v2322_v52 = vrot.slane %v2321_v55, 2  ;;  %v2030_v5 = vrot.slane %v1964_v32, 4  ;;  %v2036_v19 = vrot.slane %v1965_v33, 4 }
 0x28e   : > { %v2328_v15 = vrot.slane %v2327_v6, 2  ;;  %v2334_v53 = vrot.slane %v2333_v29, 2  ;;  %v2019_v11 = vadd.f32 %v2018_v60, %v1962_v36  ;;  %v2025_v63 = vadd.f32 %v2024_v46, %v1963_v51  ;;  %v11036_v51 = vld [vmem:[#allocation22_spill] sm:$0xff] }
 0x28f   : > { %v2317_v25 = vadd.f32 %v2316_v9, %v2315_v45  ;;  %v2323_v54 = vadd.f32 %v2322_v52, %v2321_v55  ;;  %v2031_v48 = vadd.f32 %v2030_v5, %v1964_v32  ;;  %v2037_v61 = vadd.f32 %v2036_v19, %v1965_v33 }
 0x290   : > { %v2329_v30 = vadd.f32 %v2328_v15, %v2327_v6  ;;  %v2335_v14 = vadd.f32 %v2334_v53, %v2333_v29  ;;  %v2020_v23 = vrot.slane %v2019_v11, 2  ;;  %v2026_v12 = vrot.slane %v2025_v63, 2 }
 0x291   : > { %v2318_v41 = vrot.slane %v2317_v25, 1  ;;  %v2324_v0 = vrot.slane %v2323_v54, 1  ;;  %v2032_v35 = vrot.slane %v2031_v48, 2  ;;  %v2038_v8 = vrot.slane %v2037_v61, 2 }
 0x292   : > { %v2330_v49 = vrot.slane %v2329_v30, 1  ;;  %v2336_v37 = vrot.slane %v2335_v14, 1  ;;  %v2021_v52 = vadd.f32 %v2020_v23, %v2019_v11  ;;  %v2027_v9 = vadd.f32 %v2026_v12, %v2025_v63 }
 0x293   : > { %v2319_v50 = vadd.f32 %v2318_v41, %v2317_v25  ;;  %v2325_v38 = vadd.f32 %v2324_v0, %v2323_v54  ;;  %v2033_v36 = vadd.f32 %v2032_v35, %v2031_v48  ;;  %v2039_v29 = vadd.f32 %v2038_v8, %v2037_v61  ;;  %v11038_v54 = vld [vmem:[#allocation24_spill] sm:$0xff] }
 0x294   : > { %v2331_v45 = vadd.f32 %v2330_v49, %v2329_v30  ;;  %v2337_v55 = vadd.f32 %v2336_v37, %v2335_v14  ;;  %v2406_v32 = vmul.f32 %v11036_v51, %v8080_v28  ;;  %v2022_v15 = vrot.slane %v2021_v52, 1 }
 0x295   : > { %v2387_v6 = vsel %vm893_vm0, %v2325_v38, %v2319_v50  ;;  %v2028_v53 = vrot.slane %v2027_v9, 1  ;;  %v2407_v41 = vmul.f32 %v11036_v51, %v8092_v42  ;;  %v2034_v37 = vrot.slane %v2033_v36, 1 }
 0x296   : > { %v2388_v33 = vsel %vm895_vm1, %v2331_v45, %v2387_v6  ;;  %v2040_v49 = vrot.slane %v2039_v29, 1  ;;  %v2408_v38 = vmul.f32 %v11036_v51, %v8072_v22  ;;  %v2023_v50 = vadd.f32 %v2022_v15, %v2021_v52 }
 0x297   : > { %v8474_v0 = vsel %vm897_vm2, %v2337_v55, %v2388_v33  ;;  %v2029_v23 = vadd.f32 %v2028_v53, %v2027_v9  ;;  %v2409_v12 = vmul.f32 %v11036_v51, %v8086_v34  ;;  %v2462_v63 = vrot.slane %v2406_v32, 4 }
 0x298   : > { %11037 = vst [vmem:[#allocation52_spill] sm:$0xff] %v8474_v0  ;;  %v2035_v48 = vadd.f32 %v2034_v37, %v2033_v36  ;;  %v2041_v8 = vadd.f32 %v2040_v49, %v2039_v29  ;;  %v2468_v61 = vrot.slane %v2407_v41, 4  ;;  %v2474_v35 = vrot.slane %v2408_v38, 4 }
 0x299   : > { %v2091_v60 = vsel %vm893_vm0, %v2029_v23, %v2023_v50  ;;  %v2463_v46 = vadd.f32 %v2462_v63, %v2406_v32  ;;  %v2480_v25 = vrot.slane %v2409_v12, 4  ;;  %v2110_v5 = vmul.f32 %v11038_v54, %v8080_v28 }
 0x29a   : > { %v2092_v19 = vsel %vm895_vm1, %v2035_v48, %v2091_v60  ;;  %v2469_v30 = vadd.f32 %v2468_v61, %v2407_v41  ;;  %v2475_v14 = vadd.f32 %v2474_v35, %v2408_v38  ;;  %v2111_v11 = vmul.f32 %v11038_v54, %v8092_v42 }
 0x29b   : > { %v8487_v45 = vsel %vm897_vm2, %v2041_v8, %v2092_v19  ;;  %v2464_v55 = vrot.slane %v2463_v46, 2  ;;  %v2481_v52 = vadd.f32 %v2480_v25, %v2409_v12  ;;  %v2112_v9 = vmul.f32 %v8072_v22, %v11038_v54 }
 0x29c   : > { %11039 = vst [vmem:[#allocation53_spill] sm:$0xff] %v8487_v45  ;;  %v2470_v6 = vrot.slane %v2469_v30, 2  ;;  %v2476_v36 = vrot.slane %v2475_v14, 2  ;;  %v2113_v29 = vmul.f32 %v8086_v34, %v11038_v54  ;;  %v2166_v32 = vrot.slane %v2110_v5, 4 }
 0x29d   : > { %v2465_v33 = vadd.f32 %v2464_v55, %v2463_v46  ;;  %v2482_v15 = vrot.slane %v2481_v52, 2  ;;  %v2172_v53 = vrot.slane %v2111_v11, 4  ;;  %v2178_v41 = vrot.slane %v2112_v9, 4 }
 0x29e   : > { %v2471_v37 = vadd.f32 %v2470_v6, %v2469_v30  ;;  %v2477_v49 = vadd.f32 %v2476_v36, %v2475_v14  ;;  %v2167_v38 = vadd.f32 %v2166_v32, %v2110_v5  ;;  %v2184_v50 = vrot.slane %v2113_v29, 4  ;;  %v11040_v6 = vld [vmem:[#allocation26_spill] sm:$0xff] }
 0x29f   : > { %v2466_v23 = vrot.slane %v2465_v33, 1  ;;  %v2483_v63 = vadd.f32 %v2482_v15, %v2481_v52  ;;  %v2173_v12 = vadd.f32 %v2172_v53, %v2111_v11  ;;  %v2179_v48 = vadd.f32 %v2178_v41, %v2112_v9 }
 0x2a0   : > { %v2472_v8 = vrot.slane %v2471_v37, 1  ;;  %v2478_v61 = vrot.slane %v2477_v49, 1  ;;  %v2168_v35 = vrot.slane %v2167_v38, 2  ;;  %v2185_v60 = vadd.f32 %v2184_v50, %v2113_v29 }
 0x2a1   : > { %v2467_v25 = vadd.f32 %v2466_v23, %v2465_v33  ;;  %v2484_v19 = vrot.slane %v2483_v63, 1  ;;  %v2174_v0 = vrot.slane %v2173_v12, 2  ;;  %v2180_v51 = vrot.slane %v2179_v48, 2 }
 0x2a2   : > { %v2473_v46 = vadd.f32 %v2472_v8, %v2471_v37  ;;  %v2479_v55 = vadd.f32 %v2478_v61, %v2477_v49  ;;  %v2169_v45 = vadd.f32 %v2168_v35, %v2167_v38  ;;  %v2186_v54 = vrot.slane %v2185_v60, 2  ;;  %v11042_v38 = vld [vmem:[#allocation25_spill] sm:$0xff] }
 0x2a3   : > { %v2485_v30 = vadd.f32 %v2484_v19, %v2483_v63  ;;  %v2175_v14 = vadd.f32 %v2174_v0, %v2173_v12  ;;  %v2181_v5 = vadd.f32 %v2180_v51, %v2179_v48  ;;  %v2850_v52 = vmul.f32 %v11040_v6, %v8080_v28 }
 0x2a4   : > { %v2535_v11 = vsel %vm893_vm0, %v2473_v46, %v2467_v25  ;;  %v2170_v9 = vrot.slane %v2169_v45, 1  ;;  %v2187_v36 = vadd.f32 %v2186_v54, %v2185_v60  ;;  %v2851_v29 = vmul.f32 %v11040_v6, %v8092_v42 }
 0x2a5   : > { %v2536_v32 = vsel %vm895_vm1, %v2479_v55, %v2535_v11  ;;  %v2176_v33 = vrot.slane %v2175_v14, 1  ;;  %v2182_v15 = vrot.slane %v2181_v5, 1  ;;  %v2852_v53 = vmul.f32 %v11040_v6, %v8072_v22 }
 0x2a6   : > { %v8502_v0 = vsel %vm897_vm2, %v2485_v30, %v2536_v32  ;;  %v2171_v51 = vadd.f32 %v2170_v9, %v2169_v45  ;;  %v2188_v41 = vrot.slane %v2187_v36, 1  ;;  %v2853_v37 = vmul.f32 %v11040_v6, %v8086_v34  ;;  %v11043_v45 = vld [vmem:[#allocation27_spill] sm:$0xff] }
 0x2a7   : > { %11041 = vst [vmem:[#allocation54_spill] sm:$0xff] %v8502_v0  ;;  %v2177_v49 = vadd.f32 %v2176_v33, %v2175_v14  ;;  %v2183_v54 = vadd.f32 %v2182_v15, %v2181_v5  ;;  %v2856_v50 = vmul.f32 %v11040_v6, %v11042_v38  ;;  %v2906_v23 = vrot.slane %v2850_v52, 4 }
 0x2a8   : > { %v2189_v63 = vadd.f32 %v2188_v41, %v2187_v36  ;;  %v2912_v12 = vrot.slane %v2851_v29, 4  ;;  %v2918_v48 = vrot.slane %v2852_v53, 4  ;;  %v2924_v8 = vrot.slane %v2853_v37, 4 }
 0x2a9   : > { %v835_v61 = vrot.slane %v8451_v20, 2  ;;  %v2239_v35 = vsel %vm893_vm0, %v2177_v49, %v2171_v51  ;;  %v2907_v60 = vadd.f32 %v2906_v23, %v2850_v52  ;;  %v8512_v25 = vmul.f32 %v8012_v3, %v11043_v45 }
 0x2aa   : > { %v2240_v19 = vsel %vm895_vm1, %v2183_v54, %v2239_v35  ;;  %v2913_v46 = vadd.f32 %v2912_v12, %v2851_v29  ;;  %v2919_v55 = vadd.f32 %v2918_v48, %v2852_v53  ;;  %v2925_v30 = vadd.f32 %v2924_v8, %v2853_v37 }
 0x2ab   : > { %v990_v14 = vrot.slane %v8455_v58, 2  ;;  %v11044_v5 = vrot.slane %v8423_v17, 4  ;;  %v8522_v9 = vsel %vm897_vm2, %v2189_v63, %v2240_v19  ;;  %v2908_v52 = vrot.slane %v2907_v60, 2 }
 0x2ac   : > { %11045 = vst [vmem:[#allocation25_spill] sm:$0xff] %v8522_v9  ;;  %v2914_v36 = vrot.slane %v2913_v46, 2  ;;  %v2920_v32 = vrot.slane %v2919_v55, 2  ;;  %v2926_v33 = vrot.slane %v2925_v30, 2  ;;  %v8526_v15 = vmul.f32 %v8036_v16, %v11043_v45 }
 0x2ad   : > { %v8519_v11 = vadd.f32 %v11044_v5, %v8423_v17  ;;  %v2909_v53 = vadd.f32 %v2908_v52, %v2907_v60  ;;  %v8531_v51 = vmul.f32 %v8008_v1, %v11043_v45  ;;  %v11046_v17 = vld [vmem:[#allocation28_spill] sm:$0xff]  ;;  %v8536_v37 = vadd.f32 %v835_v61, %v8451_v20 }
 0x2ae   : > { %v2554_v41 = vmul.f32 %v11046_v17, %v8080_v28  ;;  %v2915_v49 = vadd.f32 %v2914_v36, %v2913_v46  ;;  %v2921_v54 = vadd.f32 %v2920_v32, %v2919_v55  ;;  %v2927_v23 = vadd.f32 %v2926_v33, %v2925_v30 }
 0x2af   : > { %v2910_v63 = vrot.slane %v2909_v53, 1  ;;  %v2942_v12 = vrot.slane %v2856_v50, 4  ;;  %v2555_v48 = vmul.f32 %v11046_v17, %v8092_v42  ;;  %v2556_v8 = vmul.f32 %v8072_v22, %v11046_v17 }
 0x2b0   : > { %v2916_v35 = vrot.slane %v2915_v49, 1  ;;  %v2922_v60 = vrot.slane %v2921_v54, 1  ;;  %v2928_v19 = vrot.slane %v2927_v23, 1  ;;  %v2557_v5 = vmul.f32 %v8086_v34, %v11046_v17 }
 0x2b1   : > { %v8545_v20 = vadd.f32 %v990_v14, %v8455_v58  ;;  %v2911_v61 = vadd.f32 %v2910_v63, %v2909_v53  ;;  %v2558_v46 = vmul.f32 %v11046_v17, %v11043_v45  ;;  %v2560_v55 = vmul.f32 %v11042_v38, %v11046_v17 }
 0x2b2   : > { %v2917_v30 = vadd.f32 %v2916_v35, %v2915_v49  ;;  %v2923_v52 = vadd.f32 %v2922_v60, %v2921_v54  ;;  %v2929_v36 = vadd.f32 %v2928_v19, %v2927_v23  ;;  %v2610_v32 = vrot.slane %v2554_v41, 4  ;;  %v11048_v19 = vld [vmem:[#allocation30_spill] sm:$0xff] }
 0x2b3   : > { %v8551_v33 = vadd.f32 %v2942_v12, %v2856_v50  ;;  %v2616_v29 = vrot.slane %v2555_v48, 4  ;;  %v2622_v6 = vrot.slane %v2556_v8, 4  ;;  %v2628_v0 = vrot.slane %v2557_v5, 4 }
 0x2b4   : > { %v2979_v9 = vsel %vm893_vm0, %v2917_v30, %v2911_v61  ;;  %v2611_v58 = vadd.f32 %v2610_v32, %v2554_v41  ;;  %v2634_v14 = vrot.slane %v2558_v46, 4  ;;  %v2646_v53 = vrot.slane %v2560_v55, 4 }
 0x2b5   : > { %v2980_v63 = vsel %vm895_vm1, %v2923_v52, %v2979_v9  ;;  %v2617_v56 = vadd.f32 %v2616_v29, %v2555_v48  ;;  %v2623_v18 = vadd.f32 %v2622_v6, %v2556_v8  ;;  %v2629_v24 = vadd.f32 %v2628_v0, %v2557_v5 }
 0x2b6   : > { %v8556_v49 = vsel %vm897_vm2, %v2929_v36, %v2980_v63  ;;  %v2612_v54 = vrot.slane %v2611_v58, 2  ;;  %v2635_v23 = vadd.f32 %v2634_v14, %v2558_v46  ;;  %v2647_v50 = vadd.f32 %v2646_v53, %v2560_v55 }
 0x2b7   : > { %11047 = vst [vmem:[#allocation27_spill] sm:$0xff] %v8556_v49  ;;  %v2618_v12 = vrot.slane %v2617_v56, 2  ;;  %v2624_v35 = vrot.slane %v2623_v18, 2  ;;  %v2630_v60 = vrot.slane %v2629_v24, 2  ;;  %v2998_v61 = vmul.f32 %v11048_v19, %v8080_v28 }
 0x2b8   : > { %v2613_v30 = vadd.f32 %v2612_v54, %v2611_v58  ;;  %v2636_v32 = vrot.slane %v2635_v23, 2  ;;  %v2999_v6 = vmul.f32 %v11048_v19, %v8092_v42  ;;  %v3000_v48 = vmul.f32 %v11048_v19, %v8072_v22 }
 0x2b9   : > { %v2619_v0 = vadd.f32 %v2618_v12, %v2617_v56  ;;  %v2625_v9 = vadd.f32 %v2624_v35, %v2623_v18  ;;  %v2631_v29 = vadd.f32 %v2630_v60, %v2629_v24  ;;  %v2648_v46 = vrot.slane %v2647_v50, 2  ;;  %v11049_v12 = vld [vmem:[#allocation29_spill] sm:$0xff] }
 0x2ba   : > { %v2614_v8 = vrot.slane %v2613_v30, 1  ;;  %v2637_v5 = vadd.f32 %v2636_v32, %v2635_v23  ;;  %v3001_v55 = vmul.f32 %v11048_v19, %v8086_v34  ;;  %v3002_v58 = vmul.f32 %v11048_v19, %v11043_v45 }
 0x2bb   : > { %v2620_v52 = vrot.slane %v2619_v0, 1  ;;  %v2626_v36 = vrot.slane %v2625_v9, 1  ;;  %v2632_v14 = vrot.slane %v2631_v29, 1  ;;  %v2944_v53 = vrot.slane %v8551_v33, 2 }
 0x2bc   : > { %v2615_v56 = vadd.f32 %v2614_v8, %v2613_v30  ;;  %v2638_v18 = vrot.slane %v2637_v5, 1  ;;  %v3004_v24 = vmul.f32 %v11048_v19, %v11042_v38  ;;  %v3005_v35 = vmul.f32 %v11048_v19, %v11049_v12 }
 0x2bd   : > { %v2621_v63 = vadd.f32 %v2620_v52, %v2619_v0  ;;  %v2627_v54 = vadd.f32 %v2626_v36, %v2625_v9  ;;  %v2633_v23 = vadd.f32 %v2632_v14, %v2631_v29  ;;  %v2649_v32 = vadd.f32 %v2648_v46, %v2647_v50 }
 0x2be   : > { %v2639_v60 = vadd.f32 %v2638_v18, %v2637_v5  ;;  %v3054_v41 = vrot.slane %v2998_v61, 4  ;;  %v3060_v49 = vrot.slane %v2999_v6, 4  ;;  %v3066_v42 = vrot.slane %v3000_v48, 4 }
 0x2bf   : > { %v2683_v17 = vsel %vm893_vm0, %v2621_v63, %v2615_v56  ;;  %v3072_v28 = vrot.slane %v3001_v55, 4  ;;  %v3078_v22 = vrot.slane %v3002_v58, 4  ;;  %v3090_v34 = vrot.slane %v3004_v24, 4 }
 0x2c0   : > { %v2684_v30 = vsel %vm895_vm1, %v2627_v54, %v2683_v17  ;;  %v3055_v8 = vadd.f32 %v3054_v41, %v2998_v61  ;;  %v3061_v21 = vadd.f32 %v3060_v49, %v2999_v6  ;;  %v3067_v9 = vadd.f32 %v3066_v42, %v3000_v48  ;;  %v11050_v41 = vld [vmem:[#allocation31_spill] sm:$0xff] }
 0x2c1   : > { %v2685_v0 = vsel %vm897_vm2, %v2633_v23, %v2684_v30  ;;  %v3073_v29 = vadd.f32 %v3072_v28, %v3001_v55  ;;  %v3079_v52 = vadd.f32 %v3078_v22, %v3002_v58  ;;  %v3091_v36 = vadd.f32 %v3090_v34, %v3004_v24 }
 0x2c2   : > { %v8578_v5 = vsel %vm899_vm3, %v2639_v60, %v2685_v0  ;;  %v3056_v50 = vrot.slane %v3055_v8, 2  ;;  %v3062_v46 = vrot.slane %v3061_v21, 2  ;;  %v3068_v14 = vrot.slane %v3067_v9, 2 }
 0x2c3   : > { %v3074_v56 = vrot.slane %v3073_v29, 2  ;;  %v3080_v18 = vrot.slane %v3079_v52, 2  ;;  %v3096_v63 = vrot.slane %v3005_v35, 4  ;;  %v8581_v17 = vadd.f32 %v2944_v53, %v8551_v33 }
 0x2c4   : > { %v3057_v49 = vadd.f32 %v3056_v50, %v3055_v8  ;;  %v3063_v61 = vadd.f32 %v3062_v46, %v3061_v21  ;;  %v776_v42 = vmul.f32 %v8012_v3, %v11050_v41  ;;  %v2650_v28 = vrot.slane %v2649_v32, 1 }
 0x2c5   : > { %v3069_v22 = vadd.f32 %v3068_v14, %v3067_v9  ;;  %v3075_v6 = vadd.f32 %v3074_v56, %v3073_v29  ;;  %v3081_v48 = vadd.f32 %v3080_v18, %v3079_v52  ;;  %v3092_v54 = vrot.slane %v3091_v36, 2 }
 0x2c6   : > { %v3058_v55 = vrot.slane %v3057_v49, 1  ;;  %v3064_v58 = vrot.slane %v3063_v61, 1  ;;  %v8587_v34 = vmul.f32 %v8036_v16, %v11050_v41  ;;  %v8589_v53 = vadd.f32 %v3096_v63, %v3005_v35 }
 0x2c7   : > { %v3070_v24 = vrot.slane %v3069_v22, 1  ;;  %v3076_v23 = vrot.slane %v3075_v6, 1  ;;  %v3082_v33 = vrot.slane %v3081_v48, 1  ;;  %v1006_v60 = vrot.slane %v8526_v15, 4 }
 0x2c8   : > { %v3059_v30 = vadd.f32 %v3058_v55, %v3057_v49  ;;  %v3065_v8 = vadd.f32 %v3064_v58, %v3063_v61  ;;  %v8593_v0 = vadd.f32 %v2650_v28, %v2649_v32  ;;  %v8595_v50 = vadd.f32 %v3092_v54, %v3091_v36 }
 0x2c9   : > { %v3071_v9 = vadd.f32 %v3070_v24, %v3069_v22  ;;  %v3077_v29 = vadd.f32 %v3076_v23, %v3075_v6  ;;  %v3083_v52 = vadd.f32 %v3082_v33, %v3081_v48  ;;  %v777_v14 = vmul.f32 %v11042_v38, %v8012_v3 }
 0x2ca   : > { %v3127_v46 = vsel %vm893_vm0, %v3065_v8, %v3059_v30  ;;  %v778_v35 = vmul.f32 %v11049_v12, %v8012_v3  ;;  %v831_v32 = vrot.slane %v8437_v10, 1  ;;  %v837_v63 = vrot.slane %v8536_v37, 1 }
 0x2cb   : > { %v3128_v18 = vsel %vm895_vm1, %v3071_v9, %v3127_v46  ;;  %v11051_v36 = vrot.slane %v8371_v39, 2  ;;  %v847_v28 = vrot.slane %v8439_v62, 2  ;;  %v11052_v22 = vrot.slane %v8512_v25, 4 }
 0x2cc   : > { %v3129_v49 = vsel %vm897_vm2, %v3077_v29, %v3128_v18  ;;  %v8618_v48 = vadd.s32 8, %v8061_v4  ;;  %v832_v55 = vadd.f32 %v831_v32, %v8437_v10  ;;  %v838_v58 = vadd.f32 %v837_v63, %v8536_v37 }
 0x2cd   : > { %v842_v61 = vadd.f32 %v11051_v36, %v8371_v39  ;;  %v852_v3 = vadd.f32 %v11052_v22, %v8512_v25  ;;  %v8615_v6 = vsel %vm899_vm3, %v3083_v52, %v3129_v49  ;;  %v848_v24 = vadd.f32 %v847_v28, %v8439_v62 }
 0x2ce   : > { %v857_v23 = vrot.slane %v776_v42, 4  ;;  %v863_v33 = vrot.slane %v777_v14, 4  ;;  %v869_v30 = vrot.slane %v778_v35, 4  ;;  %v907_v8 = vsel %vm893_vm0, %v838_v58, %v832_v55 }
 0x2cf   : > { %v843_v54 = vrot.slane %v842_v61, 1  ;;  %v853_v39 = vrot.slane %v852_v3, 2  ;;  %v932_v25 = vmul.f32 %v11042_v38, %v8036_v16  ;;  %v849_v29 = vrot.slane %v848_v24, 1 }
 0x2d0   : > { %v858_v46 = vadd.f32 %v857_v23, %v776_v42  ;;  %v864_v18 = vadd.f32 %v863_v33, %v777_v14  ;;  %v870_v10 = vadd.f32 %v869_v30, %v778_v35  ;;  %v933_v37 = vmul.f32 %v11049_v12, %v8036_v16 }
 0x2d1   : > { %v844_v9 = vadd.f32 %v843_v54, %v842_v61  ;;  %v854_v52 = vadd.f32 %v853_v39, %v852_v3  ;;  %v986_v62 = vrot.slane %v8449_v57, 1  ;;  %v850_v32 = vadd.f32 %v849_v29, %v848_v24 }
 0x2d2   : > { %v859_v49 = vrot.slane %v858_v46, 2  ;;  %v865_v28 = vrot.slane %v864_v18, 2  ;;  %v871_v22 = vrot.slane %v870_v10, 2  ;;  %v992_v61 = vrot.slane %v8545_v20, 1 }
 0x2d3   : > { %v855_v63 = vrot.slane %v854_v52, 1  ;;  %v908_v36 = vsel %vm895_vm1, %v844_v9, %v907_v8  ;;  %v987_v55 = vadd.f32 %v986_v62, %v8449_v57  ;;  %v11053_v16 = vrot.slane %v8379_v27, 2 }
 0x2d4   : > { %v860_v42 = vadd.f32 %v859_v49, %v858_v46  ;;  %v909_v14 = vsel %vm897_vm2, %v850_v32, %v908_v36  ;;  %v866_v58 = vadd.f32 %v865_v28, %v864_v18  ;;  %v872_v54 = vadd.f32 %v871_v22, %v870_v10 }
 0x2d5   : > { %v856_v3 = vadd.f32 %v855_v63, %v854_v52  ;;  %v997_v35 = vadd.f32 %v11053_v16, %v8379_v27  ;;  %v993_v24 = vadd.f32 %v992_v61, %v8545_v20  ;;  %v1002_v39 = vrot.slane %v8443_v26, 2 }
 0x2d6   : > { %v861_v23 = vrot.slane %v860_v42, 1  ;;  %v1007_v30 = vadd.f32 %v1006_v60, %v8526_v15  ;;  %v867_v8 = vrot.slane %v866_v58, 1  ;;  %v873_v9 = vrot.slane %v872_v54, 1 }
 0x2d7   : > { %v910_v33 = vsel %vm899_vm3, %v856_v3, %v909_v14  ;;  %v998_v57 = vrot.slane %v997_v35, 1  ;;  %v1003_v29 = vadd.f32 %v1002_v39, %v8443_v26  ;;  %v1012_v52 = vrot.slane %v8587_v34, 4 }
 0x2d8   : > { %v862_v46 = vadd.f32 %v861_v23, %v860_v42  ;;  %v1008_v18 = vrot.slane %v1007_v30, 2  ;;  %v1018_v10 = vrot.slane %v932_v25, 4  ;;  %v868_v62 = vadd.f32 %v867_v8, %v866_v58 }
 0x2d9   : > { %v999_v27 = vadd.f32 %v998_v57, %v997_v35  ;;  %v874_v20 = vadd.f32 %v873_v9, %v872_v54  ;;  %v1004_v32 = vrot.slane %v1003_v29, 1  ;;  %v1013_v63 = vadd.f32 %v1012_v52, %v8587_v34 }
 0x2da   : > { %v911_v49 = vsel %vm901_vm4, %v862_v46, %v910_v33  ;;  %v1009_v36 = vadd.f32 %v1008_v18, %v1007_v30  ;;  %v1019_v28 = vadd.f32 %v1018_v10, %v932_v25  ;;  %v1024_v15 = vrot.slane %v933_v37, 4 }
 0x2db   : > { %v912_v60 = vsel %vm903_vm5, %v868_v62, %v911_v49  ;;  %v1005_v22 = vadd.f32 %v1004_v32, %v1003_v29  ;;  %v1014_v26 = vrot.slane %v1013_v63, 2  ;;  %v1055_v61 = vsel %vm893_vm0, %v993_v24, %v987_v55 }
 0x2dc   : > { %v8647_v3 = vsel %vm905_vm6, %v874_v20, %v912_v60  ;;  %v1010_v42 = vrot.slane %v1009_v36, 1  ;;  %v1020_v14 = vrot.slane %v1019_v28, 2  ;;  %v1025_v16 = vadd.f32 %v1024_v15, %v933_v37 }
 0x2dd   : > { %v1015_v35 = vadd.f32 %v1014_v26, %v1013_v63  ;;  %v1056_v34 = vsel %vm895_vm1, %v999_v27, %v1055_v61  ;;  %v1079_v58 = vmul.f32 %v8008_v1, %v11050_v41  ;;  %v1080_v25 = vmul.f32 %v8008_v1, %v11042_v38 }
 0x2de   : > { %v1011_v54 = vadd.f32 %v1010_v42, %v1009_v36  ;;  %v1021_v39 = vadd.f32 %v1020_v14, %v1019_v28  ;;  %v1026_v23 = vrot.slane %v1025_v16, 2  ;;  %v1057_v55 = vsel %vm897_vm2, %v1005_v22, %v1056_v34 }
 0x2df   : > { %v1016_v24 = vrot.slane %v1015_v35, 1  ;;  %v1081_v33 = vmul.f32 %v8008_v1, %v11049_v12  ;;  %v11054_v37 = vrot.slane %v8406_v40, 2  ;;  %v11055_v30 = vrot.slane %v8459_v2, 2 }
 0x2e0   : > { %v1022_v9 = vrot.slane %v1021_v39, 1  ;;  %v1027_v29 = vadd.f32 %v1026_v23, %v1025_v16  ;;  %v1058_v52 = vsel %vm899_vm3, %v1011_v54, %v1057_v55  ;;  %v1144_v46 = vrot.slane %v8401_v47, 2 }
 0x2e1   : > { %v1133_v57 = vadd.f32 %v11054_v37, %v8406_v40  ;;  %v1139_v8 = vadd.f32 %v11055_v30, %v8459_v2  ;;  %v1017_v27 = vadd.f32 %v1016_v24, %v1015_v35  ;;  %v11056_v1 = vrot.slane %v8397_v13, 4 }
 0x2e2   : > { %v1023_v20 = vadd.f32 %v1022_v9, %v1021_v39  ;;  %v1028_v32 = vrot.slane %v1027_v29, 1  ;;  %v1145_v40 = vadd.f32 %v1144_v46, %v8401_v47  ;;  %v1154_v63 = vrot.slane %v8531_v51, 4 }
 0x2e3   : > { %v1134_v18 = vrot.slane %v1133_v57, 1  ;;  %v1140_v10 = vrot.slane %v1139_v8, 1  ;;  %v1149_v62 = vadd.f32 %v11056_v1, %v8397_v13  ;;  %v1059_v2 = vsel %vm901_vm4, %v1017_v27, %v1058_v52 }
 0x2e4   : > { %v1029_v15 = vadd.f32 %v1028_v32, %v1027_v29  ;;  %v1060_v60 = vsel %vm903_vm5, %v1023_v20, %v1059_v2  ;;  %v1146_v22 = vrot.slane %v1145_v40, 1  ;;  %v1155_v26 = vadd.f32 %v1154_v63, %v8531_v51 }
 0x2e5   : > { %v1135_v49 = vadd.f32 %v1134_v18, %v1133_v57  ;;  %v1141_v36 = vadd.f32 %v1140_v10, %v1139_v8  ;;  %v1150_v28 = vrot.slane %v1149_v62, 2  ;;  %v1160_v42 = vrot.slane %v1079_v58, 4 }
 0x2e6   : > { %v1166_v13 = vrot.slane %v1080_v25, 4  ;;  %v1172_v14 = vrot.slane %v1081_v33, 4  ;;  %v8674_v16 = vsel %vm905_vm6, %v1029_v15, %v1060_v60  ;;  %v1147_v47 = vadd.f32 %v1146_v22, %v1145_v40 }
 0x2e7   : > { %v1151_v61 = vadd.f32 %v1150_v28, %v1149_v62  ;;  %v1156_v35 = vrot.slane %v1155_v26, 2  ;;  %v1203_v34 = vsel %vm893_vm0, %v1141_v36, %v1135_v49  ;;  %v1161_v39 = vadd.f32 %v1160_v42, %v1079_v58 }
 0x2e8   : > { %v1167_v23 = vadd.f32 %v1166_v13, %v1080_v25  ;;  %v1173_v55 = vadd.f32 %v1172_v14, %v1081_v33  ;;  %v1204_v37 = vsel %vm895_vm1, %v1147_v47, %v1203_v34  ;;  %v1226_v51 = vmul.f32 %v8020_v7, %v11043_v45 }
 0x2e9   : > { %v1152_v54 = vrot.slane %v1151_v61, 1  ;;  %v1157_v24 = vadd.f32 %v1156_v35, %v1155_v26  ;;  %v1227_v57 = vmul.f32 %v8020_v7, %v11050_v41  ;;  %v1162_v8 = vrot.slane %v1161_v39, 2 }
 0x2ea   : > { %v1168_v9 = vrot.slane %v1167_v23, 2  ;;  %v1174_v29 = vrot.slane %v1173_v55, 2  ;;  %v1228_v46 = vmul.f32 %v8020_v7, %v11042_v38  ;;  %v1229_v58 = vmul.f32 %v8020_v7, %v11049_v12 }
 0x2eb   : > { %v1153_v30 = vadd.f32 %v1152_v54, %v1151_v61  ;;  %v1158_v52 = vrot.slane %v1157_v24, 1  ;;  %v1280_v25 = vrot.slane %v8415_v59, 2  ;;  %v1163_v33 = vadd.f32 %v1162_v8, %v1161_v39 }
 0x2ec   : > { %v1169_v27 = vadd.f32 %v1168_v9, %v1167_v23  ;;  %v1175_v18 = vadd.f32 %v1174_v29, %v1173_v55  ;;  %v1286_v20 = vrot.slane %v8519_v11, 2  ;;  %v11057_v32 = vrot.slane %v8359_v31, 4 }
 0x2ed   : > { %v1205_v10 = vsel %vm897_vm2, %v1153_v30, %v1204_v37  ;;  %v1159_v1 = vadd.f32 %v1158_v52, %v1157_v24  ;;  %v1281_v62 = vadd.f32 %v1280_v25, %v8415_v59  ;;  %v1164_v63 = vrot.slane %v1163_v33, 1 }
 0x2ee   : > { %v1291_v40 = vadd.f32 %v11057_v32, %v8359_v31  ;;  %v1170_v2 = vrot.slane %v1169_v27, 1  ;;  %v1176_v49 = vrot.slane %v1175_v18, 1  ;;  %v1296_v7 = vrot.slane %v8410_v43, 4 }
 0x2ef   : > { %v1206_v36 = vsel %vm899_vm3, %v1159_v1, %v1205_v10  ;;  %v1282_v28 = vrot.slane %v1281_v62, 1  ;;  %v1287_v15 = vadd.f32 %v1286_v20, %v8519_v11  ;;  %v1165_v22 = vadd.f32 %v1164_v63, %v1163_v33 }
 0x2f0   : > { %v1292_v60 = vrot.slane %v1291_v40, 2  ;;  %v1171_v26 = vadd.f32 %v1170_v2, %v1169_v27  ;;  %v1177_v59 = vadd.f32 %v1176_v49, %v1175_v18  ;;  %v1297_v61 = vadd.f32 %v1296_v7, %v8410_v43  ;;  %v11058_v18 = vld [vmem:[#allocation21_spill] sm:$0xff] }
 0x2f1   : > { %v1283_v42 = vadd.f32 %v1282_v28, %v1281_v62  ;;  %v1288_v13 = vrot.slane %v1287_v15, 1  ;;  %v1302_v31 = vrot.slane %v1226_v51, 4  ;;  %v1207_v47 = vsel %vm901_vm4, %v1165_v22, %v1206_v36 }
 0x2f2   : > { %v1293_v14 = vadd.f32 %v1292_v60, %v1291_v40  ;;  %v1298_v35 = vrot.slane %v1297_v61, 2  ;;  %v1308_v34 = vrot.slane %v1227_v57, 4  ;;  %v1314_v54 = vrot.slane %v1228_v46, 4 }
 0x2f3   : > { %v1208_v39 = vsel %vm903_vm5, %v1171_v26, %v1207_v47  ;;  %v1289_v23 = vadd.f32 %v1288_v13, %v1287_v15  ;;  %v1303_v11 = vadd.f32 %v1302_v31, %v1226_v51  ;;  %v1320_v29 = vrot.slane %v1229_v58, 4  ;;  %v11059_v15 = vld [vmem:[#allocation46_spill] sm:$0xff] }
 0x2f4   : > { %v1294_v55 = vrot.slane %v1293_v14, 1  ;;  %v8700_v24 = vsel %vm905_vm6, %v1177_v59, %v1208_v39  ;;  %v1299_v37 = vadd.f32 %v1298_v35, %v1297_v61  ;;  %v1309_v30 = vadd.f32 %v1308_v34, %v1227_v57  ;;  %v11061_v61 = vld [vmem:[#allocation50_spill] sm:$0xff] }
 0x2f5   : > { %v1315_v43 = vadd.f32 %v1314_v54, %v1228_v46  ;;  %v1304_v9 = vrot.slane %v1303_v11, 2  ;;  %v1351_v52 = vsel %vm893_vm0, %v1289_v23, %v1283_v42  ;;  %v1373_v10 = vmul.f32 %v11058_v18, %v8048_v44 }
 0x2f6   : > { %v1295_v8 = vadd.f32 %v1294_v55, %v1293_v14  ;;  %v1300_v25 = vrot.slane %v1299_v37, 1  ;;  %v1310_v33 = vrot.slane %v1309_v30, 2  ;;  %v1321_v62 = vadd.f32 %v1320_v29, %v1229_v58  ;;  %v11063_v14 = vld [vmem:[#allocation45_spill] sm:$0xff] }
 0x2f7   : > { %v1316_v27 = vrot.slane %v1315_v43, 2  ;;  %v1305_v1 = vadd.f32 %v1304_v9, %v1303_v11  ;;  %v1374_v20 = vmul.f32 %v8048_v44, %v11043_v45  ;;  %v1375_v40 = vmul.f32 %v8048_v44, %v11050_v41 }
 0x2f8   : > { %v1352_v51 = vsel %vm895_vm1, %v1295_v8, %v1351_v52  ;;  %v1301_v57 = vadd.f32 %v1300_v25, %v1299_v37  ;;  %v1311_v46 = vadd.f32 %v1310_v33, %v1309_v30  ;;  %v1322_v2 = vrot.slane %v1321_v62, 2 }
 0x2f9   : > { %v1317_v32 = vadd.f32 %v1316_v27, %v1315_v43  ;;  %v1306_v63 = vrot.slane %v1305_v1, 1  ;;  %v1376_v49 = vmul.f32 %v11042_v38, %v8048_v44  ;;  %v1377_v7 = vmul.f32 %v11049_v12, %v8048_v44 }
 0x2fa   : > { %v1312_v58 = vrot.slane %v1311_v46, 1  ;;  %v1353_v28 = vsel %vm897_vm2, %v1301_v57, %v1352_v51  ;;  %v11060_v60 = vrot.slane %v11059_v15, 4  ;;  %v1323_v59 = vadd.f32 %v1322_v2, %v1321_v62 }
 0x2fb   : > { %v1318_v36 = vrot.slane %v1317_v32, 1  ;;  %v1307_v26 = vadd.f32 %v1306_v63, %v1305_v1  ;;  %v11062_v42 = vrot.slane %v11061_v61, 4  ;;  %v1438_v31 = vrot.slane %v11063_v14, 4 }
 0x2fc   : > { %v1427_v22 = vadd.f32 %v11060_v60, %v11059_v15  ;;  %v1313_v47 = vadd.f32 %v1312_v58, %v1311_v46  ;;  %v1444_v44 = vrot.slane %v1373_v10, 4  ;;  %v1324_v54 = vrot.slane %v1323_v59, 1 }
 0x2fd   : > { %v1433_v13 = vadd.f32 %v11062_v42, %v11061_v61  ;;  %v1319_v35 = vadd.f32 %v1318_v36, %v1317_v32  ;;  %v1354_v39 = vsel %vm899_vm3, %v1307_v26, %v1353_v28  ;;  %v1439_v55 = vadd.f32 %v1438_v31, %v11063_v14  ;;  %v11064_v26 = vld [vmem:[#allocation16_spill] sm:$0xff] }
 0x2fe   : > { %v1428_v34 = vrot.slane %v1427_v22, 2  ;;  %v1355_v11 = vsel %vm901_vm4, %v1313_v47, %v1354_v39  ;;  %v1445_v30 = vadd.f32 %v1444_v44, %v1373_v10  ;;  %v1450_v43 = vrot.slane %v1374_v20, 4 }
 0x2ff   : > { %v1434_v23 = vrot.slane %v1433_v13, 2  ;;  %v1325_v8 = vadd.f32 %v1324_v54, %v1323_v59  ;;  %v1356_v9 = vsel %vm903_vm5, %v1319_v35, %v1355_v11  ;;  %v1440_v52 = vrot.slane %v1439_v55, 2  ;;  %v11065_v59 = vld [vmem:[#allocation17_spill] sm:$0xff] }
 0x300   : > { %v1429_v37 = vadd.f32 %v1428_v34, %v1427_v22  ;;  %v1446_v33 = vrot.slane %v1445_v30, 2  ;;  %v1451_v27 = vadd.f32 %v1450_v43, %v1374_v20  ;;  %v1456_v1 = vrot.slane %v1375_v40, 4 }
 0x301   : > { %v1435_v29 = vadd.f32 %v1434_v23, %v1433_v13  ;;  %v8727_v62 = vsel %vm905_vm6, %v1325_v8, %v1356_v9  ;;  %v1441_v57 = vadd.f32 %v1440_v52, %v1439_v55  ;;  %v1462_v46 = vrot.slane %v1376_v49, 4  ;;  %v11066_v52 = vld [vmem:[#allocation47_spill] sm:$0xff] }
 0x302   : > { %v1430_v25 = vrot.slane %v1429_v37, 1  ;;  %v3141_v32 = vmax.f32 %v8727_v62, %v8700_v24  ;;  %v1447_v63 = vadd.f32 %v1446_v33, %v1445_v30  ;;  %v1452_v2 = vrot.slane %v1451_v27, 2  ;;  %v11067_v33 = vld [vmem:[#allocation51_spill] sm:$0xff] }
 0x303   : > { %v1436_v51 = vrot.slane %v1435_v29, 1  ;;  %v1442_v36 = vrot.slane %v1441_v57, 1  ;;  %v1457_v28 = vadd.f32 %v1456_v1, %v1375_v40  ;;  %v1463_v15 = vadd.f32 %v1462_v46, %v1376_v49 }
 0x304   : > { %v1431_v10 = vadd.f32 %v1430_v25, %v1429_v37  ;;  %v1448_v60 = vrot.slane %v1447_v63, 1  ;;  %v1453_v22 = vadd.f32 %v1452_v2, %v1451_v27  ;;  %v1468_v20 = vrot.slane %v1377_v7, 4 }
 0x305   : > { %v1437_v58 = vadd.f32 %v1436_v51, %v1435_v29  ;;  %v1520_v61 = vmul.f32 %v11065_v59, %v11064_v26  ;;  %v1443_v42 = vadd.f32 %v1442_v36, %v1441_v57  ;;  %v1458_v13 = vrot.slane %v1457_v28, 2 }
 0x306   : > { %v1464_v14 = vrot.slane %v1463_v15, 2  ;;  %v1449_v47 = vadd.f32 %v1448_v60, %v1447_v63  ;;  %v1454_v35 = vrot.slane %v1453_v22, 1  ;;  %v1469_v34 = vadd.f32 %v1468_v20, %v1377_v7 }
 0x307   : > { %v1499_v31 = vsel %vm893_vm0, %v1437_v58, %v1431_v10  ;;  %v1521_v44 = vmul.f32 %v11058_v18, %v11064_v26  ;;  %v1459_v54 = vadd.f32 %v1458_v13, %v1457_v28  ;;  %v1522_v39 = vmul.f32 %v11064_v26, %v11043_v45 }
 0x308   : > { %v1465_v40 = vadd.f32 %v1464_v14, %v1463_v15  ;;  %v1500_v49 = vsel %vm895_vm1, %v1443_v42, %v1499_v31  ;;  %v1455_v23 = vadd.f32 %v1454_v35, %v1453_v22  ;;  %v1470_v55 = vrot.slane %v1469_v34, 2 }
 0x309   : > { %v1501_v11 = vsel %vm897_vm2, %v1449_v47, %v1500_v49  ;;  %v1523_v37 = vmul.f32 %v11064_v26, %v11050_v41  ;;  %v1460_v30 = vrot.slane %v1459_v54, 1  ;;  %v1524_v7 = vmul.f32 %v11042_v38, %v11064_v26 }
 0x30a   : > { %v1466_v43 = vrot.slane %v1465_v40, 1  ;;  %v1525_v8 = vmul.f32 %v11049_v12, %v11064_v26  ;;  %v1471_v9 = vadd.f32 %v1470_v55, %v1469_v34  ;;  %v1502_v29 = vsel %vm899_vm3, %v1455_v23, %v1501_v11 }
 0x30b   : > { %v1574_v25 = vrot.slane %v11066_v52, 4  ;;  %v1580_v27 = vrot.slane %v11067_v33, 4  ;;  %v1461_v1 = vadd.f32 %v1460_v30, %v1459_v54  ;;  %v1586_v57 = vrot.slane %v1520_v61, 4 }
 0x30c   : > { %v1467_v51 = vadd.f32 %v1466_v43, %v1465_v40  ;;  %v1592_v46 = vrot.slane %v1521_v44, 4  ;;  %v1472_v10 = vrot.slane %v1471_v9, 1  ;;  %v1598_v58 = vrot.slane %v1522_v39, 4 }
 0x30d   : > { %v1575_v63 = vadd.f32 %v1574_v25, %v11066_v52  ;;  %v1581_v2 = vadd.f32 %v1580_v27, %v11067_v33  ;;  %v1503_v36 = vsel %vm901_vm4, %v1461_v1, %v1502_v29  ;;  %v1587_v28 = vadd.f32 %v1586_v57, %v1520_v61  ;;  %v8759_v25 = vpop.f32.mrb[16].mxu0 }
 0x30e   : > { %v1593_v15 = vadd.f32 %v1592_v46, %v1521_v44  ;;  %v1604_v60 = vrot.slane %v1523_v37, 4  ;;  %v1473_v22 = vadd.f32 %v1472_v10, %v1471_v9  ;;  %v1504_v20 = vsel %vm903_vm5, %v1467_v51, %v1503_v36  ;;  %11068 = vst [vmem:[#allocation30_spill] sm:$0xff] %v8759_v25  ;;  %v8761_v57 = vpop.f32.mrb[17].mxu0 }
 0x30f   : > { %v1576_v42 = vrot.slane %v1575_v63, 2  ;;  %v1582_v13 = vrot.slane %v1581_v2, 2  ;;  %v1588_v14 = vrot.slane %v1587_v28, 2  ;;  %v1599_v47 = vadd.f32 %v1598_v58, %v1522_v39 }
 0x310   : > { %v1594_v31 = vrot.slane %v1593_v15, 2  ;;  %v1605_v35 = vadd.f32 %v1604_v60, %v1523_v37  ;;  %v8754_v34 = vsel %vm905_vm6, %v1473_v22, %v1504_v20  ;;  %v1610_v49 = vrot.slane %v1524_v7, 4 }
 0x311   : > { %v1577_v54 = vadd.f32 %v1576_v42, %v1575_v63  ;;  %v1583_v40 = vadd.f32 %v1582_v13, %v1581_v2  ;;  %v8757_v23 = vmax.f32 %v3141_v32, %v8754_v34  ;;  %v1589_v61 = vadd.f32 %v1588_v14, %v1587_v28  ;;  %v8763_v2 = vpop.f32.mrb[18].mxu0  ;;  %v11070_v28 = vld [vmem:[#allocation19_spill] sm:$0xff] }
 0x312   : > { %v1595_v44 = vadd.f32 %v1594_v31, %v1593_v15  ;;  %v1600_v55 = vrot.slane %v1599_v47, 2  ;;  %v1606_v43 = vrot.slane %v1605_v35, 2  ;;  %v1611_v9 = vadd.f32 %v1610_v49, %v1524_v7  ;;  %11069 = vst [vmem:[#allocation29_spill] sm:$0xff] %v8763_v2  ;;  %v11071_v15 = vld [vmem:[#allocation13_spill] sm:$0xff]  ;;  %v8768_v22 = vpop.f32.mrb[19].mxu0  ;;  %v11072_v14 = vld [vmem:[#allocation23_spill] sm:$0xff] }
 0x313   : > { %v1578_v11 = vrot.slane %v1577_v54, 1  ;;  %v1584_v30 = vrot.slane %v1583_v40, 1  ;;  %v1590_v29 = vrot.slane %v1589_v61, 1  ;;  %v1616_v37 = vrot.slane %v1525_v8, 4 }
 0x314   : > { %v1596_v52 = vrot.slane %v1595_v44, 1  ;;  %v1601_v39 = vadd.f32 %v1600_v55, %v1599_v47  ;;  %v1607_v1 = vadd.f32 %v1606_v43, %v1605_v35  ;;  %v1612_v51 = vrot.slane %v1611_v9, 2  ;;  %v8773_v47 = vpop.f32.mrb[20].mxu0 }
 0x315   : > { %v1579_v33 = vadd.f32 %v1578_v11, %v1577_v54  ;;  %v1585_v27 = vadd.f32 %v1584_v30, %v1583_v40  ;;  %v1591_v32 = vadd.f32 %v1590_v29, %v1589_v61  ;;  %v1617_v63 = vadd.f32 %v1616_v37, %v1525_v8  ;;  %11073 = vst [vmem:[#allocation31_spill] sm:$0xff] %v8773_v47  ;;  %v8778_v49 = vpop.f32.mrb[21].mxu0 }
 0x316   : > { %v1597_v46 = vadd.f32 %v1596_v52, %v1595_v44  ;;  %v1602_v10 = vrot.slane %v1601_v39, 1  ;;  %v1608_v58 = vrot.slane %v1607_v1, 1  ;;  %v1613_v7 = vadd.f32 %v1612_v51, %v1611_v9  ;;  %11074 = vst [vmem:[#allocation21_spill] sm:$0xff] %v8778_v49  ;;  %v8785_v30 = vpop.f32.mrb[22].mxu0 }
 0x317   : > { %v1647_v36 = vsel %vm893_vm0, %v1585_v27, %v1579_v33  ;;  %v1666_v60 = vmul.f32 %v11071_v15, %v11070_v28  ;;  %v1618_v42 = vrot.slane %v1617_v63, 2  ;;  %v1667_v31 = vmul.f32 %v11071_v15, %v11072_v14  ;;  %11075 = vst [vmem:[#allocation46_spill] sm:$0xff] %v8785_v30 }
 0x318   : > { %v1603_v20 = vadd.f32 %v1602_v10, %v1601_v39  ;;  %v1648_v13 = vsel %vm895_vm1, %v1591_v32, %v1647_v36  ;;  %v1609_v8 = vadd.f32 %v1608_v58, %v1607_v1  ;;  %v1614_v35 = vrot.slane %v1613_v7, 1  ;;  %v8792_v39 = vpop.f32.mrb[23].mxu0 }
 0x319   : > { %v1649_v54 = vsel %vm897_vm2, %v1597_v46, %v1648_v13  ;;  %v1668_v40 = vmul.f32 %v11071_v15, %v11065_v59  ;;  %v1619_v61 = vadd.f32 %v1618_v42, %v1617_v63  ;;  %v1669_v55 = vmul.f32 %v11071_v15, %v11058_v18  ;;  %11076 = vst [vmem:[#allocation50_spill] sm:$0xff] %v8792_v39  ;;  %v8796_v51 = vpop.f32.mrb[24].mxu0 }
 0x31a   : > { %v1650_v44 = vsel %vm899_vm3, %v1603_v20, %v1649_v54  ;;  %v1670_v11 = vmul.f32 %v11071_v15, %v11043_v45  ;;  %v1615_v43 = vadd.f32 %v1614_v35, %v1613_v7  ;;  %v1671_v29 = vmul.f32 %v11071_v15, %v11050_v41  ;;  %11077 = vst [vmem:[#allocation45_spill] sm:$0xff] %v8796_v51  ;;  %v8799_v58 = vpop.f32.mrb[25].mxu0 }
 0x31b   : > { %v1651_v9 = vsel %vm901_vm4, %v1609_v8, %v1650_v44  ;;  %v1672_v52 = vmul.f32 %v11071_v15, %v11042_v38  ;;  %v1620_v37 = vrot.slane %v1619_v61, 1  ;;  %v1673_v33 = vmul.f32 %v11071_v15, %v11049_v12  ;;  %11078 = vst [vmem:[#allocation16_spill] sm:$0xff] %v8799_v58  ;;  %v8801_v13 = vpop.f32.mrb[26].mxu0 }
 0x31c   : > { %v1722_v27 = vrot.slane %v1666_v60, 4  ;;  %v1728_v1 = vrot.slane %v1667_v31, 4  ;;  %v1652_v32 = vsel %vm903_vm5, %v1615_v43, %v1651_v9  ;;  %v1734_v46 = vrot.slane %v1668_v40, 4  ;;  %11079 = vst [vmem:[#allocation17_spill] sm:$0xff] %v8801_v13  ;;  %v8803_v44 = vpop.f32.mrb[27].mxu0 }
 0x31d   : > { %v1740_v10 = vrot.slane %v1669_v55, 4  ;;  %v1746_v63 = vrot.slane %v1670_v11, 4  ;;  %v1621_v7 = vadd.f32 %v1620_v37, %v1619_v61  ;;  %v1752_v42 = vrot.slane %v1671_v29, 4  ;;  %11080 = vst [vmem:[#allocation47_spill] sm:$0xff] %v8803_v44  ;;  %v8808_v51 = vpop.f32.mrb[28].mxu0 }
 0x31e   : > { %v1723_v36 = vadd.f32 %v1722_v27, %v1666_v60  ;;  %v1729_v20 = vadd.f32 %v1728_v1, %v1667_v31  ;;  %v1735_v8 = vadd.f32 %v1734_v46, %v1668_v40  ;;  %v1758_v54 = vrot.slane %v1672_v52, 4  ;;  %11081 = vst [vmem:[#allocation51_spill] sm:$0xff] %v8808_v51  ;;  %v8812_v40 = vpop.f32.mrb[29].mxu0 }
 0x31f   : > { %v1741_v35 = vadd.f32 %v1740_v10, %v1669_v55  ;;  %v1747_v15 = vadd.f32 %v1746_v63, %v1670_v11  ;;  %v8806_v21 = vsel %vm905_vm6, %v1621_v7, %v1652_v32  ;;  %v1753_v56 = vadd.f32 %v1752_v42, %v1671_v29  ;;  %11082 = vst [vmem:[#allocation19_spill] sm:$0xff] %v8812_v40  ;;  %v8814_v46 = vpop.f32.mrb[30].mxu0 }
 0x320   : > { %v1724_v43 = vrot.slane %v1723_v36, 2  ;;  %v1730_v9 = vrot.slane %v1729_v20, 2  ;;  %v1736_v31 = vrot.slane %v1735_v8, 2  ;;  %v1759_v1 = vadd.f32 %v1758_v54, %v1672_v52  ;;  %11083 = vst [vmem:[#allocation13_spill] sm:$0xff] %v8814_v46  ;;  %v8816_v7 = vpop.f32.mrb[31].mxu0 }
 0x321   : > { %v1742_v61 = vrot.slane %v1741_v35, 2  ;;  %v1748_v37 = vrot.slane %v1747_v15, 2  ;;  %v1754_v27 = vrot.slane %v1753_v56, 2  ;;  %v1764_v29 = vrot.slane %v1673_v33, 4  ;;  %11084 = vst [vmem:[#allocation23_spill] sm:$0xff] %v8816_v7 }
 0x322   : > { %v1725_v55 = vadd.f32 %v1724_v43, %v1723_v36  ;;  %v1731_v11 = vadd.f32 %v1730_v9, %v1729_v20  ;;  %v1737_v32 = vadd.f32 %v1736_v31, %v1735_v8  ;;  %v1760_v13 = vrot.slane %v1759_v1, 2 }
 0x323   : > { %v1743_v10 = vadd.f32 %v1742_v61, %v1741_v35  ;;  %v1749_v63 = vadd.f32 %v1748_v37, %v1747_v15  ;;  %v1755_v60 = vadd.f32 %v1754_v27, %v1753_v56  ;;  %v1765_v40 = vadd.f32 %v1764_v29, %v1673_v33  ;;  %v11085_v37 = vld [vmem:[#allocation15_spill] sm:$0xff] }
 0x324   : > { %v1726_v42 = vrot.slane %v1725_v55, 1  ;;  %v1732_v51 = vrot.slane %v1731_v11, 1  ;;  %v1738_v44 = vrot.slane %v1737_v32, 1  ;;  %v1761_v52 = vadd.f32 %v1760_v13, %v1759_v1 }
 0x325   : > { %v1744_v58 = vrot.slane %v1743_v10, 1  ;;  %v1750_v30 = vrot.slane %v1749_v63, 1  ;;  %v1756_v43 = vrot.slane %v1755_v60, 1  ;;  %v1766_v35 = vrot.slane %v1765_v40, 2 }
 0x326   : > { %v1727_v36 = vadd.f32 %v1726_v42, %v1725_v55  ;;  %v1733_v20 = vadd.f32 %v1732_v51, %v1731_v11  ;;  %v1739_v54 = vadd.f32 %v1738_v44, %v1737_v32  ;;  %v1762_v31 = vrot.slane %v1761_v52, 1 }
 0x327   : > { %v1745_v9 = vadd.f32 %v1744_v58, %v1743_v10  ;;  %v1751_v8 = vadd.f32 %v1750_v30, %v1749_v63  ;;  %v1757_v15 = vadd.f32 %v1756_v43, %v1755_v60  ;;  %v1814_v56 = vmul.f32 %v11085_v37, %v11070_v28 }
 0x328   : > { %v1795_v61 = vsel %vm893_vm0, %v1733_v20, %v1727_v36  ;;  %v1767_v27 = vadd.f32 %v1766_v35, %v1765_v40  ;;  %v1815_v33 = vmul.f32 %v11085_v37, %v11072_v14  ;;  %v1816_v51 = vmul.f32 %v11085_v37, %v11065_v59 }
 0x329   : > { %v1796_v46 = vsel %vm895_vm1, %v1739_v54, %v1795_v61  ;;  %v1763_v13 = vadd.f32 %v1762_v31, %v1761_v52  ;;  %v1817_v58 = vmul.f32 %v11085_v37, %v11058_v18  ;;  %v1818_v44 = vmul.f32 %v11085_v37, %v11043_v45 }
 0x32a   : > { %v1797_v30 = vsel %vm897_vm2, %v1745_v9, %v1796_v46  ;;  %v1768_v60 = vrot.slane %v1767_v27, 1  ;;  %v1819_v55 = vmul.f32 %v11085_v37, %v11050_v41  ;;  %v1820_v11 = vmul.f32 %v11085_v37, %v11042_v38 }
 0x32b   : > { %v1798_v40 = vsel %vm899_vm3, %v1751_v8, %v1797_v30  ;;  %v1821_v46 = vmul.f32 %v11085_v37, %v11049_v12  ;;  %v1870_v32 = vrot.slane %v1814_v56, 4  ;;  %v1876_v10 = vrot.slane %v1815_v33, 4 }
 0x32c   : > { %v1799_v1 = vsel %vm901_vm4, %v1757_v15, %v1798_v40  ;;  %v1769_v63 = vadd.f32 %v1768_v60, %v1767_v27  ;;  %v1882_v42 = vrot.slane %v1816_v51, 4  ;;  %v1888_v36 = vrot.slane %v1817_v58, 4 }
 0x32d   : > { %v1800_v29 = vsel %vm903_vm5, %v1763_v13, %v1799_v1  ;;  %v1871_v20 = vadd.f32 %v1870_v32, %v1814_v56  ;;  %v1877_v43 = vadd.f32 %v1876_v10, %v1815_v33  ;;  %v1894_v52 = vrot.slane %v1818_v44, 4 }
 0x32e   : > { %v1900_v54 = vrot.slane %v1819_v55, 4  ;;  %v8841_v9 = vsel %vm905_vm6, %v1769_v63, %v1800_v29  ;;  %v1883_v8 = vadd.f32 %v1882_v42, %v1816_v51  ;;  %v1889_v35 = vadd.f32 %v1888_v36, %v1817_v58 }
 0x32f   : > { %v1906_v15 = vrot.slane %v1820_v11, 4  ;;  %v11086_v31 = vmax.f32 %v8757_v23, %v8806_v21  ;;  %v1872_v37 = vrot.slane %v1871_v20, 2  ;;  %v1878_v27 = vrot.slane %v1877_v43, 2 }
 0x330   : > { %v1895_v13 = vadd.f32 %v1894_v52, %v1818_v44  ;;  %v1884_v30 = vrot.slane %v1883_v8, 2  ;;  %v1890_v56 = vrot.slane %v1889_v35, 2  ;;  %v1901_v33 = vadd.f32 %v1900_v54, %v1819_v55 }
 0x331   : > { %v8847_v61 = vmax.f32 %v11086_v31, %v8841_v9  ;;  %v1907_v60 = vadd.f32 %v1906_v15, %v1820_v11  ;;  %v1873_v40 = vadd.f32 %v1872_v37, %v1871_v20  ;;  %v1879_v1 = vadd.f32 %v1878_v27, %v1877_v43  ;;  %v11087_v27 = vld [vmem:[#allocation20_spill] sm:$0xff] }
 0x332   : > { %v1896_v32 = vrot.slane %v1895_v13, 2  ;;  %v1912_v10 = vrot.slane %v1821_v46, 4  ;;  %v1885_v51 = vadd.f32 %v1884_v30, %v1883_v8  ;;  %v1891_v58 = vadd.f32 %v1890_v56, %v1889_v35 }
 0x333   : > { %v1902_v63 = vrot.slane %v1901_v33, 2  ;;  %v1908_v29 = vrot.slane %v1907_v60, 2  ;;  %v1874_v42 = vrot.slane %v1873_v40, 1  ;;  %v1880_v36 = vrot.slane %v1879_v1, 1 }
 0x334   : > { %v1897_v23 = vadd.f32 %v1896_v32, %v1895_v13  ;;  %v1913_v31 = vadd.f32 %v1912_v10, %v1821_v46  ;;  %v1886_v7 = vrot.slane %v1885_v51, 1  ;;  %v1892_v47 = vrot.slane %v1891_v58, 1 }
 0x335   : > { %v1903_v39 = vadd.f32 %v1902_v63, %v1901_v33  ;;  %v1909_v44 = vadd.f32 %v1908_v29, %v1907_v60  ;;  %v1875_v52 = vadd.f32 %v1874_v42, %v1873_v40  ;;  %v1881_v49 = vadd.f32 %v1880_v36, %v1879_v1 }
 0x336   : > { %v1898_v55 = vrot.slane %v1897_v23, 1  ;;  %v1914_v11 = vrot.slane %v1913_v31, 2  ;;  %v1887_v20 = vadd.f32 %v1886_v7, %v1885_v51  ;;  %v1893_v43 = vadd.f32 %v1892_v47, %v1891_v58 }
 0x337   : > { %v1904_v54 = vrot.slane %v1903_v39, 1  ;;  %v1910_v15 = vrot.slane %v1909_v44, 1  ;;  %v1943_v37 = vsel %vm893_vm0, %v1881_v49, %v1875_v52  ;;  %v1966_v13 = vmul.f32 %v11087_v27, %v11043_v45 }
 0x338   : > { %v1899_v8 = vadd.f32 %v1898_v55, %v1897_v23  ;;  %v1915_v35 = vadd.f32 %v1914_v11, %v1913_v31  ;;  %v1944_v56 = vsel %vm895_vm1, %v1887_v20, %v1943_v37  ;;  %v1967_v33 = vmul.f32 %v11087_v27, %v11050_v41 }
 0x339   : > { %v1905_v46 = vadd.f32 %v1904_v54, %v1903_v39  ;;  %v1911_v30 = vadd.f32 %v1910_v15, %v1909_v44  ;;  %v1945_v7 = vsel %vm897_vm2, %v1893_v43, %v1944_v56  ;;  %v1968_v47 = vmul.f32 %v11042_v38, %v11087_v27  ;;  %v11088_v39 = vld [vmem:[#allocation24_spill] sm:$0xff] }
 0x33a   : > { %v1916_v60 = vrot.slane %v1915_v35, 1  ;;  %v1969_v40 = vmul.f32 %v11049_v12, %v11087_v27  ;;  %v1946_v49 = vsel %vm899_vm3, %v1899_v8, %v1945_v7  ;;  %v2042_v1 = vrot.slane %v1966_v13, 4 }
 0x33b   : > { %v2048_v32 = vrot.slane %v1967_v33, 4  ;;  %v2114_v10 = vmul.f32 %v11088_v39, %v11043_v45  ;;  %v1947_v58 = vsel %vm901_vm4, %v1905_v46, %v1946_v49  ;;  %v2054_v63 = vrot.slane %v1968_v47, 4 }
 0x33c   : > { %v1917_v51 = vadd.f32 %v1916_v60, %v1915_v35  ;;  %v2060_v29 = vrot.slane %v1969_v40, 4  ;;  %v1948_v42 = vsel %vm903_vm5, %v1911_v30, %v1947_v58  ;;  %v2043_v36 = vadd.f32 %v2042_v1, %v1966_v13 }
 0x33d   : > { %v2049_v23 = vadd.f32 %v2048_v32, %v1967_v33  ;;  %v2115_v31 = vmul.f32 %v11088_v39, %v11050_v41  ;;  %v2055_v52 = vadd.f32 %v2054_v63, %v1968_v47  ;;  %v2116_v11 = vmul.f32 %v11042_v38, %v11088_v39 }
 0x33e   : > { %v8868_v44 = vsel %vm905_vm6, %v1917_v51, %v1948_v42  ;;  %v2061_v55 = vadd.f32 %v2060_v29, %v1969_v40  ;;  %v2044_v43 = vrot.slane %v2043_v36, 2  ;;  %v2117_v15 = vmul.f32 %v11049_v12, %v11088_v39 }
 0x33f   : > { %v3149_v20 = vmax.f32 %v8847_v61, %v8868_v44  ;;  %v2050_v54 = vrot.slane %v2049_v23, 2  ;;  %v2056_v8 = vrot.slane %v2055_v52, 2  ;;  %v2190_v37 = vrot.slane %v2114_v10, 4 }
 0x340   : > { %v2062_v35 = vrot.slane %v2061_v55, 2  ;;  %v2196_v27 = vrot.slane %v2115_v31, 4  ;;  %v2045_v13 = vadd.f32 %v2044_v43, %v2043_v36  ;;  %v2202_v30 = vrot.slane %v2116_v11, 4 }
 0x341   : > { %v2051_v46 = vadd.f32 %v2050_v54, %v2049_v23  ;;  %v2208_v56 = vrot.slane %v2117_v15, 4  ;;  %v2057_v33 = vadd.f32 %v2056_v8, %v2055_v52  ;;  %v2191_v7 = vadd.f32 %v2190_v37, %v2114_v10  ;;  %v11090_v52 = vld [vmem:[#allocation53_spill] sm:$0xff] }
 0x342   : > { %v2063_v60 = vadd.f32 %v2062_v35, %v2061_v55  ;;  %v2197_v47 = vadd.f32 %v2196_v27, %v2115_v31  ;;  %v2046_v40 = vrot.slane %v2045_v13, 1  ;;  %v2203_v61 = vadd.f32 %v2202_v30, %v2116_v11  ;;  %v11091_v27 = vld [vmem:[#allocation18_spill] sm:$0xff] }
 0x343   : > { %v2052_v49 = vrot.slane %v2051_v46, 1  ;;  %v2209_v1 = vadd.f32 %v2208_v56, %v2117_v15  ;;  %v2058_v32 = vrot.slane %v2057_v33, 1  ;;  %v2192_v58 = vrot.slane %v2191_v7, 2 }
 0x344   : > { %v2064_v51 = vrot.slane %v2063_v60, 1  ;;  %v2198_v39 = vrot.slane %v2197_v47, 2  ;;  %v2047_v63 = vadd.f32 %v2046_v40, %v2045_v13  ;;  %v2204_v42 = vrot.slane %v2203_v61, 2 }
 0x345   : > { %v2053_v29 = vadd.f32 %v2052_v49, %v2051_v46  ;;  %v2210_v2 = vrot.slane %v2209_v1, 2  ;;  %v2059_v36 = vadd.f32 %v2058_v32, %v2057_v33  ;;  %v2193_v43 = vadd.f32 %v2192_v58, %v2191_v7 }
 0x346   : > { %v2065_v23 = vadd.f32 %v2064_v51, %v2063_v60  ;;  %v2199_v54 = vadd.f32 %v2198_v39, %v2197_v47  ;;  %v11089_v10 = vrot.slane %v8589_v53, 2  ;;  %v2094_v55 = vsel %vm899_vm3, %v2047_v63, %v11090_v52 }
 0x347   : > { %v2205_v11 = vadd.f32 %v2204_v42, %v2203_v61  ;;  %v2211_v15 = vadd.f32 %v2210_v2, %v2209_v1  ;;  %v2095_v8 = vsel %vm901_vm4, %v2053_v29, %v2094_v55  ;;  %v2194_v35 = vrot.slane %v2193_v43, 1  ;;  %v11092_v1 = vld [vmem:[#allocation25_spill] sm:$0xff]  ;;  %v11093_v42 = vld [vmem:[#allocation22_spill] sm:$0xff] }
 0x348   : > { %v8879_v31 = vadd.f32 %v11089_v10, %v8589_v53  ;;  %v2200_v37 = vrot.slane %v2199_v54, 1  ;;  %v2262_v13 = vmul.f32 %v11091_v27, %v11043_v45  ;;  %v2096_v46 = vsel %vm903_vm5, %v2059_v36, %v2095_v8 }
 0x349   : > { %v2206_v30 = vrot.slane %v2205_v11, 1  ;;  %v2212_v56 = vrot.slane %v2211_v15, 1  ;;  %v2263_v53 = vmul.f32 %v11091_v27, %v11050_v41  ;;  %v8890_v33 = vsel %vm905_vm6, %v2065_v23, %v2096_v46 }
 0x34a   : > { %v2195_v60 = vadd.f32 %v2194_v35, %v2193_v43  ;;  %v2201_v7 = vadd.f32 %v2200_v37, %v2199_v54  ;;  %v2264_v2 = vmul.f32 %v11091_v27, %v11042_v38  ;;  %v8895_v47 = vmax.f32 %v3149_v20, %v8890_v33 }
 0x34b   : > { %v2207_v40 = vadd.f32 %v2206_v30, %v2205_v11  ;;  %v2213_v49 = vadd.f32 %v2212_v56, %v2211_v15  ;;  %v2265_v61 = vmul.f32 %v11091_v27, %v11049_v12  ;;  %v2338_v51 = vrot.slane %v2262_v13, 4 }
 0x34c   : > { %v2242_v32 = vsel %vm899_vm3, %v2195_v60, %v11092_v1  ;;  %v2344_v58 = vrot.slane %v2263_v53, 4  ;;  %v2350_v39 = vrot.slane %v2264_v2, 4  ;;  %vm2215_vm11 = vcmp.ge.s32.totalorder %v8618_v48, 9 }
 0x34d   : > { %v2243_v63 = vsel %vm901_vm4, %v2201_v7, %v2242_v32  ;;  %v2356_v29 = vrot.slane %v2265_v61, 4  ;;  %v2410_v20 = vmul.f32 %v11093_v42, %v11043_v45  ;;  %v2339_v23 = vadd.f32 %v2338_v51, %v2262_v13 }
 0x34e   : > { %v2244_v36 = vsel %vm903_vm5, %v2207_v40, %v2243_v63  ;;  %v2345_v43 = vadd.f32 %v2344_v58, %v2263_v53  ;;  %v2351_v54 = vadd.f32 %v2350_v39, %v2264_v2  ;;  %v2411_v55 = vmul.f32 %v11093_v42, %v11050_v41 }
 0x34f   : > { %v2245_v10 = vsel %vm905_vm6, %v2213_v49, %v2244_v36  ;;  %v2357_v52 = vadd.f32 %v2356_v29, %v2265_v61  ;;  %v2412_v11 = vmul.f32 %v11093_v42, %v11042_v38  ;;  %v2340_v8 = vrot.slane %v2339_v23, 2 }
 0x350   : > { %v8911_v15 = vsel %vm2215_vm11, %v2245_v10, -1e+30  ;;  %v2346_v35 = vrot.slane %v2345_v43, 2  ;;  %v2352_v37 = vrot.slane %v2351_v54, 2  ;;  %vm2363_vm12 = vcmp.ge.s32.totalorder %v8618_v48, 10 }
 0x351   : > { %v3153_v27 = vmax.f32 %v8895_v47, %v8911_v15  ;;  %v2358_v13 = vrot.slane %v2357_v52, 2  ;;  %v2413_v46 = vmul.f32 %v11093_v42, %v11049_v12  ;;  %v2486_v30 = vrot.slane %v2410_v20, 4 }
 0x352   : > { %v2341_v56 = vadd.f32 %v2340_v8, %v2339_v23  ;;  %v2347_v53 = vadd.f32 %v2346_v35, %v2345_v43  ;;  %v2353_v60 = vadd.f32 %v2352_v37, %v2351_v54  ;;  %v2492_v7 = vrot.slane %v2411_v55, 4 }
 0x353   : > { %v2359_v2 = vadd.f32 %v2358_v13, %v2357_v52  ;;  %v2487_v40 = vadd.f32 %v2486_v30, %v2410_v20  ;;  %v2498_v49 = vrot.slane %v2412_v11, 4  ;;  %v2504_v61 = vrot.slane %v2413_v46, 4  ;;  %v11094_v52 = vld [vmem:[#allocation52_spill] sm:$0xff] }
 0x354   : > { %v2342_v1 = vrot.slane %v2341_v56, 1  ;;  %v2348_v32 = vrot.slane %v2347_v53, 1  ;;  %v2354_v51 = vrot.slane %v2353_v60, 1  ;;  %v2493_v58 = vadd.f32 %v2492_v7, %v2411_v55  ;;  %v11095_v55 = vld [vmem:[#allocation28_spill] sm:$0xff] }
 0x355   : > { %v2360_v47 = vrot.slane %v2359_v2, 1  ;;  %v2488_v39 = vrot.slane %v2487_v40, 2  ;;  %v2499_v63 = vadd.f32 %v2498_v49, %v2412_v11  ;;  %v2505_v29 = vadd.f32 %v2504_v61, %v2413_v46 }
 0x356   : > { %v2343_v36 = vadd.f32 %v2342_v1, %v2341_v56  ;;  %v2349_v10 = vadd.f32 %v2348_v32, %v2347_v53  ;;  %v2355_v42 = vadd.f32 %v2354_v51, %v2353_v60  ;;  %v2494_v25 = vrot.slane %v2493_v58, 2 }
 0x357   : > { %v2361_v23 = vadd.f32 %v2360_v47, %v2359_v2  ;;  %v2489_v43 = vadd.f32 %v2488_v39, %v2487_v40  ;;  %v2500_v54 = vrot.slane %v2499_v63, 2  ;;  %v2506_v8 = vrot.slane %v2505_v29, 2 }
 0x358   : > { %v2390_v20 = vsel %vm899_vm3, %v2343_v36, %v11094_v52  ;;  %v2495_v35 = vadd.f32 %v2494_v25, %v2493_v58  ;;  %vm2511_vm13 = vcmp.ge.s32.totalorder %v8618_v48, 11  ;;  %v2559_v37 = vmul.f32 %v11095_v55, %v11050_v41 }
 0x359   : > { %v2391_v11 = vsel %vm901_vm4, %v2349_v10, %v2390_v20  ;;  %v2490_v13 = vrot.slane %v2489_v43, 1  ;;  %v2501_v46 = vadd.f32 %v2500_v54, %v2499_v63  ;;  %v2507_v30 = vadd.f32 %v2506_v8, %v2505_v29  ;;  %v11096_v63 = vld [vmem:[#allocation54_spill] sm:$0xff] }
 0x35a   : > { %v2392_v56 = vsel %vm903_vm5, %v2355_v42, %v2391_v11  ;;  %v2496_v53 = vrot.slane %v2495_v35, 1  ;;  %v2561_v60 = vmul.f32 %v11049_v12, %v11095_v55  ;;  %v2640_v7 = vrot.slane %v2559_v37, 4 }
 0x35b   : > { %v2393_v2 = vsel %vm905_vm6, %v2361_v23, %v2392_v56  ;;  %v2491_v25 = vadd.f32 %v2490_v13, %v2489_v43  ;;  %v2502_v40 = vrot.slane %v2501_v46, 1  ;;  %v2508_v49 = vrot.slane %v2507_v30, 1  ;;  %v11097_v43 = vld [vmem:[#allocation32_spill] sm:$0xff] }
 0x35c   : > { %v8930_v61 = vsel %vm2363_vm12, %v2393_v2, -1e+30  ;;  %v2497_v1 = vadd.f32 %v2496_v53, %v2495_v35  ;;  %v2641_v32 = vadd.f32 %v2640_v7, %v2559_v37  ;;  %v2652_v51 = vrot.slane %v2561_v60, 4 }
 0x35d   : > { %v3155_v58 = vmax.f32 %v3153_v27, %v8930_v61  ;;  %v2503_v47 = vadd.f32 %v2502_v40, %v2501_v46  ;;  %v2509_v39 = vadd.f32 %v2508_v49, %v2507_v30  ;;  %v2538_v29 = vsel %vm899_vm3, %v2491_v25, %v11096_v63 }
 0x35e   : > { %v2539_v36 = vsel %vm901_vm4, %v2497_v1, %v2538_v29  ;;  %v2642_v10 = vrot.slane %v2641_v32, 2  ;;  %v2653_v42 = vadd.f32 %v2652_v51, %v2561_v60  ;;  %vm2659_vm14 = vcmp.ge.s32.totalorder %v8618_v48, 12 }
 0x35f   : > { %v2540_v23 = vsel %vm903_vm5, %v2503_v47, %v2539_v36  ;;  %v2702_v54 = vmul.f32 %v11097_v43, %v11070_v28  ;;  %v2703_v8 = vmul.f32 %v11097_v43, %v11072_v14  ;;  %v2704_v27 = vmul.f32 %v11065_v59, %v11097_v43 }
 0x360   : > { %v2541_v52 = vsel %vm905_vm6, %v2509_v39, %v2540_v23  ;;  %v2643_v20 = vadd.f32 %v2642_v10, %v2641_v32  ;;  %v2654_v35 = vrot.slane %v2653_v42, 2  ;;  %v2705_v55 = vmul.f32 %v11058_v18, %v11097_v43 }
 0x361   : > { %v8949_v37 = vsel %vm2511_vm13, %v2541_v52, -1e+30  ;;  %v2706_v28 = vmul.f32 %v11097_v43, %v11043_v45  ;;  %v2707_v14 = vmul.f32 %v11097_v43, %v11050_v41  ;;  %v2708_v59 = vmul.f32 %v11042_v38, %v11097_v43 }
 0x362   : > { %v3157_v11 = vmax.f32 %v3155_v58, %v8949_v37  ;;  %v2644_v13 = vrot.slane %v2643_v20, 1  ;;  %v2655_v46 = vadd.f32 %v2654_v35, %v2653_v42  ;;  %v2709_v18 = vmul.f32 %v11049_v12, %v11097_v43 }
 0x363   : > { %v2758_v30 = vrot.slane %v2702_v54, 4  ;;  %v2764_v56 = vrot.slane %v2703_v8, 4  ;;  %v2770_v53 = vrot.slane %v2704_v27, 4  ;;  %v2776_v60 = vrot.slane %v2705_v55, 4 }
 0x364   : > { %v2645_v7 = vadd.f32 %v2644_v13, %v2643_v20  ;;  %v2656_v2 = vrot.slane %v2655_v46, 1  ;;  %v2782_v25 = vrot.slane %v2706_v28, 4  ;;  %v2788_v40 = vrot.slane %v2707_v14, 4 }
 0x365   : > { %v2759_v49 = vadd.f32 %v2758_v30, %v2702_v54  ;;  %v2765_v1 = vadd.f32 %v2764_v56, %v2703_v8  ;;  %v2771_v32 = vadd.f32 %v2770_v53, %v2704_v27  ;;  %v2777_v51 = vadd.f32 %v2776_v60, %v2705_v55 }
 0x366   : > { %v2657_v38 = vadd.f32 %v2656_v2, %v2655_v46  ;;  %v2687_v58 = vsel %vm901_vm4, %v2645_v7, %v8578_v5  ;;  %v2783_v47 = vadd.f32 %v2782_v25, %v2706_v28  ;;  %v2789_v39 = vadd.f32 %v2788_v40, %v2707_v14 }
 0x367   : > { %v2688_v63 = vsel %vm903_vm5, %v8593_v0, %v2687_v58  ;;  %v2760_v29 = vrot.slane %v2759_v49, 2  ;;  %v2766_v36 = vrot.slane %v2765_v1, 2  ;;  %v2772_v10 = vrot.slane %v2771_v32, 2 }
 0x368   : > { %v2689_v42 = vsel %vm905_vm6, %v2657_v38, %v2688_v63  ;;  %v2778_v23 = vrot.slane %v2777_v51, 2  ;;  %v2784_v43 = vrot.slane %v2783_v47, 2  ;;  %v2790_v54 = vrot.slane %v2789_v39, 2 }
 0x369   : > { %v8967_v8 = vsel %vm2659_vm14, %v2689_v42, -1e+30  ;;  %v2761_v27 = vadd.f32 %v2760_v29, %v2759_v49  ;;  %v2767_v52 = vadd.f32 %v2766_v36, %v2765_v1  ;;  %v2773_v5 = vadd.f32 %v2772_v10, %v2771_v32 }
 0x36a   : > { %v8970_v20 = vmax.f32 %v3157_v11, %v8967_v8  ;;  %v2779_v35 = vadd.f32 %v2778_v23, %v2777_v51  ;;  %v2785_v0 = vadd.f32 %v2784_v43, %v2783_v47  ;;  %v2791_v55 = vadd.f32 %v2790_v54, %v2789_v39  ;;  %v11098_v47 = vld [vmem:[#allocation26_spill] sm:$0xff] }
 0x36b   : > { %v2762_v28 = vrot.slane %v2761_v27, 1  ;;  %v2768_v14 = vrot.slane %v2767_v52, 1  ;;  %v2774_v13 = vrot.slane %v2773_v5, 1  ;;  %v2794_v46 = vrot.slane %v2708_v59, 4 }
 0x36c   : > { %v2780_v30 = vrot.slane %v2779_v35, 1  ;;  %v2786_v56 = vrot.slane %v2785_v0, 1  ;;  %v2792_v53 = vrot.slane %v2791_v55, 1  ;;  %v2800_v60 = vrot.slane %v2709_v18, 4 }
 0x36d   : > { %v2763_v7 = vadd.f32 %v2762_v28, %v2761_v27  ;;  %v2769_v2 = vadd.f32 %v2768_v14, %v2767_v52  ;;  %v2775_v25 = vadd.f32 %v2774_v13, %v2773_v5  ;;  %v2795_v40 = vadd.f32 %v2794_v46, %v2708_v59 }
 0x36e   : > { %v3094_v49 = vrot.slane %v8595_v50, 1  ;;  %v2781_v1 = vadd.f32 %v2780_v30, %v2779_v35  ;;  %v2787_v11 = vadd.f32 %v2786_v56, %v2785_v0  ;;  %v2801_v32 = vadd.f32 %v2800_v60, %v2709_v18 }
 0x36f   : > { %v2793_v51 = vadd.f32 %v2792_v53, %v2791_v55  ;;  %v2796_v38 = vrot.slane %v2795_v40, 2  ;;  %v2831_v58 = vsel %vm893_vm0, %v2769_v2, %v2763_v7  ;;  %v2854_v39 = vmul.f32 %v11098_v47, %v11043_v45  ;;  %v11099_v7 = vld [vmem:[#allocation12_spill] sm:$0xff] }
 0x370   : > { %v2802_v63 = vrot.slane %v2801_v32, 2  ;;  %v2832_v29 = vsel %vm895_vm1, %v2775_v25, %v2831_v58  ;;  %v2855_v36 = vmul.f32 %v11098_v47, %v11050_v41  ;;  %v2857_v59 = vmul.f32 %v11098_v47, %v11049_v12 }
 0x371   : > { %v3100_v10 = vrot.slane %v8879_v31, 1  ;;  %v2797_v42 = vadd.f32 %v2796_v38, %v2795_v40  ;;  %v2833_v18 = vsel %vm897_vm2, %v2781_v1, %v2832_v29  ;;  %v2930_v23 = vrot.slane %v2854_v39, 4  ;;  %v11100_v40 = vld [vmem:[#allocation14_spill] sm:$0xff] }
 0x372   : > { %v2803_v43 = vadd.f32 %v2802_v63, %v2801_v32  ;;  %v2834_v54 = vsel %vm899_vm3, %v2787_v11, %v2833_v18  ;;  %v2936_v27 = vrot.slane %v2855_v36, 4  ;;  %v2948_v45 = vrot.slane %v2857_v59, 4 }
 0x373   : > { %v2798_v52 = vrot.slane %v2797_v42, 1  ;;  %v2835_v5 = vsel %vm901_vm4, %v2793_v51, %v2834_v54  ;;  %v2931_v35 = vadd.f32 %v2930_v23, %v2854_v39  ;;  %v3003_v0 = vmul.f32 %v11048_v19, %v11050_v41  ;;  %v11102_v23 = vld [vmem:[#allocation48_spill] sm:$0xff]  ;;  %v11103_v54 = vld [vmem:[#allocation43_spill] sm:$0xff] }
 0x374   : > { %v2804_v55 = vrot.slane %v2803_v43, 1  ;;  %vm2807_vm15 = vcmp.ge.s32.totalorder %v8618_v48, 13  ;;  %v2937_v12 = vadd.f32 %v2936_v27, %v2855_v36  ;;  %v2949_v28 = vadd.f32 %v2948_v45, %v2857_v59 }
 0x375   : > { %v2799_v14 = vadd.f32 %v2798_v52, %v2797_v42  ;;  %v2932_v13 = vrot.slane %v2931_v35, 2  ;;  %v3084_v46 = vrot.slane %v3003_v0, 4  ;;  %v3139_v30 = vmax.f32 %v8647_v3, %v8674_v16  ;;  %v11105_v52 = vld [vmem:[#allocation49_spill] sm:$0xff] }
 0x376   : > { %v2805_v56 = vadd.f32 %v2804_v55, %v2803_v43  ;;  %v2938_v53 = vrot.slane %v2937_v12, 2  ;;  %v2950_v60 = vrot.slane %v2949_v28, 2  ;;  %v1516_v2 = vmul.f32 %v11099_v7, %v11064_v26  ;;  %v11108_v55 = vld [vmem:[#allocation40_spill] sm:$0xff] }
 0x377   : > { %v2836_v25 = vsel %vm903_vm5, %v2799_v14, %v2835_v5  ;;  %v2933_v19 = vadd.f32 %v2932_v13, %v2931_v35  ;;  %v3085_v41 = vadd.f32 %v3084_v46, %v3003_v0  ;;  %v1517_v1 = vmul.f32 %v11100_v40, %v11064_v26  ;;  %v11106_v35 = vld [vmem:[#allocation44_spill] sm:$0xff] }
 0x378   : > { %v11101_v11 = vrot.slane %v8581_v17, 1  ;;  %v2837_v51 = vsel %vm905_vm6, %v2805_v56, %v2836_v25  ;;  %v2939_v38 = vadd.f32 %v2938_v53, %v2937_v12  ;;  %v2951_v58 = vadd.f32 %v2950_v60, %v2949_v28  ;;  %v11109_v60 = vld [vmem:[#allocation39_spill] sm:$0xff] }
 0x379   : > { %v3095_v47 = vadd.f32 %v3094_v49, %v8595_v50  ;;  %v9002_v39 = vsel %vm2807_vm15, %v2837_v51, -1e+30  ;;  %v2934_v63 = vrot.slane %v2933_v19, 1  ;;  %v3086_v29 = vrot.slane %v3085_v41, 2 }
 0x37a   : > { %v2947_v32 = vadd.f32 %v11101_v11, %v8581_v17  ;;  %v3101_v36 = vadd.f32 %v3100_v10, %v8879_v31  ;;  %v3161_v26 = vmax.f32 %v8970_v20, %v9002_v39  ;;  %v2940_v59 = vrot.slane %v2939_v38, 1  ;;  %v11107_v31 = vld [vmem:[#allocation27_spill] sm:$0xff] }
 0x37b   : > { %v2952_v42 = vrot.slane %v2951_v58, 1  ;;  %v2935_v17 = vadd.f32 %v2934_v63, %v2933_v19  ;;  %v3087_v18 = vadd.f32 %v3086_v29, %v3085_v41  ;;  %v1530_v43 = vrot.slane %v11102_v23, 1 }
 0x37c   : > { %v11104_v50 = vrot.slane %v11103_v54, 2  ;;  %v2941_v27 = vadd.f32 %v2940_v59, %v2939_v38  ;;  %v1536_v5 = vrot.slane %v11105_v52, 1  ;;  %v1546_v0 = vrot.slane %v11106_v35, 2 }
 0x37d   : > { %v2953_v45 = vadd.f32 %v2952_v42, %v2951_v58  ;;  %vm2955_vm7 = vcmp.ge.s32.totalorder %v8618_v48, 14  ;;  %v2982_v20 = vsel %vm899_vm3, %v2935_v17, %v11107_v31  ;;  %v3088_v10 = vrot.slane %v3087_v18, 1 }
 0x37e   : > { %v1541_v49 = vadd.f32 %v11104_v50, %v11103_v54  ;;  %v1556_v12 = vrot.slane %v11108_v55, 4  ;;  %v2983_v28 = vsel %vm901_vm4, %v2941_v27, %v2982_v20  ;;  %v1547_v13 = vadd.f32 %v1546_v0, %v11106_v35 }
 0x37f   : > { %v1562_v46 = vrot.slane %v1516_v2, 4  ;;  %v2984_v56 = vsel %vm903_vm5, %v2947_v32, %v2983_v28  ;;  %v3089_v53 = vadd.f32 %v3088_v10, %v3087_v18  ;;  %v11110_v7 = vrot.slane %v11109_v60, 4 }
 0x380   : > { %v1542_v14 = vrot.slane %v1541_v49, 1  ;;  %v1557_v19 = vadd.f32 %v1556_v12, %v11108_v55  ;;  %v2985_v41 = vsel %vm905_vm6, %v2953_v45, %v2984_v56  ;;  %v1531_v40 = vadd.f32 %v1530_v43, %v11102_v23 }
 0x381   : > { %v1551_v25 = vadd.f32 %v11110_v7, %v11109_v60  ;;  %v1537_v11 = vadd.f32 %v1536_v5, %v11105_v52  ;;  %v1563_v51 = vadd.f32 %v1562_v46, %v1516_v2  ;;  %v9029_v38 = vsel %vm2955_vm7, %v2985_v41, -1e+30  ;;  %v11114_v7 = vld [vmem:[#allocation37_spill] sm:$0xff]  ;;  %v11115_v41 = vld [vmem:[#allocation42_spill] sm:$0xff] }
 0x382   : > { %vm3103_vm8 = vcmp.ge.s32.totalorder %v8618_v48, 15  ;;  %v3131_v32 = vsel %vm901_vm4, %v3089_v53, %v8615_v6  ;;  %v1568_v58 = vrot.slane %v1517_v1, 4  ;;  %v3163_v63 = vmax.f32 %v3161_v26, %v9029_v38  ;;  %v11113_v53 = vld [vmem:[#allocation41_spill] sm:$0xff] }
 0x383   : > { %v3132_v29 = vsel %vm903_vm5, %v3095_v47, %v3131_v32  ;;  %v1543_v59 = vadd.f32 %v1542_v14, %v1541_v49  ;;  %v1548_v42 = vrot.slane %v1547_v13, 1  ;;  %v1552_v18 = vrot.slane %v1551_v25, 2 }
 0x384   : > { %v3133_v17 = vsel %vm905_vm6, %v3101_v36, %v3132_v29  ;;  %v1558_v2 = vrot.slane %v1557_v19, 2  ;;  %v1564_v43 = vrot.slane %v1563_v51, 2  ;;  %v1569_v54 = vadd.f32 %v1568_v58, %v1517_v1 }
 0x385   : > { %v9037_v23 = vsel %vm3103_vm8, %v3133_v17, -1e+30  ;;  %v1640_v48 = vsel %vm893_vm0, %v1537_v11, %v1531_v40  ;;  %v1549_v6 = vadd.f32 %v1548_v42, %v1547_v13  ;;  %v1553_v26 = vadd.f32 %v1552_v18, %v1551_v25 }
 0x386   : > { %11111 = vst [vmem:[#allocation15_spill] sm:$0xff] %v9037_v23  ;;  %v3165_v50 = vmax.f32 %v3163_v63, %v9037_v23  ;;  %v1641_v27 = vsel %vm895_vm1, %v1543_v59, %v1640_v48  ;;  %v1559_v36 = vadd.f32 %v1558_v2, %v1557_v19  ;;  %v1565_v49 = vadd.f32 %v1564_v43, %v1563_v51 }
 0x387   : > { %v1570_v45 = vrot.slane %v1569_v54, 2  ;;  %v1642_v52 = vsel %vm897_vm2, %v1549_v6, %v1641_v27  ;;  %v1554_v10 = vrot.slane %v1553_v26, 1  ;;  %vm1622_vm0 = vcmp.ge.s32.totalorder %v8061_v4, 5 }
 0x388   : > { %v9045_v47 = vmax.f32 %v3165_v50, %v3139_v30  ;;  %v1566_v55 = vrot.slane %v1565_v49, 1  ;;  %vm1770_vm1 = vcmp.ge.s32.totalorder %v8061_v4, 6  ;;  %vm1918_vm2 = vcmp.ge.s32.totalorder %v8061_v4, 7 }
 0x389   : > { %v1571_v12 = vadd.f32 %v1570_v45, %v1569_v54  ;;  %v9090_v25 = vsel %vm1770_vm1, %v11114_v7, -1e+30  ;;  %v9094_v40 = vsel %vm1918_vm2, %v11115_v41, -1e+30  ;;  %v7778_v50 = vmov 1966171168  }
 0x38a   : > { %11112 = vst [vmem:[#allocation20_spill] sm:$0xff] %v9045_v47  ;;  %v3169_v1 = vsub.f32 %v8647_v3, %v9045_v47  ;;  %v3389_v5 = vsub.f32 %v8674_v16, %v9045_v47  ;;  %v3609_v35 = vsub.f32 %v8700_v24, %v9045_v47  ;;  %v3829_v0 = vsub.f32 %v8727_v62, %v9045_v47 }
 0x38b   : > { %v4049_v30 = vsub.f32 %v8754_v34, %v9045_v47  ;;  %v4269_v31 = vsub.f32 %v8806_v21, %v9045_v47  ;;  %v4489_v20 = vsub.f32 %v8841_v9, %v9045_v47  ;;  %v4709_v3 = vsub.f32 %v8868_v44, %v9045_v47 }
 0x38c   : > { %v4929_v16 = vsub.f32 %v8890_v33, %v9045_v47  ;;  %v5149_v24 = vsub.f32 %v8911_v15, %v9045_v47  ;;  %v1560_v62 = vrot.slane %v1559_v36, 1  ;;  %v5369_v34 = vsub.f32 %v8930_v61, %v9045_v47 }
 0x38d   : > { %v5589_v21 = vsub.f32 %v8949_v37, %v9045_v47  ;;  %v5809_v9 = vsub.f32 %v8967_v8, %v9045_v47  ;;  %v6029_v44 = vsub.f32 %v9002_v39, %v9045_v47  ;;  %v6249_v33 = vsub.f32 %v9029_v38, %v9045_v47 }
 0x38e   : > { %v1555_v15 = vadd.f32 %v1554_v10, %v1553_v26  ;;  %v1561_v28 = vadd.f32 %v1560_v62, %v1559_v36  ;;  %v1567_v14 = vadd.f32 %v1566_v55, %v1565_v49  ;;  %v1572_v13 = vrot.slane %v1571_v12, 1  ;;  %v11123_v55 = vld [vmem:[#allocation34_spill] sm:$0xff] }
 0x38f   : > { %v3172_v11 = vmul.f32 1.442695, %v3169_v1  ;;  %v3392_v32 = vmul.f32 1.442695, %v3389_v5  ;;  %v3612_v58 = vmul.f32 1.442695, %v3609_v35  ;;  %v3180_v6 = vunpack.c.l.s4 %v7778_v50 }
 0x390   : > { %v1643_v61 = vsel %vm899_vm3, %v1555_v15, %v1642_v52  ;;  %v1573_v37 = vadd.f32 %v1572_v13, %v1571_v12  ;;  %v3832_v29 = vmul.f32 1.442695, %v3829_v0  ;;  %v4052_v59 = vmul.f32 1.442695, %v4049_v30  ;;  %v11125_v15 = vld [vmem:[#allocation36_spill] sm:$0xff]  ;;  %v11127_v13 = vld [vmem:[#allocation38_spill] sm:$0xff] }
 0x391   : > { %v1644_v46 = vsel %vm901_vm4, %v1561_v28, %v1643_v61  ;;  %7559 = vpow2.f32 %v3172_v11  ;;  %v4272_v17 = vmul.f32 1.442695, %v4269_v31  ;;  %v4492_v18 = vmul.f32 1.442695, %v4489_v20 }
 0x392   : > { %v1645_v56 = vsel %vm903_vm5, %v1567_v14, %v1644_v46  ;;  %7561 = vpow2.f32 %v3392_v32  ;;  %v4712_v43 = vmul.f32 1.442695, %v4709_v3  ;;  %v4932_v54 = vmul.f32 1.442695, %v4929_v16 }
 0x393   : > { %v1646_v8 = vsel %vm905_vm6, %v1573_v37, %v1645_v56  ;;  %7563 = vpow2.f32 %v3612_v58  ;;  %v5152_v27 = vmul.f32 1.442695, %v5149_v24  ;;  %v5372_v26 = vmul.f32 1.442695, %v5369_v34  ;;  %v11122_v34 = vld [vmem:[#allocation33_spill] sm:$0xff] }
 0x394   : > { %v9084_v39 = vsel %vm1622_vm0, %v1646_v8, -1e+30  ;;  %7565 = vpow2.f32 %v3832_v29  ;;  %v5592_v49 = vmul.f32 1.442695, %v5589_v21  ;;  %v5812_v45 = vmul.f32 1.442695, %v5809_v9 }
 0x395   : > { %v3146_v60 = vmax.f32 %v11113_v53, %v9084_v39  ;;  %7567 = vpow2.f32 %v4052_v59  ;;  %v3181_v1 = vunpack.c.0.s8 %v3180_v6  ;;  %v6032_v5 = vmul.f32 1.442695, %v6029_v44  ;;  %v11124_v9 = vld [vmem:[#allocation35_spill] sm:$0xff] }
 0x396   : > { %7569 = vpow2.f32 %v4272_v17  ;;  %v9109_v24 = vsub.s32 0, %v8061_v4  ;;  %v6252_v10 = vmul.f32 1.442695, %v6249_v33 }
 0x397   : > { %v3148_v19 = vmax.f32 %v3146_v60, %v9090_v25  ;;  %7571 = vpow2.f32 %v4492_v18  ;;  %v9106_v16 = vsub.s32 %v3181_v1, %v8061_v4 }
 0x398   : > { %7573 = vpow2.f32 %v4712_v43 }
 0x399   : > { %v3150_v51 = vmax.f32 %v3148_v19, %v9094_v40  ;;  %7575 = vpow2.f32 %v4932_v54  ;;  %11120 = vst [vmem:[#allocation22_spill] sm:$0xff] %v9106_v16 }
 0x39a   : > { %7577 = vpow2.f32 %v5152_v27 }
 0x39b   : > { %v3152_v63 = vmax.f32 %v3150_v51, -1e+30  ;;  %v9097_v35 = vpop.eup %7559  ;;  %7579 = vpow2.f32 %v5372_v26 }
 0x39c   : > { %11116 = vst [vmem:[#allocation24_spill] sm:$0xff] %v9097_v35  ;;  %v9099_v30 = vpop.eup %7561  ;;  %7581 = vpow2.f32 %v5592_v49  ;;  %v9138_v32 = vrot.slane %v9097_v35, %v9106_v16 }
 0x39d   : > { %v3154_v42 = vmax.f32 %v3152_v63, -1e+30  ;;  %11117 = vst [vmem:[#allocation53_spill] sm:$0xff] %v9099_v30  ;;  %v9101_v31 = vpop.eup %7563  ;;  %7583 = vpow2.f32 %v5812_v45  ;;  %v3395_v58 = vadd.f32 %v9099_v30, %v9097_v35  ;;  %v9144_v63 = vrot.slane %v9099_v30, %v9106_v16 }
 0x39e   : > { %11118 = vst [vmem:[#allocation18_spill] sm:$0xff] %v9101_v31  ;;  %v9103_v3 = vpop.eup %7565  ;;  %7585 = vpow2.f32 %v6032_v5  ;;  %11132 = vst [vmem:[#allocation14_spill] sm:$0xff] %v9138_v32 }
 0x39f   : > { %v3156_v2 = vmax.f32 %v3154_v42, -1e+30  ;;  %11119 = vst [vmem:[#allocation25_spill] sm:$0xff] %v9103_v3  ;;  %v9114_v62 = vpop.eup %7567  ;;  %7587 = vpow2.f32 %v6252_v10  ;;  %11133 = vst [vmem:[#allocation48_spill] sm:$0xff] %v9144_v63  ;;  %v9150_v42 = vrot.slane %v9101_v31, %v9106_v16  ;;  %v9154_v17 = vrot.slane %v9103_v3, %v9106_v16 }
 0x3a0   : > { %11121 = vst [vmem:[#allocation52_spill] sm:$0xff] %v9114_v62  ;;  %v9120_v14 = vpop.eup %7569  ;;  %v9164_v43 = vrot.slane %v9144_v63, %v9106_v16  ;;  %v3615_v54 = vadd.f32 %v9101_v31, %v3395_v58  ;;  %v9179_v27 = vrot.slane %v9114_v62, %v9106_v16 }
 0x3a1   : > { %v3158_v48 = vmax.f32 %v3156_v2, -1e+30  ;;  %11126 = vst [vmem:[#allocation28_spill] sm:$0xff] %v9120_v14  ;;  %v9126_v33 = vpop.eup %7571  ;;  %11135 = vst [vmem:[#allocation49_spill] sm:$0xff] %v9150_v42  ;;  %v9160_v2 = vrot.slane %v9138_v32, %v9106_v16  ;;  %v9171_v50 = vrot.slane %v9150_v42, %v9106_v16  ;;  %v9175_v6 = vrot.slane %v9154_v17, %v9106_v16 }
 0x3a2   : > { %11128 = vst [vmem:[#allocation54_spill] sm:$0xff] %v9126_v33  ;;  %v9130_v60 = vpop.eup %7573  ;;  %11136 = vst [vmem:[#allocation44_spill] sm:$0xff] %v9154_v17  ;;  %v3531_v49 = vrot.slane %v9164_v43, %v9109_v24  ;;  %v3835_v45 = vadd.f32 %v9103_v3, %v3615_v54  ;;  %v9194_v5 = vrot.slane %v9179_v27, %v9106_v16 }
 0x3a3   : > { %v3160_v36 = vmax.f32 %v3158_v48, -1e+30  ;;  %11129 = vst [vmem:[#allocation32_spill] sm:$0xff] %v9130_v60  ;;  %v9132_v11 = vpop.eup %7575  ;;  %11138 = vst [vmem:[#allocation40_spill] sm:$0xff] %v9160_v2  ;;  %v3971_v1 = vrot.slane %v9175_v6, %v9109_v24 }
 0x3a4   : > { %11130 = vst [vmem:[#allocation26_spill] sm:$0xff] %v9132_v11  ;;  %v9134_v51 = vpop.eup %7577  ;;  %11139 = vst [vmem:[#allocation39_spill] sm:$0xff] %v9164_v43  ;;  %v4055_v10 = vadd.f32 %v9114_v62, %v3835_v45 }
 0x3a5   : > { %v3162_v52 = vmax.f32 %v3160_v36, -1e+30  ;;  %11131 = vst [vmem:[#allocation12_spill] sm:$0xff] %v9134_v51  ;;  %v9146_v29 = vpop.eup %7579  ;;  %11141 = vst [vmem:[#allocation37_spill] sm:$0xff] %v9171_v50  ;;  %v3311_v36 = vrot.slane %v9160_v2, %v9109_v24 }
 0x3a6   : > { %11134 = vst [vmem:[#allocation43_spill] sm:$0xff] %v9146_v29  ;;  %v9156_v18 = vpop.eup %7581  ;;  %11142 = vst [vmem:[#allocation42_spill] sm:$0xff] %v9175_v6 }
 0x3a7   : > { %v3164_v0 = vmax.f32 %v3162_v52, -1e+30  ;;  %11137 = vst [vmem:[#allocation27_spill] sm:$0xff] %v9156_v18  ;;  %v9167_v48 = vpop.eup %7583  ;;  %11143 = vst [vmem:[#allocation33_spill] sm:$0xff] %v9179_v27  ;;  %v3751_v52 = vrot.slane %v9171_v50, %v9109_v24  ;;  %v11167_v18 = vld [vmem:[#allocation46_spill] sm:$0xff] }
 0x3a8   : > { %11140 = vst [vmem:[#allocation41_spill] sm:$0xff] %v9167_v48  ;;  %v9181_v26 = vpop.eup %7585  ;;  %11145 = vst [vmem:[#allocation35_spill] sm:$0xff] %v9194_v5 }
 0x3a9   : > { %v3166_v20 = vmax.f32 %v3164_v0, -1e+30  ;;  %11144 = vst [vmem:[#allocation34_spill] sm:$0xff] %v9181_v26  ;;  %v3364_v0 = vmul.f32 %v3311_v36, %v8761_v57 }
 0x3ab   : > { %v3168_v21 = vsub.f32 %v11122_v34, %v3166_v20  ;;  %v3388_v12 = vsub.f32 %v11123_v55, %v3166_v20  ;;  %v3608_v44 = vsub.f32 %v11124_v9, %v3166_v20  ;;  %v3828_v28 = vsub.f32 %v11125_v15, %v3166_v20  ;;  %v11146_v34 = vld [vmem:[#allocation30_spill] sm:$0xff] }
 0x3ac   : > { %v4048_v4 = vsub.f32 %v11127_v13, %v3166_v20  ;;  %v4268_v61 = vsub.f32 %v9084_v39, %v3166_v20  ;;  %v4488_v46 = vsub.f32 %v9090_v25, %v3166_v20  ;;  %v4708_v38 = vsub.f32 %v9094_v40, %v3166_v20 }
 0x3ad   : > { %v3170_v37 = vmul.f32 1.442695, %v3168_v21  ;;  %v3390_v56 = vmul.f32 1.442695, %v3388_v12  ;;  %v3610_v8 = vmul.f32 1.442695, %v3608_v44  ;;  %v3804_v21 = vmul.f32 %v11146_v34, %v3751_v52  ;;  %v9202_v12 = vpop.eup %7587 }
 0x3ae   : > { %v3830_v7 = vmul.f32 1.442695, %v3828_v28  ;;  %v4050_v19 = vmul.f32 1.442695, %v4048_v4  ;;  %v4270_v41 = vmul.f32 1.442695, %v4268_v61  ;;  %v4191_v55 = vrot.slane %v9194_v5, %v9109_v24 }
 0x3af   : > { %7589 = vpow2.f32 %v3170_v37  ;;  %v4490_v39 = vmul.f32 1.442695, %v4488_v46  ;;  %v4710_v25 = vmul.f32 1.442695, %v4708_v38  ;;  %v4928_v40 = vsub.f32 -1e+30, %v3166_v20 }
 0x3b0   : > { %7591 = vpow2.f32 %v3390_v56  ;;  %v3584_v20 = vmul.f32 %v3531_v49, %v8768_v22  ;;  %11147 = vst [vmem:[#allocation36_spill] sm:$0xff] %v9202_v12  ;;  %v11148_v44 = vld [vmem:[#allocation29_spill] sm:$0xff]  ;;  %v4275_v28 = vadd.f32 %v9120_v14, %v4055_v10  ;;  %v9210_v13 = vrot.slane %v9120_v14, %v9106_v16 }
 0x3b1   : > { %7593 = vpow2.f32 %v3610_v8  ;;  %v4930_v59 = vmul.f32 1.442695, %v4928_v40  ;;  %v9205_v15 = vmul.f32 %v11148_v44, %v3971_v1  ;;  %v11151_v61 = vld [vmem:[#allocation21_spill] sm:$0xff]  ;;  %v9219_v38 = vrot.slane %v9126_v33, %v9106_v16 }
 0x3b2   : > { %7595 = vpow2.f32 %v3830_v7  ;;  %v3600_v9 = vadd.f32 %v3584_v20, %v3364_v0  ;;  %11150 = vst [vmem:[#allocation30_spill] sm:$0xff] %v9210_v13  ;;  %v9215_v46 = vmul.f32 %v4191_v55, %v11151_v61  ;;  %v9223_v37 = vrot.slane %v9130_v60, %v9106_v16  ;;  %v11171_v60 = vld [vmem:[#allocation17_spill] sm:$0xff] }
 0x3b3   : > { %7597 = vpow2.f32 %v4050_v19  ;;  %11149 = vst [vmem:[#allocation38_spill] sm:$0xff] %v9205_v15  ;;  %11153 = vst [vmem:[#allocation21_spill] sm:$0xff] %v9219_v38  ;;  %v9227_v56 = vrot.slane %v9132_v11, %v9106_v16  ;;  %v9251_v54 = vrot.slane %v9210_v13, %v9106_v16  ;;  %v9261_v1 = vadd.f32 %v9126_v33, %v4275_v28  ;;  %v11175_v15 = vld [vmem:[#allocation13_spill] sm:$0xff] }
 0x3b4   : > { %7599 = vpow2.f32 %v4270_v41  ;;  %11152 = vst [vmem:[#allocation29_spill] sm:$0xff] %v9215_v46  ;;  %11154 = vst [vmem:[#allocation55_spill] sm:$0xff] %v9223_v37  ;;  %v9235_v41 = vadd.f32 %v3804_v21, %v3600_v9 }
 0x3b5   : > { %7601 = vpow2.f32 %v4490_v39  ;;  %11155 = vst [vmem:[#allocation56_spill] sm:$0xff] %v9227_v56  ;;  %v9239_v39 = vrot.slane %v9134_v51, %v9106_v16  ;;  %11158 = vst [vmem:[#allocation59_spill] sm:$0xff] %v9251_v54  ;;  %v11170_v56 = vld [vmem:[#allocation45_spill] sm:$0xff] }
 0x3b6   : > { %7603 = vpow2.f32 %v4710_v25  ;;  %11156 = vst [vmem:[#allocation57_spill] sm:$0xff] %v9235_v41  ;;  %11160 = vst [vmem:[#allocation61_spill] sm:$0xff] %v9261_v1 }
 0x3b7   : > { %7605 = vpow2.f32 %v4930_v59  ;;  %11157 = vst [vmem:[#allocation58_spill] sm:$0xff] %v9239_v39 }
 0x3b9   : > { %v9212_v4 = vpop.eup %7589 }
 0x3ba   : > { %v9229_v8 = vpop.eup %7591  ;;  %v3185_v7 = vrot.slane %v9212_v4, %v9106_v16 }
 0x3bb   : > { %v9241_v25 = vpop.eup %7593  ;;  %v3394_v40 = vadd.f32 %v9229_v8, %v9212_v4  ;;  %v3405_v58 = vrot.slane %v9229_v8, %v9106_v16 }
 0x3bc   : > { %v9253_v36 = vpop.eup %7595  ;;  %v9256_v49 = vrot.slane %v3185_v7, %v9106_v16  ;;  %v3625_v45 = vrot.slane %v9241_v25, %v9106_v16  ;;  %v3193_v52 = vcombine.high %v3185_v7, %v3185_v7 }
 0x3bd   : > { %11159 = vst [vmem:[#allocation60_spill] sm:$0xff] %v9253_v36  ;;  %v9263_v0 = vpop.eup %7597  ;;  %v9266_v20 = vrot.slane %v3405_v58, %v9106_v16  ;;  %v3614_v10 = vadd.f32 %v9241_v25, %v3394_v40  ;;  %v9271_v21 = vrot.slane %v9253_v36, %v9106_v16  ;;  %v3413_v55 = vcombine.high %v3405_v58, %v3405_v58 }
 0x3be   : > { %11161 = vst [vmem:[#allocation62_spill] sm:$0xff] %v9263_v0  ;;  %v9273_v9 = vpop.eup %7599  ;;  %v3279_v7 = vrot.slane %v9256_v49, %v9109_v24  ;;  %v9278_v28 = vrot.slane %v3625_v45, %v9106_v16  ;;  %v9282_v53 = vrot.slane %v9263_v0, %v9106_v16  ;;  %v9285_v59 = vrot.slane %v3193_v52, %v9106_v16 }
 0x3bf   : > { %11162 = vst [vmem:[#allocation63_spill] sm:$0xff] %v9273_v9  ;;  %v9287_v40 = vpop.eup %7601  ;;  %v3499_v58 = vrot.slane %v9266_v20, %v9109_v24  ;;  %v3834_v19 = vadd.f32 %v9253_v36, %v3614_v10  ;;  %v9294_v33 = vrot.slane %v9271_v21, %v9106_v16  ;;  %v9298_v14 = vrot.slane %v9273_v9, %v9106_v16 }
 0x3c0   : > { %11163 = vst [vmem:[#allocation64_spill] sm:$0xff] %v9287_v40  ;;  %v9300_v62 = vpop.eup %7603  ;;  %v3356_v52 = vmul.f32 %v3279_v7, %v8761_v57  ;;  %v3719_v3 = vrot.slane %v9278_v28, %v9109_v24  ;;  %v9307_v31 = vrot.slane %v9282_v53, %v9106_v16  ;;  %v9311_v10 = vrot.slane %v9287_v40, %v9106_v16 }
 0x3c1   : > { %11164 = vst [vmem:[#allocation65_spill] sm:$0xff] %v9300_v62  ;;  %v9313_v30 = vpop.eup %7605  ;;  %v3576_v35 = vmul.f32 %v3499_v58, %v8768_v22  ;;  %v3939_v5 = vrot.slane %v9294_v33, %v9109_v24  ;;  %v4054_v7 = vadd.f32 %v9263_v0, %v3834_v19  ;;  %v9321_v6 = vrot.slane %v9298_v14, %v9106_v16 }
 0x3c2   : > { %v3796_v50 = vmul.f32 %v11146_v34, %v3719_v3  ;;  %v4159_v43 = vrot.slane %v9307_v31, %v9109_v24  ;;  %v9328_v2 = vrot.slane %v9311_v10, %v9106_v16  ;;  %v9332_v58 = vrot.slane %v9300_v62, %v9106_v16 }
 0x3c3   : > { %v3592_v13 = vadd.f32 %v3576_v35, %v3356_v52  ;;  %v4016_v19 = vmul.f32 %v11148_v44, %v3939_v5  ;;  %v4274_v27 = vadd.f32 %v9273_v9, %v4054_v7  ;;  %v4379_v17 = vrot.slane %v9321_v6, %v9109_v24  ;;  %v11165_v5 = vld [vmem:[#allocation50_spill] sm:$0xff] }
 0x3c4   : > { %v4236_v3 = vmul.f32 %v4159_v43, %v11151_v61  ;;  %v4599_v42 = vrot.slane %v9328_v2, %v9109_v24  ;;  %v9343_v63 = vrot.slane %v9332_v58, %v9106_v16  ;;  %v9347_v32 = vrot.slane %v9313_v30, %v9106_v16  ;;  %v11166_v43 = vld [vmem:[#allocation31_spill] sm:$0xff] }
 0x3c5   : > { %v3812_v35 = vadd.f32 %v3796_v50, %v3592_v13  ;;  %v4456_v52 = vmul.f32 %v4379_v17, %v11165_v5  ;;  %v4494_v7 = vadd.f32 %v9287_v40, %v4274_v27  ;;  %v3283_v47 = vrot.slane %v9285_v59, %v9109_v24 }
 0x3c6   : > { %v4676_v23 = vmul.f32 %v11166_v43, %v4599_v42  ;;  %v4819_v12 = vrot.slane %v9343_v63, %v9109_v24  ;;  %v9358_v26 = vrot.slane %v9347_v32, %v9106_v16  ;;  %v9361_v48 = vrot.slane %v3413_v55, %v9106_v16 }
 0x3c7   : > { %v4032_v50 = vadd.f32 %v4016_v19, %v3812_v35  ;;  %v4714_v17 = vadd.f32 %v9300_v62, %v4494_v7  ;;  %v3357_v27 = vmul.f32 %v3283_v47, %v8761_v57  ;;  %v3633_v13 = vcombine.high %v3625_v45, %v3625_v45  ;;  %v11168_v45 = vld [vmem:[#allocation16_spill] sm:$0xff]  ;;  %v11169_v35 = vld [vmem:[#allocation47_spill] sm:$0xff] }
 0x3c8   : > { %v4896_v51 = vmul.f32 %v11167_v18, %v4819_v12  ;;  %v5039_v42 = vrot.slane %v9358_v26, %v9109_v24  ;;  %v3503_v29 = vrot.slane %v9361_v48, %v9109_v24  ;;  %v3853_v11 = vcombine.high %v9271_v21, %v9271_v21 }
 0x3c9   : > { %v4252_v39 = vadd.f32 %v4236_v3, %v4032_v50  ;;  %v4934_v55 = vadd.f32 %v9313_v30, %v4714_v17  ;;  %v9374_v19 = vrot.slane %v3633_v13, %v9106_v16  ;;  %v4073_v47 = vcombine.high %v9282_v53, %v9282_v53  ;;  %v11172_v3 = vld [vmem:[#allocation19_spill] sm:$0xff] }
 0x3ca   : > { %v5116_v12 = vmul.f32 %v5039_v42, %v11168_v45  ;;  %v5336_v7 = vmul.f32 %v5039_v42, %v11169_v35  ;;  %v5556_v37 = vmul.f32 %v11170_v56, %v5039_v42  ;;  %v5776_v1 = vmul.f32 %v11171_v60, %v5039_v42  ;;  %v11173_v17 = vld [vmem:[#allocation23_spill] sm:$0xff] }
 0x3cb   : > { %v4472_v38 = vadd.f32 %v4456_v52, %v4252_v39  ;;  %v5154_v21 = vadd.f32 %v9313_v30, %v4934_v55  ;;  %v5996_v50 = vmul.f32 %v5039_v42, %v11172_v3  ;;  %v6216_v46 = vmul.f32 %v5039_v42, %v11173_v17  ;;  %v11174_v13 = vld [vmem:[#allocation51_spill] sm:$0xff] }
 0x3cc   : > { %v9386_v54 = vmul.f32 %v11174_v13, %v5039_v42  ;;  %v9389_v53 = vmul.f32 %v11175_v15, %v5039_v42  ;;  %v3577_v41 = vmul.f32 %v3503_v29, %v8768_v22  ;;  %v3723_v62 = vrot.slane %v9374_v19, %v9109_v24 }
 0x3cd   : > { %v4692_v40 = vadd.f32 %v4676_v23, %v4472_v38  ;;  %v5374_v39 = vadd.f32 %v9313_v30, %v5154_v21  ;;  %v9396_v52 = vrot.slane %v3853_v11, %v9106_v16  ;;  %v9399_v55 = vrot.slane %v4073_v47, %v9106_v16 }
 0x3ce   : > { %v3593_v9 = vadd.f32 %v3577_v41, %v3357_v27  ;;  %v3797_v0 = vmul.f32 %v11146_v34, %v3723_v62  ;;  %v4293_v42 = vcombine.high %v9298_v14, %v9298_v14  ;;  %v4513_v29 = vcombine.high %v9311_v10, %v9311_v10 }
 0x3cf   : > { %v4912_v36 = vadd.f32 %v4896_v51, %v4692_v40  ;;  %v5594_v23 = vadd.f32 %v9313_v30, %v5374_v39  ;;  %v3943_v38 = vrot.slane %v9396_v52, %v9109_v24  ;;  %v4163_v11 = vrot.slane %v9399_v55, %v9109_v24 }
 0x3d0   : > { %v3813_v47 = vadd.f32 %v3797_v0, %v3593_v9  ;;  %v9412_v41 = vrot.slane %v4293_v42, %v9106_v16  ;;  %v9415_v62 = vrot.slane %v4513_v29, %v9106_v16  ;;  %v4733_v14 = vcombine.high %v9332_v58, %v9332_v58 }
 0x3d1   : > { %v5132_v10 = vadd.f32 %v5116_v12, %v4912_v36  ;;  %v5814_v51 = vadd.f32 %v9313_v30, %v5594_v23  ;;  %v4017_v40 = vmul.f32 %v11148_v44, %v3943_v38  ;;  %v4237_v27 = vmul.f32 %v4163_v11, %v11151_v61 }
 0x3d2   : > { %v4383_v21 = vrot.slane %v9412_v41, %v9109_v24  ;;  %v4603_v0 = vrot.slane %v9415_v62, %v9109_v24  ;;  %v9427_v9 = vrot.slane %v4733_v14, %v9106_v16  ;;  %v4953_v39 = vcombine.high %v9347_v32, %v9347_v32 }
 0x3d3   : > { %v5352_v58 = vadd.f32 %v5336_v7, %v5132_v10  ;;  %v6034_v36 = vadd.f32 %v9313_v30, %v5814_v51  ;;  %v4033_v12 = vadd.f32 %v4017_v40, %v3813_v47  ;;  %v3223_v42 = vcombine.high %v9256_v49, %v9256_v49 }
 0x3d4   : > { %v4457_v29 = vmul.f32 %v4383_v21, %v11165_v5  ;;  %v4677_v23 = vmul.f32 %v11166_v43, %v4603_v0  ;;  %v4823_v38 = vrot.slane %v9427_v9, %v9109_v24  ;;  %v9439_v11 = vrot.slane %v4953_v39, %v9106_v16 }
 0x3d5   : > { %v5572_v14 = vadd.f32 %v5556_v37, %v5352_v58  ;;  %v6254_v32 = vadd.f32 %v9313_v30, %v6034_v36  ;;  %v4253_v7 = vadd.f32 %v4237_v27, %v4033_v12  ;;  %v3287_v10 = vrot.slane %v3223_v42, %v9109_v24 }
 0x3d6   : > { %v4897_v47 = vmul.f32 %v11167_v18, %v4823_v38  ;;  %v5043_v49 = vrot.slane %v9439_v11, %v9109_v24  ;;  %v3443_v51 = vcombine.high %v9266_v20, %v9266_v20  ;;  %v3663_v40 = vcombine.high %v9278_v28, %v9278_v28 }
 0x3d7   : > { %v5792_v21 = vadd.f32 %v5776_v1, %v5572_v14  ;;  %v6474_v0 = vadd.f32 %v9313_v30, %v6254_v32  ;;  %v4473_v37 = vadd.f32 %v4457_v29, %v4253_v7  ;;  %v3358_v39 = vmul.f32 %v3287_v10, %v8761_v57 }
 0x3d8   : > { %v5117_v27 = vmul.f32 %v5043_v49, %v11168_v45  ;;  %v5337_v58 = vmul.f32 %v5043_v49, %v11169_v35  ;;  %v5557_v36 = vmul.f32 %v11170_v56, %v5043_v49  ;;  %v5777_v12 = vmul.f32 %v11171_v60, %v5043_v49 }
 0x3d9   : > { %v6012_v42 = vadd.f32 %v5996_v50, %v5792_v21  ;;  %7607 = vrcp.f32 %v6474_v0  ;;  %v4693_v20 = vadd.f32 %v4677_v23, %v4473_v37  ;;  %v5997_v38 = vmul.f32 %v5043_v49, %v11172_v3 }
 0x3da   : > { %v6217_v1 = vmul.f32 %v5043_v49, %v11173_v17  ;;  %v6437_v28 = vmul.f32 %v11174_v13, %v5043_v49  ;;  %v9460_v29 = vmul.f32 %v11175_v15, %v5043_v49  ;;  %v3507_v14 = vrot.slane %v3443_v51, %v9109_v24 }
 0x3db   : > { %v6232_v32 = vadd.f32 %v6216_v46, %v6012_v42  ;;  %v4913_v7 = vadd.f32 %v4897_v47, %v4693_v20  ;;  %v3727_v10 = vrot.slane %v3663_v40, %v9109_v24  ;;  %v3883_v50 = vcombine.high %v9294_v33, %v9294_v33 }
 0x3dc   : > { %v3578_v23 = vmul.f32 %v3507_v14, %v8768_v22  ;;  %v4103_v21 = vcombine.high %v9307_v31, %v9307_v31  ;;  %v4323_v0 = vcombine.high %v9321_v6, %v9321_v6  ;;  %v4543_v49 = vcombine.high %v9328_v2, %v9328_v2 }
 0x3dd   : > { %v6452_v51 = vadd.f32 %v9386_v54, %v6232_v32  ;;  %v5133_v46 = vadd.f32 %v5117_v27, %v4913_v7  ;;  %v3798_v47 = vmul.f32 %v11146_v34, %v3727_v10  ;;  %v3947_v40 = vrot.slane %v3883_v50, %v9109_v24 }
 0x3de   : > { %v3594_v37 = vadd.f32 %v3578_v23, %v3358_v39  ;;  %v4167_v33 = vrot.slane %v4103_v21, %v9109_v24  ;;  %v4387_v42 = vrot.slane %v4323_v0, %v9109_v24  ;;  %v4607_v31 = vrot.slane %v4543_v49, %v9109_v24 }
 0x3df   : > { %v6672_v20 = vadd.f32 %v9389_v53, %v6452_v51  ;;  %v5353_v6 = vadd.f32 %v5337_v58, %v5133_v46  ;;  %v4018_v14 = vmul.f32 %v11148_v44, %v3947_v40  ;;  %v4763_v2 = vcombine.high %v9343_v63, %v9343_v63 }
 0x3e0   : > { %v3814_v54 = vadd.f32 %v3798_v47, %v3594_v37  ;;  %v4238_v27 = vmul.f32 %v4167_v33, %v11151_v61  ;;  %v4458_v32 = vmul.f32 %v4387_v42, %v11165_v5  ;;  %v4678_v39 = vmul.f32 %v11166_v43, %v4607_v31 }
 0x3e1   : > { %v5573_v7 = vadd.f32 %v5557_v36, %v5353_v6  ;;  %v4827_v10 = vrot.slane %v4763_v2, %v9109_v24  ;;  %v4983_v50 = vcombine.high %v9358_v26, %v9358_v26  ;;  %v3225_v53 = vcombine.high %v9285_v59, %v9285_v59 }
 0x3e2   : > { %v4034_v58 = vadd.f32 %v4018_v14, %v3814_v54  ;;  %v3445_v63 = vcombine.high %v9361_v48, %v9361_v48  ;;  %v3665_v23 = vcombine.high %v9374_v19, %v9374_v19  ;;  %v3885_v21 = vcombine.high %v9396_v52, %v9396_v52 }
 0x3e3   : > { %v9497_v0 = vpop.eup %7607  ;;  %v5793_v36 = vadd.f32 %v5777_v12, %v5573_v7  ;;  %v4898_v49 = vmul.f32 %v11167_v18, %v4827_v10  ;;  %v5047_v26 = vrot.slane %v4983_v50, %v9109_v24  ;;  %v3291_v51 = vrot.slane %v3225_v53, %v9109_v24 }
 0x3e4   : > { %v6699_v59 = vrot.slane %v9497_v0, %v9106_v16  ;;  %v4254_v46 = vadd.f32 %v4238_v27, %v4034_v58  ;;  %v3511_v48 = vrot.slane %v3445_v63, %v9109_v24  ;;  %v3731_v19 = vrot.slane %v3665_v23, %v9109_v24 }
 0x3e5   : > { %v6013_v47 = vadd.f32 %v5997_v38, %v5793_v36  ;;  %v5118_v52 = vmul.f32 %v5047_v26, %v11168_v45  ;;  %v5338_v40 = vmul.f32 %v5047_v26, %v11169_v35  ;;  %v5558_v12 = vmul.f32 %v11170_v56, %v5047_v26 }
 0x3e6   : > { %v6715_v37 = vrot.slane %v6699_v59, %v9106_v16  ;;  %v6707_v33 = vcombine.high %v6699_v59, %v6699_v59  ;;  %v4474_v42 = vadd.f32 %v4458_v32, %v4254_v46  ;;  %v5778_v31 = vmul.f32 %v11171_v60, %v5047_v26 }
 0x3e7   : > { %v6233_v6 = vadd.f32 %v6217_v1, %v6013_v47  ;;  %v5998_v14 = vmul.f32 %v5047_v26, %v11172_v3  ;;  %v6218_v2 = vmul.f32 %v5047_v26, %v11173_v17  ;;  %v9514_v54 = vmul.f32 %v11174_v13, %v5047_v26 }
 0x3e8   : > { %v6793_v38 = vrot.slane %v6715_v37, %v9109_v24  ;;  %v9518_v27 = vrot.slane %v6707_v33, %v9106_v16  ;;  %v4694_v7 = vadd.f32 %v4678_v39, %v4474_v42  ;;  %v9521_v10 = vmul.f32 %v11175_v15, %v5047_v26 }
 0x3e9   : > { %v6453_v32 = vadd.f32 %v6437_v28, %v6233_v6  ;;  %v3359_v50 = vmul.f32 %v3291_v51, %v8761_v57  ;;  %v3579_v1 = vmul.f32 %v3511_v48, %v8768_v22  ;;  %v11176_v53 = vcombine.high %v9212_v4, %v9212_v4 }
 0x3ea   : > { %v6870_v63 = vmul.f32 %v6793_v38, %v6672_v20  ;;  %v6797_v23 = vrot.slane %v9518_v27, %v9109_v24  ;;  %v4914_v36 = vadd.f32 %v4898_v49, %v4694_v7  ;;  %v3799_v39 = vmul.f32 %v11146_v34, %v3731_v19 }
 0x3eb   : > { %v9529_v58 = vrot.slane %v11176_v53, %v9106_v16  ;;  %v6673_v26 = vadd.f32 %v9460_v29, %v6453_v32  ;;  %v6737_v28 = vcombine.high %v6715_v37, %v6715_v37  ;;  %v3595_v59 = vadd.f32 %v3579_v1, %v3359_v50 }
 0x3ec   : > { %v3951_v51 = vrot.slane %v3885_v21, %v9109_v24  ;;  %6886 = vxpose.xlu1.b32.start [1/16] %v6870_v63, 128  ;;  %v5134_v46 = vadd.f32 %v5118_v52, %v4914_v36  ;;  %v4105_v4 = vcombine.high %v9399_v55, %v9399_v55  ;;  %v4325_v20 = vcombine.high %v9412_v41, %v9412_v41 }
 0x3ed   : > { %v4545_v48 = vcombine.high %v9415_v62, %v9415_v62  ;;  %v6871_v49 = vmul.f32 %v6797_v23, %v6673_v26  ;;  %v3815_v47 = vadd.f32 %v3799_v39, %v3595_v59  ;;  %v4765_v29 = vcombine.high %v9427_v9, %v9427_v9 }
 0x3ee   : > { %v4019_v19 = vmul.f32 %v11148_v44, %v3951_v51  ;;  %v5354_v37 = vadd.f32 %v5338_v40, %v5134_v46  ;;  %v4171_v21 = vrot.slane %v4105_v4, %v9109_v24  ;;  %v4391_v52 = vrot.slane %v4325_v20, %v9109_v24 }
 0x3ef   : > { %v4611_v55 = vrot.slane %v4545_v48, %v9109_v24  ;;  %v6801_v33 = vrot.slane %v6737_v28, %v9109_v24  ;;  %v4831_v42 = vrot.slane %v4765_v29, %v9109_v24  ;;  %v4985_v62 = vcombine.high %v9439_v11, %v9439_v11 }
 0x3f0   : > { %v4035_v41 = vadd.f32 %v4019_v19, %v3815_v47  ;;  %6887 = vxpose.xlu1.b32.cont [2/16] %v6871_v49, 128  ;;  %v5574_v6 = vadd.f32 %v5558_v12, %v5354_v37  ;;  %v4239_v38 = vmul.f32 %v4171_v21, %v11151_v61  ;;  %v4459_v9 = vmul.f32 %v4391_v52, %v11165_v5  ;;  %v11178_v47 = vld [vmem:[#allocation60_spill] sm:$0xff]  ;;  %v11179_v21 = vld [vmem:[#allocation62_spill] sm:$0xff] }
 0x3f1   : > { %v4679_v40 = vmul.f32 %v11166_v43, %v4611_v55  ;;  %v4899_v7 = vmul.f32 %v11167_v18, %v4831_v42  ;;  %v5051_v32 = vrot.slane %v4985_v62, %v9109_v24  ;;  %v6739_v50 = vcombine.high %v9518_v27, %v9518_v27  ;;  %v11180_v55 = vld [vmem:[#allocation63_spill] sm:$0xff] }
 0x3f2   : > { %v9561_v1 = vrot.slane %v9529_v58, %v9106_v16  ;;  %v5794_v11 = vadd.f32 %v5778_v31, %v5574_v6  ;;  %v4255_v53 = vadd.f32 %v4239_v38, %v4035_v41  ;;  %v11177_v12 = vcombine.high %v9229_v8, %v9229_v8 }
 0x3f3   : > { %v3618_v23 = vcombine.high %v9241_v25, %v9241_v25  ;;  %v5119_v36 = vmul.f32 %v5051_v32, %v11168_v45  ;;  %v5339_v39 = vmul.f32 %v5051_v32, %v11169_v35  ;;  %v5559_v26 = vmul.f32 %v11170_v56, %v5051_v32 }
 0x3f4   : > { %v9567_v63 = vrot.slane %v11177_v12, %v9106_v16  ;;  %v5779_v28 = vmul.f32 %v11171_v60, %v5051_v32  ;;  %v6014_v59 = vadd.f32 %v5998_v14, %v5794_v11  ;;  %v4475_v31 = vadd.f32 %v4459_v9, %v4255_v53 }
 0x3f5   : > { %v5999_v51 = vmul.f32 %v5051_v32, %v11172_v3  ;;  %v6219_v46 = vmul.f32 %v5051_v32, %v11173_v17  ;;  %v9578_v8 = vmul.f32 %v11174_v13, %v5051_v32  ;;  %v9581_v4 = vmul.f32 %v11175_v15, %v5051_v32  ;;  %v11181_v32 = vld [vmem:[#allocation64_spill] sm:$0xff] }
 0x3f6   : > { %v3295_v25 = vrot.slane %v9561_v1, %v9109_v24  ;;  %v9587_v20 = vrot.slane %v9567_v63, %v9106_v16  ;;  %v6234_v48 = vadd.f32 %v6218_v2, %v6014_v59  ;;  %v4695_v14 = vadd.f32 %v4679_v40, %v4475_v31 }
 0x3f7   : > { %v9590_v49 = vrot.slane %v3618_v23, %v9106_v16  ;;  %v3838_v19 = vcombine.high %v11178_v47, %v11178_v47  ;;  %v4058_v52 = vcombine.high %v11179_v21, %v11179_v21  ;;  %v4278_v41 = vcombine.high %v11180_v55, %v11180_v55 }
 0x3f8   : > { %v3360_v29 = vmul.f32 %v3295_v25, %v8761_v57  ;;  %v3515_v37 = vrot.slane %v9587_v20, %v9109_v24  ;;  %v6454_v2 = vadd.f32 %v9514_v54, %v6234_v48  ;;  %v4915_v42 = vadd.f32 %v4899_v7, %v4695_v14 }
 0x3f9   : > { %v9604_v62 = vrot.slane %v9590_v49, %v9106_v16  ;;  %v9607_v6 = vrot.slane %v3838_v19, %v9106_v16  ;;  %v9611_v9 = vrot.slane %v4058_v52, %v9106_v16  ;;  %v9614_v40 = vrot.slane %v4278_v41, %v9106_v16 }
 0x3fa   : > { %v3580_v38 = vmul.f32 %v3515_v37, %v8768_v22  ;;  %v4498_v11 = vcombine.high %v11181_v32, %v11181_v32  ;;  %v6674_v54 = vadd.f32 %v9521_v10, %v6454_v2  ;;  %v5135_v7 = vadd.f32 %v5119_v36, %v4915_v42  ;;  %v11182_v37 = vld [vmem:[#allocation65_spill] sm:$0xff] }
 0x3fb   : > { %v3735_v53 = vrot.slane %v9604_v62, %v9109_v24  ;;  %v9623_v12 = vrot.slane %v9607_v6, %v9106_v16  ;;  %v9627_v59 = vrot.slane %v9611_v9, %v9106_v16  ;;  %v9631_v31 = vrot.slane %v9614_v40, %v9106_v16 }
 0x3fc   : > { %v3596_v23 = vadd.f32 %v3580_v38, %v3360_v29  ;;  %v9634_v25 = vrot.slane %v4498_v11, %v9106_v16  ;;  %v6872_v10 = vmul.f32 %v6801_v33, %v6674_v54  ;;  %v5355_v36 = vadd.f32 %v5339_v39, %v5135_v7 }
 0x3fd   : > { %v3800_v48 = vmul.f32 %v11146_v34, %v3735_v53  ;;  %v3955_v14 = vrot.slane %v9623_v12, %v9109_v24  ;;  %v4175_v47 = vrot.slane %v9627_v59, %v9109_v24  ;;  %v4395_v19 = vrot.slane %v9631_v31, %v9109_v24 }
 0x3fe   : > { %v9645_v29 = vrot.slane %v9634_v25, %v9106_v16  ;;  %v4718_v21 = vcombine.high %v11182_v37, %v11182_v37  ;;  %6888 = vxpose.xlu1.b32.cont [3/16] %v6872_v10, 128  ;;  %v5575_v33 = vadd.f32 %v5559_v26, %v5355_v36  ;;  %v4938_v55 = vcombine.high %v9313_v30, %v9313_v30 }
 0x3ff   : > { %v3816_v39 = vadd.f32 %v3800_v48, %v3596_v23  ;;  %v4020_v52 = vmul.f32 %v11148_v44, %v3955_v14  ;;  %v4240_v41 = vmul.f32 %v4175_v47, %v11151_v61  ;;  %v4460_v2 = vmul.f32 %v4395_v19, %v11165_v5 }
 0x400   : > { %v4615_v42 = vrot.slane %v9645_v29, %v9109_v24  ;;  %v4732_v38 = vrot.slane %v4718_v21, %v9106_v16  ;;  %v5795_v32 = vadd.f32 %v5779_v28, %v5575_v33  ;;  %v9658_v54 = vrot.slane %v4938_v55, %v9106_v16 }
 0x401   : > { %v4036_v11 = vadd.f32 %v4020_v52, %v3816_v39  ;;  %v6692_v26 = vcombine.high %v9497_v0, %v9497_v0  ;;  %v3194_v53 = vcombine.high %v9529_v58, %v9529_v58  ;;  %v3414_v23 = vcombine.high %v9567_v63, %v9567_v63 }
 0x402   : > { %v4680_v7 = vmul.f32 %v11166_v43, %v4615_v42  ;;  %v9664_v30 = vrot.slane %v4732_v38, %v9106_v16  ;;  %v6015_v10 = vadd.f32 %v5999_v51, %v5795_v32  ;;  %v6805_v28 = vrot.slane %v6739_v50, %v9109_v24 }
 0x403   : > { %v4256_v36 = vadd.f32 %v4240_v41, %v4036_v11  ;;  %v9676_v0 = vrot.slane %v9658_v54, %v9106_v16  ;;  %v9681_v14 = vrot.slane %v3194_v53, %v9106_v16  ;;  %v9684_v58 = vrot.slane %v3414_v23, %v9106_v16 }
 0x404   : > { %v4835_v48 = vrot.slane %v9664_v30, %v9109_v24  ;;  %v3634_v63 = vcombine.high %v9590_v49, %v9590_v49  ;;  %v6235_v51 = vadd.f32 %v6219_v46, %v6015_v10  ;;  %v9691_v47 = vrot.slane %v6692_v26, %v9106_v16 }
 0x405   : > { %v4476_v27 = vadd.f32 %v4460_v2, %v4256_v36  ;;  %v5055_v50 = vrot.slane %v9676_v0, %v9109_v24  ;;  %v3299_v37 = vrot.slane %v9681_v14, %v9109_v24  ;;  %v3519_v21 = vrot.slane %v9684_v58, %v9109_v24 }
 0x406   : > { %v4900_v19 = vmul.f32 %v11167_v18, %v4835_v48  ;;  %v9699_v33 = vrot.slane %v3634_v63, %v9106_v16  ;;  %v6455_v46 = vadd.f32 %v9578_v8, %v6235_v51  ;;  %v4074_v63 = vcombine.high %v9611_v9, %v9611_v9 }
 0x407   : > { %v4696_v49 = vadd.f32 %v4680_v7, %v4476_v27  ;;  %v5120_v39 = vmul.f32 %v5055_v50, %v11168_v45  ;;  %v5340_v52 = vmul.f32 %v5055_v50, %v11169_v35  ;;  %v5560_v55 = vmul.f32 %v11170_v56, %v5055_v50 }
 0x408   : > { %v5780_v41 = vmul.f32 %v11171_v60, %v5055_v50  ;;  %v6000_v2 = vmul.f32 %v5055_v50, %v11172_v3  ;;  %v6220_v42 = vmul.f32 %v5055_v50, %v11173_v17  ;;  %v6675_v32 = vadd.f32 %v9581_v4, %v6455_v46 }
 0x409   : > { %v4916_v11 = vadd.f32 %v4900_v19, %v4696_v49  ;;  %v6440_v26 = vmul.f32 %v11174_v13, %v5055_v50  ;;  %v6660_v8 = vmul.f32 %v11175_v15, %v5055_v50  ;;  %v9713_v7 = vrot.slane %v9691_v47, %v9106_v16 }
 0x40a   : > { %v3361_v53 = vmul.f32 %v3299_v37, %v8761_v57  ;;  %v3581_v23 = vmul.f32 %v3519_v21, %v8768_v22  ;;  %v3739_v10 = vrot.slane %v9699_v33, %v9109_v24  ;;  %v6873_v36 = vmul.f32 %v6805_v28, %v6675_v32 }
 0x40b   : > { %v5136_v48 = vadd.f32 %v5120_v39, %v4916_v11  ;;  %v3854_v4 = vcombine.high %v9607_v6, %v9607_v6  ;;  %v4294_v50 = vcombine.high %v9614_v40, %v9614_v40  ;;  %v4514_v19 = vcombine.high %v9634_v25, %v9634_v25 }
 0x40c   : > { %v3597_v51 = vadd.f32 %v3581_v23, %v3361_v53  ;;  %v3801_v27 = vmul.f32 %v11146_v34, %v3739_v10  ;;  %6889 = vxpose.xlu1.b32.cont [4/16] %v6873_v36, 128  ;;  %v9732_v21 = vrot.slane %v4074_v63, %v9106_v16  ;;  %v4734_v6 = vcombine.high %v4732_v38, %v4732_v38 }
 0x40d   : > { %v5356_v37 = vadd.f32 %v5340_v52, %v5136_v48  ;;  %v9729_v28 = vrot.slane %v3854_v4, %v9106_v16  ;;  %v9735_v9 = vrot.slane %v4294_v50, %v9106_v16  ;;  %v9738_v49 = vrot.slane %v4514_v19, %v9106_v16 }
 0x40e   : > { %v3817_v46 = vadd.f32 %v3801_v27, %v3597_v51  ;;  %v4954_v40 = vcombine.high %v9658_v54, %v9658_v54  ;;  %v4179_v52 = vrot.slane %v9732_v21, %v9109_v24  ;;  %v9747_v32 = vrot.slane %v4734_v6, %v9106_v16 }
 0x40f   : > { %v5576_v25 = vadd.f32 %v5560_v55, %v5356_v37  ;;  %v3959_v39 = vrot.slane %v9729_v28, %v9109_v24  ;;  %v6809_v38 = vrot.slane %v9713_v7, %v9109_v24  ;;  %v4399_v11 = vrot.slane %v9735_v9, %v9109_v24 }
 0x410   : > { %v4619_v53 = vrot.slane %v9738_v49, %v9109_v24  ;;  %v9756_v54 = vrot.slane %v4954_v40, %v9106_v16  ;;  %v4241_v10 = vmul.f32 %v4179_v52, %v11151_v61  ;;  %v4839_v36 = vrot.slane %v9747_v32, %v9109_v24 }
 0x411   : > { %v5796_v55 = vadd.f32 %v5780_v41, %v5576_v25  ;;  %v4021_v23 = vmul.f32 %v11148_v44, %v3959_v39  ;;  %v4461_v48 = vmul.f32 %v4399_v11, %v11165_v5  ;;  %v6708_v51 = vcombine.high %v9691_v47, %v9691_v47 }
 0x412   : > { %v4681_v4 = vmul.f32 %v11166_v43, %v4619_v53  ;;  %v5059_v63 = vrot.slane %v9756_v54, %v9109_v24  ;;  %v4901_v41 = vmul.f32 %v11167_v18, %v4839_v36  ;;  %v3224_v19 = vcombine.high %v9561_v1, %v9561_v1 }
 0x413   : > { %v6016_v27 = vadd.f32 %v6000_v2, %v5796_v55  ;;  %v4037_v50 = vadd.f32 %v4021_v23, %v3817_v46  ;;  %v9788_v46 = vrot.slane %v6708_v51, %v9106_v16  ;;  %v3444_v23 = vcombine.high %v9587_v20, %v9587_v20 }
 0x414   : > { %v5121_v37 = vmul.f32 %v5059_v63, %v11168_v45  ;;  %v5341_v6 = vmul.f32 %v5059_v63, %v11169_v35  ;;  %v5561_v40 = vmul.f32 %v11170_v56, %v5059_v63  ;;  %v5781_v25 = vmul.f32 %v11171_v60, %v5059_v63 }
 0x415   : > { %v6236_v39 = vadd.f32 %v6220_v42, %v6016_v27  ;;  %v4257_v52 = vadd.f32 %v4241_v10, %v4037_v50  ;;  %v9776_v11 = vmul.f32 %v5059_v63, %v11172_v3  ;;  %v9779_v47 = vmul.f32 %v5059_v63, %v11173_v17 }
 0x416   : > { %v9782_v2 = vmul.f32 %v11174_v13, %v5059_v63  ;;  %v9785_v1 = vmul.f32 %v11175_v15, %v5059_v63  ;;  %v3303_v53 = vrot.slane %v3224_v19, %v9109_v24  ;;  %v3664_v10 = vcombine.high %v9604_v62, %v9604_v62 }
 0x417   : > { %v6456_v55 = vadd.f32 %v6440_v26, %v6236_v39  ;;  %v4477_v42 = vadd.f32 %v4461_v48, %v4257_v52  ;;  %v3884_v27 = vcombine.high %v9623_v12, %v9623_v12  ;;  %v4104_v63 = vcombine.high %v9627_v59, %v9627_v59 }
 0x418   : > { %v3362_v36 = vmul.f32 %v3303_v53, %v8761_v57  ;;  %v4324_v51 = vcombine.high %v9631_v31, %v9631_v31  ;;  %v3523_v48 = vrot.slane %v3444_v23, %v9109_v24  ;;  %v3743_v20 = vrot.slane %v3664_v10, %v9109_v24 }
 0x419   : > { %v6676_v50 = vadd.f32 %v6660_v8, %v6456_v55  ;;  %v4697_v26 = vadd.f32 %v4681_v4, %v4477_v42  ;;  %v3963_v19 = vrot.slane %v3884_v27, %v9109_v24  ;;  %v4183_v62 = vrot.slane %v4104_v63, %v9109_v24 }
 0x41a   : > { %v4403_v39 = vrot.slane %v4324_v51, %v9109_v24  ;;  %v4544_v12 = vcombine.high %v9645_v29, %v9645_v29  ;;  %v3582_v53 = vmul.f32 %v3523_v48, %v8768_v22  ;;  %v3802_v31 = vmul.f32 %v11146_v34, %v3743_v20 }
 0x41b   : > { %v6874_v52 = vmul.f32 %v6809_v38, %v6676_v50  ;;  %v4917_v59 = vadd.f32 %v4901_v41, %v4697_v26  ;;  %v4022_v8 = vmul.f32 %v11148_v44, %v3963_v19  ;;  %v4242_v4 = vmul.f32 %v4183_v62, %v11151_v61 }
 0x41c   : > { %v4462_v55 = vmul.f32 %v4403_v39, %v11165_v5  ;;  %v4623_v42 = vrot.slane %v4544_v12, %v9109_v24  ;;  %v3598_v10 = vadd.f32 %v3582_v53, %v3362_v36  ;;  %v4764_v29 = vcombine.high %v9664_v30, %v9664_v30 }
 0x41d   : > { %6890 = vxpose.xlu1.b32.cont [5/16] %v6874_v52, 128  ;;  %v5137_v23 = vadd.f32 %v5121_v37, %v4917_v59  ;;  %v4984_v38 = vcombine.high %v9676_v0, %v9676_v0  ;;  %v6813_v41 = vrot.slane %v9788_v46, %v9109_v24  ;;  %v3226_v63 = vcombine.high %v9681_v14, %v9681_v14 }
 0x41e   : > { %v4682_v27 = vmul.f32 %v11166_v43, %v4623_v42  ;;  %v3446_v51 = vcombine.high %v9684_v58, %v9684_v58  ;;  %v3818_v37 = vadd.f32 %v3802_v31, %v3598_v10  ;;  %v4843_v36 = vrot.slane %v4764_v29, %v9109_v24 }
 0x41f   : > { %v5357_v50 = vadd.f32 %v5341_v6, %v5137_v23  ;;  %v5063_v30 = vrot.slane %v4984_v38, %v9109_v24  ;;  %v6738_v0 = vcombine.high %v9713_v7, %v9713_v7  ;;  %v3307_v26 = vrot.slane %v3226_v63, %v9109_v24 }
 0x420   : > { %v3527_v48 = vrot.slane %v3446_v51, %v9109_v24  ;;  %v3666_v20 = vcombine.high %v9699_v33, %v9699_v33  ;;  %v4038_v19 = vadd.f32 %v4022_v8, %v3818_v37  ;;  %v4902_v58 = vmul.f32 %v11167_v18, %v4843_v36 }
 0x421   : > { %v5577_v14 = vadd.f32 %v5561_v40, %v5357_v50  ;;  %v5122_v6 = vmul.f32 %v5063_v30, %v11168_v45  ;;  %v5342_v62 = vmul.f32 %v5063_v30, %v11169_v35  ;;  %v5562_v39 = vmul.f32 %v11170_v56, %v5063_v30 }
 0x422   : > { %v5782_v12 = vmul.f32 %v11171_v60, %v5063_v30  ;;  %v9840_v7 = vmul.f32 %v5063_v30, %v11172_v3  ;;  %v4258_v59 = vadd.f32 %v4242_v4, %v4038_v19  ;;  %v9843_v53 = vmul.f32 %v5063_v30, %v11173_v17 }
 0x423   : > { %v5797_v52 = vadd.f32 %v5781_v25, %v5577_v14  ;;  %v9846_v33 = vmul.f32 %v11174_v13, %v5063_v30  ;;  %v9849_v40 = vmul.f32 %v11175_v15, %v5063_v30  ;;  %v3363_v31 = vmul.f32 %v3307_v26, %v8761_v57 }
 0x424   : > { %v3583_v8 = vmul.f32 %v3527_v48, %v8768_v22  ;;  %v3747_v42 = vrot.slane %v3666_v20, %v9109_v24  ;;  %v4478_v10 = vadd.f32 %v4462_v55, %v4258_v59  ;;  %v3886_v25 = vcombine.high %v9729_v28, %v9729_v28 }
 0x425   : > { %v6017_v23 = vadd.f32 %v9776_v11, %v5797_v52  ;;  %v4106_v4 = vcombine.high %v9732_v21, %v9732_v21  ;;  %v4326_v63 = vcombine.high %v9735_v9, %v9735_v9  ;;  %v4546_v51 = vcombine.high %v9738_v49, %v9738_v49 }
 0x426   : > { %v3599_v29 = vadd.f32 %v3583_v8, %v3363_v31  ;;  %v3803_v38 = vmul.f32 %v11146_v34, %v3747_v42  ;;  %v4698_v37 = vadd.f32 %v4682_v27, %v4478_v10  ;;  %v3967_v11 = vrot.slane %v3886_v25, %v9109_v24  ;;  %v11183_v31 = vld [vmem:[#allocation57_spill] sm:$0xff]  ;;  %v11184_v8 = vld [vmem:[#allocation38_spill] sm:$0xff] }
 0x427   : > { %v6237_v50 = vadd.f32 %v9779_v47, %v6017_v23  ;;  %v4187_v55 = vrot.slane %v4106_v4, %v9109_v24  ;;  %v4407_v36 = vrot.slane %v4326_v63, %v9109_v24  ;;  %v4627_v21 = vrot.slane %v4546_v51, %v9109_v24  ;;  %v11185_v23 = vld [vmem:[#allocation59_spill] sm:$0xff] }
 0x428   : > { %v3819_v28 = vadd.f32 %v3803_v38, %v3599_v29  ;;  %v4766_v30 = vcombine.high %v9747_v32, %v9747_v32  ;;  %v4918_v26 = vadd.f32 %v4902_v58, %v4698_v37  ;;  %v4023_v49 = vmul.f32 %v11148_v44, %v3967_v11  ;;  %v11186_v37 = vld [vmem:[#allocation29_spill] sm:$0xff] }
 0x429   : > { %v6457_v9 = vadd.f32 %v9782_v2, %v6237_v50  ;;  %v4243_v47 = vmul.f32 %v4187_v55, %v11151_v61  ;;  %v4463_v27 = vmul.f32 %v4407_v36, %v11165_v5  ;;  %v4683_v48 = vmul.f32 %v11166_v43, %v4627_v21  ;;  %v11187_v21 = vld [vmem:[#allocation21_spill] sm:$0xff] }
 0x42a   : > { %v4847_v20 = vrot.slane %v4766_v30, %v9109_v24  ;;  %v4986_v14 = vcombine.high %v9756_v54, %v9756_v54  ;;  %v5138_v52 = vadd.f32 %v5122_v6, %v4918_v26  ;;  %v9881_v32 = vrot.slane %v6738_v0, %v9109_v24  ;;  %v11188_v30 = vld [vmem:[#allocation61_spill] sm:$0xff] }
 0x42b   : > { %v6677_v19 = vadd.f32 %v9785_v1, %v6457_v9  ;;  %v4039_v2 = vadd.f32 %v4023_v49, %v3819_v28  ;;  %v4040_v42 = vadd.f32 %v11184_v8, %v11183_v31  ;;  %v4411_v10 = vrot.slane %v11185_v23, %v9109_v24  ;;  %v11189_v9 = vld [vmem:[#allocation32_spill] sm:$0xff] }
 0x42c   : > { %v4903_v58 = vmul.f32 %v11167_v18, %v4847_v20  ;;  %v5067_v59 = vrot.slane %v4986_v14, %v9109_v24  ;;  %v5358_v4 = vadd.f32 %v5342_v62, %v5138_v52  ;;  %v6740_v1 = vcombine.high %v9788_v46, %v9788_v46  ;;  %v11191_v20 = vld [vmem:[#allocation56_spill] sm:$0xff] }
 0x42d   : > { %v6875_v25 = vmul.f32 %v6813_v41, %v6677_v19  ;;  %v4259_v54 = vadd.f32 %v4243_v47, %v4039_v2  ;;  %v4260_v11 = vadd.f32 %v11186_v37, %v4040_v42  ;;  %v4464_v55 = vmul.f32 %v4411_v10, %v11165_v5  ;;  %v11190_v47 = vld [vmem:[#allocation55_spill] sm:$0xff]  ;;  %v11192_v19 = vld [vmem:[#allocation58_spill] sm:$0xff] }
 0x42e   : > { %v5123_v0 = vmul.f32 %v5067_v59, %v11168_v45  ;;  %v5343_v6 = vmul.f32 %v5067_v59, %v11169_v35  ;;  %v5563_v29 = vmul.f32 %v11170_v56, %v5067_v59  ;;  %v5783_v38 = vmul.f32 %v11171_v60, %v5067_v59 }
 0x42f   : > { %6891 = vxpose.xlu1.b32.cont [6/16] %v6875_v25, 128  ;;  %v5578_v63 = vadd.f32 %v5562_v39, %v5358_v4  ;;  %v4479_v51 = vadd.f32 %v4463_v27, %v4259_v54  ;;  %v6003_v50 = vmul.f32 %v5067_v59, %v11172_v3  ;;  %v6223_v41 = vmul.f32 %v5067_v59, %v11173_v17  ;;  %v11194_v25 = vld [vmem:[#allocation43_spill] sm:$0xff] }
 0x430   : > { %v9898_v62 = vmul.f32 %v11174_v13, %v5067_v59  ;;  %v9901_v46 = vmul.f32 %v11175_v15, %v5067_v59  ;;  %v9907_v39 = vrot.slane %v11187_v21, %v9106_v16  ;;  %v4715_v26 = vadd.f32 %v11189_v9, %v11188_v30  ;;  %v11193_v59 = vld [vmem:[#allocation26_spill] sm:$0xff] }
 0x431   : > { %v5798_v28 = vadd.f32 %v5782_v12, %v5578_v63  ;;  %v4699_v36 = vadd.f32 %v4683_v48, %v4479_v51  ;;  %v4480_v49 = vadd.f32 %v4464_v55, %v4260_v11  ;;  %v9913_v27 = vrot.slane %v11190_v47, %v9106_v16  ;;  %v11195_v63 = vld [vmem:[#allocation12_spill] sm:$0xff] }
 0x432   : > { %v9917_v14 = vrot.slane %v11191_v20, %v9106_v16  ;;  %v9921_v12 = vrot.slane %v11192_v19, %v9106_v16  ;;  %v4631_v2 = vrot.slane %v9907_v39, %v9109_v24  ;;  %v4935_v31 = vadd.f32 %v11193_v59, %v4715_v26  ;;  %v11196_v26 = vld [vmem:[#allocation27_spill] sm:$0xff] }
 0x433   : > { %v6018_v48 = vadd.f32 %v9840_v7, %v5798_v28  ;;  %v4919_v52 = vadd.f32 %v4903_v58, %v4699_v36  ;;  %v9928_v8 = vrot.slane %v6740_v1, %v9109_v24  ;;  %v4851_v42 = vrot.slane %v9913_v27, %v9109_v24 }
 0x434   : > { %v5071_v10 = vrot.slane %v9917_v14, %v9109_v24  ;;  %v9936_v4 = vrot.slane %v11194_v25, %v9106_v16  ;;  %v4684_v54 = vmul.f32 %v11166_v43, %v4631_v2  ;;  %v5155_v51 = vadd.f32 %v11195_v63, %v4935_v31  ;;  %v11198_v31 = vld [vmem:[#allocation34_spill] sm:$0xff] }
 0x435   : > { %v6238_v7 = vadd.f32 %v9843_v53, %v6018_v48  ;;  %v5139_v58 = vadd.f32 %v5123_v0, %v4919_v52  ;;  %v4904_v1 = vmul.f32 %v11167_v18, %v4851_v42  ;;  %v5291_v11 = vrot.slane %v9921_v12, %v9109_v24  ;;  %v11197_v52 = vld [vmem:[#allocation41_spill] sm:$0xff] }
 0x436   : > { %v5124_v37 = vmul.f32 %v5071_v10, %v11168_v45  ;;  %v9947_v55 = vrot.slane %v9936_v4, %v9106_v16  ;;  %v4700_v53 = vadd.f32 %v4684_v54, %v4480_v49  ;;  %v5375_v0 = vadd.f32 %v11194_v25, %v5155_v51 }
 0x437   : > { %v6458_v28 = vadd.f32 %v9846_v33, %v6238_v7  ;;  %v5359_v36 = vadd.f32 %v5343_v6, %v5139_v58  ;;  %v9955_v48 = vrot.slane %v11196_v26, %v9106_v16  ;;  %v9959_v2 = vrot.slane %v11197_v52, %v9106_v16 }
 0x438   : > { %v5511_v30 = vrot.slane %v9947_v55, %v9109_v24  ;;  %v9963_v42 = vrot.slane %v11198_v31, %v9106_v16  ;;  %v4920_v49 = vadd.f32 %v4904_v1, %v4700_v53  ;;  %v5595_v10 = vadd.f32 %v11196_v26, %v5375_v0  ;;  %v11199_v0 = vld [vmem:[#allocation36_spill] sm:$0xff] }
 0x439   : > { %v6678_v33 = vadd.f32 %v9849_v40, %v6458_v28  ;;  %v5579_v6 = vadd.f32 %v5563_v29, %v5359_v36  ;;  %v5344_v7 = vmul.f32 %v5291_v11, %v11169_v35  ;;  %v9970_v58 = vrot.slane %v9955_v48, %v9106_v16 }
 0x43a   : > { %v9974_v54 = vrot.slane %v9959_v2, %v9106_v16  ;;  %v9978_v51 = vrot.slane %v9963_v42, %v9106_v16  ;;  %v5140_v1 = vadd.f32 %v5124_v37, %v4920_v49  ;;  %v5815_v28 = vadd.f32 %v11197_v52, %v5595_v10  ;;  %v11200_v37 = vld [vmem:[#allocation15_spill] sm:$0xff] }
 0x43b   : > { %v6876_v40 = vmul.f32 %v9881_v32, %v6678_v33  ;;  %v5799_v29 = vadd.f32 %v5783_v38, %v5579_v6  ;;  %v5731_v11 = vrot.slane %v9970_v58, %v9109_v24  ;;  %v9990_v26 = vrot.slane %v11199_v0, %v9106_v16  ;;  %v11201_v33 = vld [vmem:[#allocation20_spill] sm:$0xff] }
 0x43c   : > { %v5951_v36 = vrot.slane %v9974_v54, %v9109_v24  ;;  %v6171_v53 = vrot.slane %v9978_v51, %v9109_v24  ;;  %v5360_v32 = vadd.f32 %v5344_v7, %v5140_v1  ;;  %v5564_v38 = vmul.f32 %v11170_v56, %v5511_v30  ;;  %v11203_v7 = vld [vmem:[#allocation14_spill] sm:$0xff]  ;;  %v11204_v1 = vld [vmem:[#allocation48_spill] sm:$0xff] }
 0x43d   : > { %6892 = vxpose.xlu1.b32.cont [7/16] %v6876_v40, 128  ;;  %v6019_v25 = vadd.f32 %v6003_v50, %v5799_v29  ;;  %v11202_v6 = vsub.f32 %v11200_v37, %v11201_v33  ;;  %v5784_v10 = vmul.f32 %v11171_v60, %v5731_v11  ;;  %v6035_v63 = vadd.f32 %v11198_v31, %v5815_v28 }
 0x43e   : > { %v6004_v52 = vmul.f32 %v5951_v36, %v11172_v3  ;;  %v10001_v59 = vrot.slane %v9990_v26, %v9106_v16  ;;  %v5580_v40 = vadd.f32 %v5564_v38, %v5360_v32  ;;  %v6224_v50 = vmul.f32 %v6171_v53, %v11173_v17  ;;  %v11205_v36 = vld [vmem:[#allocation49_spill] sm:$0xff] }
 0x43f   : > { %v6472_v49 = vmul.f32 1.442695, %v11202_v6  ;;  %v6239_v9 = vadd.f32 %v6223_v41, %v6019_v25  ;;  %v3242_v29 = vcombine.high %v11203_v7, %v11203_v7  ;;  %v3462_v11 = vcombine.high %v11204_v1, %v11204_v1  ;;  %v11206_v41 = vld [vmem:[#allocation44_spill] sm:$0xff]  ;;  %v11207_v53 = vld [vmem:[#allocation33_spill] sm:$0xff] }
 0x440   : > { %v6391_v30 = vrot.slane %v10001_v59, %v9109_v24  ;;  %v3682_v28 = vcombine.high %v11205_v36, %v11205_v36  ;;  %v5800_v33 = vadd.f32 %v5784_v10, %v5580_v40  ;;  %v3902_v25 = vcombine.high %v11206_v41, %v11206_v41 }
 0x441   : > { %7609 = vpow2.f32 %v6472_v49  ;;  %v6459_v37 = vadd.f32 %v9898_v62, %v6239_v9  ;;  %v4122_v32 = vcombine.high %v11207_v53, %v11207_v53  ;;  %v10019_v6 = vrot.slane %v3242_v29, %v9106_v16 }
 0x442   : > { %v6444_v38 = vmul.f32 %v11174_v13, %v6391_v30  ;;  %v10022_v49 = vrot.slane %v3462_v11, %v9106_v16  ;;  %v10025_v7 = vrot.slane %v3682_v28, %v9106_v16  ;;  %v6020_v9 = vadd.f32 %v6004_v52, %v5800_v33  ;;  %v11208_v11 = vld [vmem:[#allocation30_spill] sm:$0xff] }
 0x443   : > { %v6679_v62 = vadd.f32 %v9901_v46, %v6459_v37  ;;  %v10029_v10 = vrot.slane %v3902_v25, %v9106_v16  ;;  %v10032_v40 = vrot.slane %v4122_v32, %v9106_v16  ;;  %v3315_v30 = vrot.slane %v10019_v6, %v9109_v24 }
 0x444   : > { %v3535_v29 = vrot.slane %v10022_v49, %v9109_v24  ;;  %v3755_v1 = vrot.slane %v10025_v7, %v9109_v24  ;;  %v4342_v36 = vcombine.high %v11208_v11, %v11208_v11  ;;  %v6240_v52 = vadd.f32 %v6224_v50, %v6020_v9 }
 0x445   : > { %v6877_v46 = vmul.f32 %v9928_v8, %v6679_v62  ;;  %v3975_v28 = vrot.slane %v10029_v10, %v9109_v24  ;;  %v4195_v37 = vrot.slane %v10032_v40, %v9109_v24  ;;  %v6255_v33 = vadd.f32 %v11199_v0, %v6035_v63 }
 0x446   : > { %v3365_v41 = vmul.f32 %v3315_v30, %v8761_v57  ;;  %v3585_v25 = vmul.f32 %v3535_v29, %v8768_v22  ;;  %v10051_v53 = vrot.slane %v4342_v36, %v9106_v16  ;;  %v6460_v32 = vadd.f32 %v6444_v38, %v6240_v52 }
 0x447   : > { %6893 = vxpose.xlu1.b32.cont [8/16] %v6877_v46, 128  ;;  %v3805_v8 = vmul.f32 %v11146_v34, %v3755_v1  ;;  %v4025_v50 = vmul.f32 %v11148_v44, %v3975_v28  ;;  %v4562_v62 = vcombine.high %v11187_v21, %v11187_v21  ;;  %v4245_v11 = vmul.f32 %v4195_v37, %v11151_v61 }
 0x448   : > { %v3601_v9 = vadd.f32 %v3585_v25, %v3365_v41  ;;  %v4782_v63 = vcombine.high %v11190_v47, %v11190_v47  ;;  %v5002_v30 = vcombine.high %v11191_v20, %v11191_v20  ;;  %v4415_v38 = vrot.slane %v10051_v53, %v9109_v24 }
 0x449   : > { %v10067_v1 = vrot.slane %v4562_v62, %v9106_v16  ;;  %v5222_v21 = vcombine.high %v11192_v19, %v11192_v19  ;;  %v5442_v36 = vcombine.high %v9936_v4, %v9936_v4  ;;  %v5662_v52 = vcombine.high %v9955_v48, %v9955_v48 }
 0x44a   : > { %v3821_v20 = vadd.f32 %v3805_v8, %v3601_v9  ;;  %v10081_v37 = vrot.slane %v4782_v63, %v9106_v16  ;;  %v10084_v19 = vrot.slane %v5002_v30, %v9106_v16  ;;  %v4465_v48 = vmul.f32 %v4415_v38, %v11165_v5 }
 0x44b   : > { %v10062_v29 = vpop.eup %7609  ;;  %v4635_v28 = vrot.slane %v10067_v1, %v9109_v24  ;;  %v10087_v4 = vrot.slane %v5222_v21, %v9106_v16  ;;  %v10093_v25 = vrot.slane %v5442_v36, %v9106_v16  ;;  %v10107_v21 = vrot.slane %v5662_v52, %v9106_v16 }
 0x44c   : > { %11209 = vst [vmem:[#allocation50_spill] sm:$0xff] %v10062_v29  ;;  %v6475_v46 = vadd.f32 %v10062_v29, %v6255_v33  ;;  %v6534_v47 = vrot.slane %v10062_v29, %v9106_v16  ;;  %v4041_v41 = vadd.f32 %v4025_v50, %v3821_v20  ;;  %v4855_v8 = vrot.slane %v10081_v37, %v9109_v24 }
 0x44d   : > { %11210 = vst [vmem:[#allocation31_spill] sm:$0xff] %v10087_v4  ;;  %11211 = vst [vmem:[#allocation46_spill] sm:$0xff] %v10093_v25  ;;  %v5075_v62 = vrot.slane %v10084_v19, %v9109_v24  ;;  %v5295_v9 = vrot.slane %v10087_v4, %v9109_v24  ;;  %v5515_v50 = vrot.slane %v10093_v25, %v9109_v24 }
 0x44e   : > { %v10090_v33 = vrot.slane %v6534_v47, %v9106_v16  ;;  %7611 = vrcp.f32 %v6475_v46  ;;  %v4261_v30 = vadd.f32 %v4245_v11, %v4041_v41  ;;  %11212 = vst [vmem:[#allocation16_spill] sm:$0xff] %v10107_v21  ;;  %v4685_v38 = vmul.f32 %v11166_v43, %v4635_v28 }
 0x44f   : > { %v4905_v36 = vmul.f32 %v11167_v18, %v4855_v8  ;;  %v5125_v46 = vmul.f32 %v5075_v62, %v11168_v45  ;;  %v5882_v20 = vcombine.high %v9959_v2, %v9959_v2  ;;  %v5345_v11 = vmul.f32 %v5295_v9, %v11169_v35 }
 0x450   : > { %v6611_v63 = vrot.slane %v10090_v33, %v9109_v24  ;;  %v4481_v0 = vadd.f32 %v4465_v48, %v4261_v30  ;;  %v5735_v41 = vrot.slane %v10107_v21, %v9109_v24  ;;  %v6102_v28 = vcombine.high %v9963_v42, %v9963_v42  ;;  %v11214_v48 = vld [vmem:[#allocation40_spill] sm:$0xff] }
 0x451   : > { %v10119_v52 = vrot.slane %v5882_v20, %v9106_v16  ;;  %v6322_v8 = vcombine.high %v9990_v26, %v9990_v26  ;;  %v6542_v62 = vcombine.high %v6534_v47, %v6534_v47  ;;  %v3272_v9 = vcombine.high %v11214_v48, %v11214_v48  ;;  %v11219_v47 = vld [vmem:[#allocation37_spill] sm:$0xff] }
 0x452   : > { %v6664_v29 = vmul.f32 %v11175_v15, %v6611_v63  ;;  %v4701_v2 = vadd.f32 %v4685_v38, %v4481_v0  ;;  %v5565_v63 = vmul.f32 %v11170_v56, %v5515_v50  ;;  %v10131_v20 = vrot.slane %v6102_v28, %v9106_v16 }
 0x453   : > { %11213 = vst [vmem:[#allocation47_spill] sm:$0xff] %v10119_v52  ;;  %v5955_v30 = vrot.slane %v10119_v52, %v9109_v24  ;;  %v10134_v21 = vrot.slane %v6322_v8, %v9106_v16  ;;  %v10137_v42 = vrot.slane %v6542_v62, %v9106_v16  ;;  %v3319_v0 = vrot.slane %v3272_v9, %v9109_v24 }
 0x454   : > { %v6680_v31 = vadd.f32 %v6664_v29, %v6460_v32  ;;  %11215 = vst [vmem:[#allocation45_spill] sm:$0xff] %v10131_v20  ;;  %v4921_v26 = vadd.f32 %v4905_v36, %v4701_v2  ;;  %v11218_v32 = vld [vmem:[#allocation39_spill] sm:$0xff]  ;;  %v3712_v50 = vcombine.high %v11219_v47, %v11219_v47  ;;  %v5785_v38 = vmul.f32 %v11171_v60, %v5735_v41 }
 0x455   : > { %11216 = vst [vmem:[#allocation17_spill] sm:$0xff] %v10134_v21  ;;  %11217 = vst [vmem:[#allocation19_spill] sm:$0xff] %v10137_v42  ;;  %v3492_v29 = vcombine.high %v11218_v32, %v11218_v32  ;;  %v6005_v28 = vmul.f32 %v5955_v30, %v11172_v3  ;;  %v6175_v8 = vrot.slane %v10131_v20, %v9109_v24 }
 0x456   : > { %v6395_v62 = vrot.slane %v10134_v21, %v9109_v24  ;;  %v5141_v36 = vadd.f32 %v5125_v46, %v4921_v26  ;;  %v3366_v2 = vmul.f32 %v3319_v0, %v8761_v57  ;;  %v3759_v32 = vrot.slane %v3712_v50, %v9109_v24  ;;  %v11221_v26 = vld [vmem:[#allocation42_spill] sm:$0xff] }
 0x457   : > { %v3539_v9 = vrot.slane %v3492_v29, %v9109_v24  ;;  %v6225_v30 = vmul.f32 %v6175_v8, %v11173_v17  ;;  %v6615_v20 = vrot.slane %v10137_v42, %v9109_v24  ;;  %v3932_v0 = vcombine.high %v11221_v26, %v11221_v26  ;;  %v7551_v26 = vld [vmem:[#allocation7] sm:$0xff]  }
 0x458   : > { %v10150_v48 = vpop.eup %7611  ;;  %v6445_v47 = vmul.f32 %v11174_v13, %v6395_v62  ;;  %v5361_v21 = vadd.f32 %v5345_v11, %v5141_v36  ;;  %v3806_v46 = vmul.f32 %v11146_v34, %v3759_v32  ;;  %v4372_v62 = vcombine.high %v11185_v23, %v11185_v23  ;;  %7421 = vmatprep.subr.bf16.mxu1 %v7551_v26 }
 0x459   : > { %11220 = vst [vmem:[#allocation23_spill] sm:$0xff] %v10150_v48  ;;  %v6748_v41 = vrot.slane %v10150_v48, %v9106_v16  ;;  %v3586_v52 = vmul.f32 %v3539_v9, %v8768_v22  ;;  %v11222_v48 = vld [vmem:[#allocation35_spill] sm:$0xff]  ;;  %v3979_v11 = vrot.slane %v3932_v0, %v9109_v24  ;;  %v4592_v36 = vcombine.high %v9907_v39, %v9907_v39 }
 0x45a   : > { %v4152_v8 = vcombine.high %v11222_v48, %v11222_v48  ;;  %v5581_v25 = vadd.f32 %v5565_v63, %v5361_v21  ;;  %v4419_v48 = vrot.slane %v4372_v62, %v9109_v24  ;;  %v6665_v23 = vmul.f32 %v11175_v15, %v6615_v20  ;;  %v7552_v63 = vld [vmem:[#allocation7 + $0x8] sm:$0xff]   ;;  %7422 = vmatpush3.bf16.msra.mxu1 %v7551_v26 }
 0x45b   : > { %v10166_v29 = vrot.slane %v6748_v41, %v9106_v16  ;;  %v6756_v50 = vcombine.high %v6748_v41, %v6748_v41  ;;  %v3602_v42 = vadd.f32 %v3586_v52, %v3366_v2  ;;  %v4026_v52 = vmul.f32 %v11148_v44, %v3979_v11  ;;  %7423 = vmatprep.subr.bf16.mxu1 %v7552_v63 }
 0x45c   : > { %v4199_v41 = vrot.slane %v4152_v8, %v9109_v24  ;;  %v5801_v4 = vadd.f32 %v5785_v38, %v5581_v25  ;;  %v4466_v62 = vmul.f32 %v4419_v48, %v11165_v5  ;;  %v4812_v25 = vcombine.high %v9913_v27, %v9913_v27  ;;  %v7553_v38 = vld [vmem:[#allocation7 + $0x10] sm:$0xff]  }
 0x45d   : > { %v6825_v9 = vrot.slane %v10166_v29, %v9109_v24  ;;  %v10178_v32 = vrot.slane %v6756_v50, %v9106_v16  ;;  %v3822_v21 = vadd.f32 %v3806_v46, %v3602_v42  ;;  %v4639_v50 = vrot.slane %v4592_v36, %v9109_v24 }
 0x45e   : > { %v4246_v0 = vmul.f32 %v4199_v41, %v11151_v61  ;;  %v6021_v8 = vadd.f32 %v6005_v28, %v5801_v4  ;;  %v5252_v20 = vcombine.high %v9921_v12, %v9921_v12  ;;  %v5472_v42 = vcombine.high %v9947_v55, %v9947_v55  ;;  %7424 = vmatpush3.bf16.msra.mxu1 %v7552_v63 }
 0x45f   : > { %v6878_v2 = vmul.f32 %v6825_v9, %v6680_v31  ;;  %v6829_v39 = vrot.slane %v10178_v32, %v9109_v24  ;;  %v4042_v16 = vadd.f32 %v4026_v52, %v3822_v21  ;;  %v5032_v31 = vcombine.high %v9917_v14, %v9917_v14  ;;  %7425 = vmatprep.subr.bf16.mxu1 %v7553_v38  ;;  %v7554_v21 = vld [vmem:[#allocation7 + $0x18] sm:$0xff]  }
 0x460   : > { %v5692_v4 = vcombine.high %v9970_v58, %v9970_v58  ;;  %v6241_v28 = vadd.f32 %v6225_v30, %v6021_v8  ;;  %v4859_v11 = vrot.slane %v4812_v25, %v9109_v24  ;;  %v5912_v27 = vcombine.high %v9974_v54, %v9974_v54 }
 0x461   : > { %6894 = vxpose.xlu1.b32.cont [9/16] %v6878_v2, 128  ;;  %v4262_v46 = vadd.f32 %v4246_v0, %v4042_v16  ;;  %v5079_v14 = vrot.slane %v5032_v31, %v9109_v24  ;;  %v5299_v36 = vrot.slane %v5252_v20, %v9109_v24  ;;  %v5519_v12 = vrot.slane %v5472_v42, %v9109_v24 }
 0x462   : > { %v5739_v55 = vrot.slane %v5692_v4, %v9109_v24  ;;  %v6461_v9 = vadd.f32 %v6445_v47, %v6241_v28  ;;  %v4686_v58 = vmul.f32 %v11166_v43, %v4639_v50  ;;  %v4906_v16 = vmul.f32 %v11167_v18, %v4859_v11  ;;  %7426 = vmatpush3.bf16.msra.mxu1 %v7553_v38 }
 0x463   : > { %v4482_v41 = vadd.f32 %v4466_v62, %v4262_v46  ;;  %v5126_v30 = vmul.f32 %v5079_v14, %v11168_v45  ;;  %v5346_v54 = vmul.f32 %v5299_v36, %v11169_v35  ;;  %v5566_v48 = vmul.f32 %v11170_v56, %v5519_v12  ;;  %7427 = vmatprep.subr.bf16.mxu1 %v7554_v21 }
 0x464   : > { %v5959_v26 = vrot.slane %v5912_v27, %v9109_v24  ;;  %v6681_v52 = vadd.f32 %v6665_v23, %v6461_v9  ;;  %v5786_v47 = vmul.f32 %v11171_v60, %v5739_v55  ;;  %v6132_v0 = vcombine.high %v9978_v51, %v9978_v51 }
 0x465   : > { %v4702_v2 = vadd.f32 %v4686_v58, %v4482_v41  ;;  %v6352_v63 = vcombine.high %v10001_v59, %v10001_v59  ;;  %v6572_v50 = vcombine.high %v10090_v33, %v10090_v33  ;;  %v6786_v8 = vcombine.high %v10166_v29, %v10166_v29  ;;  %v7555_v29 = vld [vmem:[#allocation7 + $0x20] sm:$0xff]  }
 0x466   : > { %v3274_v62 = vcombine.high %v10019_v6, %v10019_v6  ;;  %v6879_v25 = vmul.f32 %v6829_v39, %v6681_v52  ;;  %v6179_v31 = vrot.slane %v6132_v0, %v9109_v24  ;;  %v3494_v20 = vcombine.high %v10022_v49, %v10022_v49  ;;  %7428 = vmatpush3.bf16.msra.mxu1 %v7554_v21 }
 0x467   : > { %v4922_v23 = vadd.f32 %v4906_v16, %v4702_v2  ;;  %v6006_v51 = vmul.f32 %v5959_v26, %v11172_v3  ;;  %v6399_v59 = vrot.slane %v6352_v63, %v9109_v24  ;;  %v6619_v33 = vrot.slane %v6572_v50, %v9109_v24  ;;  %7429 = vmatprep.subr.bf16.mxu1 %v7555_v29  ;;  %v11223_v63 = vld [vmem:[#allocation31_spill] sm:$0xff] }
 0x468   : > { %v3323_v42 = vrot.slane %v3274_v62, %v9109_v24  ;;  %6895 = vxpose.xlu1.b32.cont [10/16] %v6879_v25, 128  ;;  %v10231_v39 = vrot.slane %v6786_v8, %v9109_v24  ;;  %v3543_v4 = vrot.slane %v3494_v20, %v9109_v24  ;;  %v3714_v49 = vcombine.high %v10025_v7, %v10025_v7  ;;  %v11224_v25 = vld [vmem:[#allocation46_spill] sm:$0xff] }
 0x469   : > { %v5142_v6 = vadd.f32 %v5126_v30, %v4922_v23  ;;  %v6226_v38 = vmul.f32 %v6179_v31, %v11173_v17  ;;  %v6446_v28 = vmul.f32 %v11174_v13, %v6399_v59  ;;  %v3934_v11 = vcombine.high %v10029_v10, %v10029_v10  ;;  %v11226_v59 = vld [vmem:[#allocation47_spill] sm:$0xff] }
 0x46a   : > { %v3367_v46 = vmul.f32 %v3323_v42, %v8761_v57  ;;  %v3587_v14 = vmul.f32 %v3543_v4, %v8768_v22  ;;  %v3763_v36 = vrot.slane %v3714_v49, %v9109_v24  ;;  %v4154_v12 = vcombine.high %v10032_v40, %v10032_v40  ;;  %7430 = vmatpush3.bf16.msra.mxu1 %v7555_v29  ;;  %v11227_v42 = vld [vmem:[#allocation45_spill] sm:$0xff] }
 0x46b   : > { %v5362_v27 = vadd.f32 %v5346_v54, %v5142_v6  ;;  %v3983_v7 = vrot.slane %v3934_v11, %v9109_v24  ;;  %v4374_v55 = vcombine.high %v10051_v53, %v10051_v53  ;;  %v4594_v9 = vcombine.high %v10067_v1, %v10067_v1 }
 0x46c   : > { %v4814_v10 = vcombine.high %v10081_v37, %v10081_v37  ;;  %v3603_v58 = vadd.f32 %v3587_v14, %v3367_v46  ;;  %v3807_v16 = vmul.f32 %v11146_v34, %v3763_v36  ;;  %v4203_v30 = vrot.slane %v4154_v12, %v9109_v24 }
 0x46d   : > { %v5582_v41 = vadd.f32 %v5566_v48, %v5362_v27  ;;  %v6666_v40 = vmul.f32 %v11175_v15, %v6619_v33  ;;  %v4027_v54 = vmul.f32 %v11148_v44, %v3983_v7  ;;  %v4423_v26 = vrot.slane %v4374_v55, %v9109_v24  ;;  %v11228_v55 = vld [vmem:[#allocation17_spill] sm:$0xff] }
 0x46e   : > { %v4643_v53 = vrot.slane %v4594_v9, %v9109_v24  ;;  %v3823_v1 = vadd.f32 %v3807_v16, %v3603_v58  ;;  %v4863_v52 = vrot.slane %v4814_v10, %v9109_v24  ;;  %v5034_v37 = vcombine.high %v10084_v19, %v10084_v19  ;;  %v11225_v19 = vld [vmem:[#allocation16_spill] sm:$0xff]  ;;  %v11229_v58 = vld [vmem:[#allocation19_spill] sm:$0xff] }
 0x46f   : > { %v5802_v21 = vadd.f32 %v5786_v47, %v5582_v41  ;;  %v4247_v48 = vmul.f32 %v4203_v30, %v11151_v61  ;;  %v4467_v2 = vmul.f32 %v4423_v26, %v11165_v5  ;;  %v5254_v50 = vcombine.high %v11223_v63, %v11223_v63 }
 0x470   : > { %v4687_v0 = vmul.f32 %v11166_v43, %v4643_v53  ;;  %v4043_v62 = vadd.f32 %v4027_v54, %v3823_v1  ;;  %v5083_v47 = vrot.slane %v5034_v37, %v9109_v24  ;;  %v5474_v23 = vcombine.high %v11224_v25, %v11224_v25 }
 0x471   : > { %v6022_v8 = vadd.f32 %v6006_v51, %v5802_v21  ;;  %v5303_v31 = vrot.slane %v5254_v50, %v9109_v24  ;;  %v5694_v20 = vcombine.high %v11225_v19, %v11225_v19  ;;  %v5914_v33 = vcombine.high %v11226_v59, %v11226_v59  ;;  %v11230_v21 = vld [vmem:[#allocation24_spill] sm:$0xff] }
 0x472   : > { %v6134_v29 = vcombine.high %v11227_v42, %v11227_v42  ;;  %v4263_v4 = vadd.f32 %v4247_v48, %v4043_v62  ;;  %v4907_v51 = vmul.f32 %v11167_v18, %v4863_v52  ;;  %v5523_v49 = vrot.slane %v5474_v23, %v9109_v24  ;;  %v11231_v52 = vld [vmem:[#allocation53_spill] sm:$0xff]  ;;  %v11232_v48 = vld [vmem:[#allocation18_spill] sm:$0xff]  ;;  %v11235_v19 = vld [vmem:[#allocation52_spill] sm:$0xff] }
 0x473   : > { %v6242_v6 = vadd.f32 %v6226_v38, %v6022_v8  ;;  %v5127_v46 = vmul.f32 %v5083_v47, %v11168_v45  ;;  %v5743_v11 = vrot.slane %v5694_v20, %v9109_v24  ;;  %v5963_v27 = vrot.slane %v5914_v33, %v9109_v24  ;;  %v11233_v8 = vld [vmem:[#allocation22_spill] sm:$0xff]  ;;  %v11236_v59 = vld [vmem:[#allocation28_spill] sm:$0xff] }
 0x474   : > { %v6183_v14 = vrot.slane %v6134_v29, %v9109_v24  ;;  %v4483_v12 = vadd.f32 %v4467_v2, %v4263_v4  ;;  %v5347_v7 = vmul.f32 %v5303_v31, %v11169_v35  ;;  %v6354_v38 = vcombine.high %v11228_v55, %v11228_v55  ;;  %v11237_v4 = vld [vmem:[#allocation54_spill] sm:$0xff] }
 0x475   : > { %v6462_v36 = vadd.f32 %v6446_v28, %v6242_v6  ;;  %v5567_v9 = vmul.f32 %v11170_v56, %v5523_v49  ;;  %v5787_v10 = vmul.f32 %v11171_v60, %v5743_v11  ;;  %v6007_v41 = vmul.f32 %v5963_v27, %v11172_v3 }
 0x476   : > { %v6574_v16 = vcombine.high %v11229_v58, %v11229_v58  ;;  %v4703_v54 = vadd.f32 %v4687_v0, %v4483_v12  ;;  %v6403_v26 = vrot.slane %v6354_v38, %v9109_v24  ;;  %v6788_v28 = vcombine.high %v10178_v32, %v10178_v32 }
 0x477   : > { %v6682_v30 = vadd.f32 %v6666_v40, %v6462_v36  ;;  %v6227_v53 = vmul.f32 %v6183_v14, %v11173_v17  ;;  %v3227_v1 = vcombine.high %v11230_v21, %v11230_v21  ;;  %v3447_v37 = vcombine.high %v11231_v52, %v11231_v52 }
 0x478   : > { %v3667_v2 = vcombine.high %v11232_v48, %v11232_v48  ;;  %v4923_v40 = vadd.f32 %v4907_v51, %v4703_v54  ;;  %v6447_v0 = vmul.f32 %v11174_v13, %v6403_v26  ;;  %v6623_v50 = vrot.slane %v6574_v16, %v9109_v24 }
 0x479   : > { %v6880_v63 = vmul.f32 %v10231_v39, %v6682_v30  ;;  %v10304_v32 = vrot.slane %v6788_v28, %v9109_v24  ;;  %v10307_v62 = vrot.slane %v3227_v1, %v11233_v8  ;;  %v10310_v47 = vrot.slane %v3447_v37, %v11233_v8  ;;  %v11234_v39 = vld [vmem:[#allocation25_spill] sm:$0xff] }
 0x47a   : > { %v10313_v25 = vrot.slane %v3667_v2, %v11233_v8  ;;  %v5143_v23 = vadd.f32 %v5127_v46, %v4923_v40  ;;  %v3887_v31 = vcombine.high %v11234_v39, %v11234_v39  ;;  %v4107_v20 = vcombine.high %v11235_v19, %v11235_v19  ;;  %v11238_v2 = vld [vmem:[#allocation32_spill] sm:$0xff]  ;;  %v11239_v40 = vld [vmem:[#allocation26_spill] sm:$0xff] }
 0x47b   : > { %6896 = vxpose.xlu1.b32.cont [11/16] %v6880_v63, 128  ;;  %v4327_v33 = vcombine.high %v11236_v59, %v11236_v59  ;;  %v10323_v42 = vrot.slane %v10307_v62, %v11233_v8  ;;  %v10327_v29 = vrot.slane %v10310_v47, %v11233_v8  ;;  %v4547_v51 = vcombine.high %v11237_v4, %v11237_v4 }
 0x47c   : > { %v10331_v6 = vrot.slane %v10313_v25, %v11233_v8  ;;  %v5363_v49 = vadd.f32 %v5347_v7, %v5143_v23  ;;  %v10336_v46 = vrot.slane %v3887_v31, %v11233_v8  ;;  %v10339_v11 = vrot.slane %v4107_v20, %v11233_v8 }
 0x47d   : > { %v10342_v27 = vrot.slane %v4327_v33, %v11233_v8  ;;  %v3327_v14 = vrot.slane %v10323_v42, %v9109_v24  ;;  %v3547_v36 = vrot.slane %v10327_v29, %v9109_v24  ;;  %v10351_v7 = vrot.slane %v4547_v51, %v11233_v8  ;;  %v11240_v51 = vld [vmem:[#allocation12_spill] sm:$0xff] }
 0x47e   : > { %v3767_v12 = vrot.slane %v10331_v6, %v9109_v24  ;;  %v5583_v55 = vadd.f32 %v5567_v9, %v5363_v49  ;;  %v10355_v38 = vrot.slane %v10336_v46, %v11233_v8  ;;  %v10359_v58 = vrot.slane %v10339_v11, %v11233_v8  ;;  %v11241_v49 = vld [vmem:[#allocation43_spill] sm:$0xff] }
 0x47f   : > { %v10363_v16 = vrot.slane %v10342_v27, %v11233_v8  ;;  %v6667_v30 = vmul.f32 %v11175_v15, %v6623_v50  ;;  %v3368_v54 = vmul.f32 %v3327_v14, %v8761_v57  ;;  %v3588_v26 = vmul.f32 %v3547_v36, %v8768_v22  ;;  %v11242_v36 = vld [vmem:[#allocation27_spill] sm:$0xff] }
 0x480   : > { %v10370_v9 = vrot.slane %v10351_v7, %v11233_v8  ;;  %v5803_v28 = vadd.f32 %v5787_v10, %v5583_v55  ;;  %v3987_v21 = vrot.slane %v10355_v38, %v9109_v24  ;;  %v4207_v1 = vrot.slane %v10359_v58, %v9109_v24 }
 0x481   : > { %v4427_v52 = vrot.slane %v10363_v16, %v9109_v24  ;;  %v3604_v37 = vadd.f32 %v3588_v26, %v3368_v54  ;;  %v3808_v48 = vmul.f32 %v11146_v34, %v3767_v12  ;;  %v4767_v63 = vcombine.high %v11238_v2, %v11238_v2 }
 0x482   : > { %v4987_v50 = vcombine.high %v11239_v40, %v11239_v40  ;;  %v6023_v23 = vadd.f32 %v6007_v41, %v5803_v28  ;;  %v4028_v10 = vmul.f32 %v11148_v44, %v3987_v21  ;;  %v4248_v39 = vmul.f32 %v4207_v1, %v11151_v61  ;;  %v11243_v28 = vld [vmem:[#allocation41_spill] sm:$0xff] }
 0x483   : > { %v4647_v31 = vrot.slane %v10370_v9, %v9109_v24  ;;  %v3824_v19 = vadd.f32 %v3808_v48, %v3604_v37  ;;  %v4468_v20 = vmul.f32 %v4427_v52, %v11165_v5  ;;  %v10389_v59 = vrot.slane %v4767_v63, %v11233_v8 }
 0x484   : > { %v10392_v33 = vrot.slane %v4987_v50, %v11233_v8  ;;  %v6243_v4 = vadd.f32 %v6227_v53, %v6023_v23  ;;  %v5207_v41 = vcombine.high %v11240_v51, %v11240_v51  ;;  %v5427_v14 = vcombine.high %v11241_v49, %v11241_v49 }
 0x485   : > { %v5647_v12 = vcombine.high %v11242_v36, %v11242_v36  ;;  %v4044_v55 = vadd.f32 %v4028_v10, %v3824_v19  ;;  %v10402_v54 = vrot.slane %v10389_v59, %v11233_v8  ;;  %v5867_v53 = vcombine.high %v11243_v28, %v11243_v28  ;;  %v11245_v36 = vld [vmem:[#allocation34_spill] sm:$0xff] }
 0x486   : > { %v10406_v26 = vrot.slane %v10392_v33, %v11233_v8  ;;  %v6463_v21 = vadd.f32 %v6447_v0, %v6243_v4  ;;  %v10411_v1 = vrot.slane %v5207_v41, %v11233_v8  ;;  %v10414_v52 = vrot.slane %v5427_v14, %v11233_v8 }
 0x487   : > { %v10417_v37 = vrot.slane %v5647_v12, %v11233_v8  ;;  %v4264_v48 = vadd.f32 %v4248_v39, %v4044_v55  ;;  %v4867_v2 = vrot.slane %v10402_v54, %v9109_v24  ;;  %v10424_v40 = vrot.slane %v5867_v53, %v11233_v8  ;;  %v11247_v53 = vld [vmem:[#allocation50_spill] sm:$0xff] }
 0x488   : > { %v5087_v63 = vrot.slane %v10406_v26, %v9109_v24  ;;  %v6683_v0 = vadd.f32 %v6667_v30, %v6463_v21  ;;  %v10428_v50 = vrot.slane %v10411_v1, %v11233_v8  ;;  %v10432_v23 = vrot.slane %v10414_v52, %v11233_v8 }
 0x489   : > { %v10436_v10 = vrot.slane %v10417_v37, %v11233_v8  ;;  %v4484_v39 = vadd.f32 %v4468_v20, %v4264_v48  ;;  %v4688_v19 = vmul.f32 %v11166_v43, %v4647_v31  ;;  %v10441_v4 = vrot.slane %v10424_v40, %v11233_v8  ;;  %v11246_v20 = vld [vmem:[#allocation36_spill] sm:$0xff] }
 0x48a   : > { %v6881_v30 = vmul.f32 %v10304_v32, %v6683_v0  ;;  %v4908_v51 = vmul.f32 %v11167_v18, %v4867_v2  ;;  %v5307_v41 = vrot.slane %v10428_v50, %v9109_v24  ;;  %v5128_v14 = vmul.f32 %v5087_v63, %v11168_v45 }
 0x48b   : > { %11244 = vst [vmem:[#allocation51_spill] sm:$0xff] %v10441_v4  ;;  %v4704_v49 = vadd.f32 %v4688_v19, %v4484_v39  ;;  %v6087_v12 = vcombine.high %v11245_v36, %v11245_v36  ;;  %v6307_v31 = vcombine.high %v11246_v20, %v11246_v20  ;;  %v5527_v55 = vrot.slane %v10432_v23, %v9109_v24  ;;  %v11248_v19 = vld [vmem:[#allocation23_spill] sm:$0xff] }
 0x48c   : > { %6897 = vxpose.xlu1.b32.cont [12/16] %v6881_v30, 128  ;;  %v5747_v32 = vrot.slane %v10436_v10, %v9109_v24  ;;  %v5967_v28 = vrot.slane %v10441_v4, %v9109_v24  ;;  %v6527_v21 = vcombine.high %v11247_v53, %v11247_v53  ;;  %v5348_v2 = vmul.f32 %v5307_v41, %v11169_v35 }
 0x48d   : > { %v4924_v48 = vadd.f32 %v4908_v51, %v4704_v49  ;;  %v10462_v63 = vrot.slane %v6087_v12, %v11233_v8  ;;  %v10465_v0 = vrot.slane %v6307_v31, %v11233_v8  ;;  %v6741_v30 = vcombine.high %v11248_v19, %v11248_v19 }
 0x48e   : > { %v10468_v39 = vrot.slane %v6527_v21, %v11233_v8  ;;  %v3243_v36 = vcombine.high %v10307_v62, %v10307_v62  ;;  %v3463_v51 = vcombine.high %v10310_v47, %v10310_v47  ;;  %v3683_v20 = vcombine.high %v10313_v25, %v10313_v25 }
 0x48f   : > { %v5144_v49 = vadd.f32 %v5128_v14, %v4924_v48  ;;  %v10478_v41 = vrot.slane %v10462_v63, %v11233_v8  ;;  %v10482_v12 = vrot.slane %v10465_v0, %v11233_v8  ;;  %v10491_v62 = vrot.slane %v6741_v30, %v11233_v8 }
 0x490   : > { %v10488_v31 = vrot.slane %v10468_v39, %v11233_v8  ;;  %v10494_v47 = vrot.slane %v3243_v36, %v11233_v8  ;;  %v10497_v14 = vrot.slane %v3463_v51, %v11233_v8  ;;  %v5568_v21 = vmul.f32 %v11170_v56, %v5527_v55 }
 0x491   : > { %11249 = vst [vmem:[#allocation13_spill] sm:$0xff] %v10478_v41  ;;  %11250 = vst [vmem:[#allocation60_spill] sm:$0xff] %v10482_v12  ;;  %v5364_v53 = vadd.f32 %v5348_v2, %v5144_v49  ;;  %v10501_v48 = vrot.slane %v3683_v20, %v11233_v8  ;;  %v5788_v25 = vmul.f32 %v11171_v60, %v5747_v32 }
 0x492   : > { %11251 = vst [vmem:[#allocation62_spill] sm:$0xff] %v10488_v31  ;;  %11252 = vst [vmem:[#allocation63_spill] sm:$0xff] %v10497_v14  ;;  %v6008_v19 = vmul.f32 %v5967_v28, %v11172_v3  ;;  %v3331_v30 = vrot.slane %v10494_v47, %v9109_v24  ;;  %v3551_v36 = vrot.slane %v10497_v14, %v9109_v24 }
 0x493   : > { %11253 = vst [vmem:[#allocation64_spill] sm:$0xff] %v10501_v48  ;;  %v5584_v4 = vadd.f32 %v5568_v21, %v5364_v53  ;;  %v6187_v51 = vrot.slane %v10478_v41, %v9109_v24  ;;  %v6407_v55 = vrot.slane %v10482_v12, %v9109_v24  ;;  %v3771_v2 = vrot.slane %v10501_v48, %v9109_v24 }
 0x494   : > { %v6627_v32 = vrot.slane %v10488_v31, %v9109_v24  ;;  %v10519_v28 = vrot.slane %v10491_v62, %v11233_v8  ;;  %v3369_v49 = vmul.f32 %v3331_v30, %v8761_v57  ;;  %v3589_v20 = vmul.f32 %v3551_v36, %v8768_v22 }
 0x495   : > { %v5804_v53 = vadd.f32 %v5788_v25, %v5584_v4  ;;  %v3809_v21 = vmul.f32 %v11146_v34, %v3771_v2  ;;  %v3903_v12 = vcombine.high %v10336_v46, %v10336_v46  ;;  %v4123_v41 = vcombine.high %v10339_v11, %v10339_v11 }
 0x496   : > { %11254 = vst [vmem:[#allocation65_spill] sm:$0xff] %v10519_v28  ;;  %v3605_v48 = vadd.f32 %v3589_v20, %v3369_v49  ;;  %v4343_v31 = vcombine.high %v10342_v27, %v10342_v27  ;;  %v4563_v14 = vcombine.high %v10351_v7, %v10351_v7  ;;  %v4783_v30 = vcombine.high %v10389_v59, %v10389_v59 }
 0x497   : > { %v6024_v36 = vadd.f32 %v6008_v19, %v5804_v53  ;;  %v6228_v4 = vmul.f32 %v6187_v51, %v11173_v17  ;;  %v10536_v25 = vrot.slane %v3903_v12, %v11233_v8  ;;  %v10539_v46 = vrot.slane %v4123_v41, %v11233_v8 }
 0x498   : > { %v3825_v11 = vadd.f32 %v3809_v21, %v3605_v48  ;;  %v10542_v2 = vrot.slane %v4343_v31, %v11233_v8  ;;  %v10545_v27 = vrot.slane %v4563_v14, %v11233_v8  ;;  %v5003_v7 = vcombine.high %v10392_v33, %v10392_v33 }
 0x499   : > { %v6244_v59 = vadd.f32 %v6228_v4, %v6024_v36  ;;  %v6448_v19 = vmul.f32 %v11174_v13, %v6407_v55  ;;  %v3991_v12 = vrot.slane %v10536_v25, %v9109_v24  ;;  %v4211_v41 = vrot.slane %v10539_v46, %v9109_v24 }
 0x49a   : > { %v6668_v48 = vmul.f32 %v11175_v15, %v6627_v32  ;;  %v10556_v31 = vrot.slane %v4783_v30, %v11233_v8  ;;  %v5223_v14 = vcombine.high %v10411_v1, %v10411_v1  ;;  %v6841_v33 = vrot.slane %v10519_v28, %v9109_v24  ;;  %v7556_v28 = vld [vmem:[#allocation7 + $0x28] sm:$0xff]  }
 0x49b   : > { %v6464_v51 = vadd.f32 %v6448_v19, %v6244_v59  ;;  %v4029_v55 = vmul.f32 %v11148_v44, %v3991_v12  ;;  %v4431_v49 = vrot.slane %v10542_v2, %v9109_v24  ;;  %v4651_v20 = vrot.slane %v10545_v27, %v9109_v24  ;;  %7431 = vmatprep.subr.bf16.mxu1 %v7556_v28 }
 0x49c   : > { %v10568_v32 = vrot.slane %v5003_v7, %v11233_v8  ;;  %v10571_v53 = vrot.slane %v5223_v14, %v11233_v8  ;;  %v4249_v30 = vmul.f32 %v4211_v41, %v11151_v61  ;;  %v5443_v36 = vcombine.high %v10414_v52, %v10414_v52  ;;  %7432 = vmatpush3.bf16.msra.mxu1 %v7556_v28 }
 0x49d   : > { %v6684_v21 = vadd.f32 %v6668_v48, %v6464_v51  ;;  %v4045_v1 = vadd.f32 %v4029_v55, %v3825_v11  ;;  %v4871_v4 = vrot.slane %v10556_v31, %v9109_v24  ;;  %v4469_v12 = vmul.f32 %v4431_v49, %v11165_v5 }
 0x49e   : > { %v5663_v7 = vcombine.high %v10417_v37, %v10417_v37  ;;  %v5091_v48 = vrot.slane %v10568_v32, %v9109_v24  ;;  %v5311_v11 = vrot.slane %v10571_v53, %v9109_v24  ;;  %v5883_v52 = vcombine.high %v10424_v40, %v10424_v40 }
 0x49f   : > { %v6882_v59 = vmul.f32 %v6841_v33, %v6684_v21  ;;  %v4265_v19 = vadd.f32 %v4249_v30, %v4045_v1  ;;  %v4689_v14 = vmul.f32 %v11166_v43, %v4651_v20  ;;  %v10589_v51 = vrot.slane %v5443_v36, %v11233_v8  ;;  %v7557_v30 = vld [vmem:[#allocation7 + $0x30] sm:$0xff]  }
 0x4a0   : > { %v6103_v37 = vcombine.high %v10462_v63, %v10462_v63  ;;  %v6323_v33 = vcombine.high %v10465_v0, %v10465_v0  ;;  %v4909_v49 = vmul.f32 %v11167_v18, %v4871_v4  ;;  %v10597_v21 = vrot.slane %v5663_v7, %v11233_v8  ;;  %7433 = vmatprep.subr.bf16.mxu1 %v7557_v30 }
 0x4a1   : > { %6898 = vxpose.xlu1.b32.cont [13/16] %v6882_v59, 128  ;;  %v4485_v41 = vadd.f32 %v4469_v12, %v4265_v19  ;;  %v5129_v40 = vmul.f32 %v5091_v48, %v11168_v45  ;;  %v5349_v20 = vmul.f32 %v5311_v11, %v11169_v35  ;;  %v10602_v1 = vrot.slane %v5883_v52, %v11233_v8  ;;  %v7558_v52 = vld [vmem:[#allocation7 + $0x38] sm:$0xff]  }
 0x4a2   : > { %v5531_v0 = vrot.slane %v10589_v51, %v9109_v24  ;;  %v10607_v36 = vrot.slane %v6103_v37, %v11233_v8  ;;  %v3273_v4 = vcombine.high %v10323_v42, %v10323_v42  ;;  %v10612_v28 = vrot.slane %v6323_v33, %v11233_v8  ;;  %7434 = vmatpush3.bf16.msra.mxu1 %v7557_v30 }
 0x4a3   : > { %v4705_v55 = vadd.f32 %v4689_v14, %v4485_v41  ;;  %v3493_v59 = vcombine.high %v10327_v29, %v10327_v29  ;;  %v3713_v19 = vcombine.high %v10331_v6, %v10331_v6  ;;  %v3933_v12 = vcombine.high %v10355_v38, %v10355_v38  ;;  %7435 = vmatprep.subr.bf16.mxu1 %v7558_v52 }
 0x4a4   : > { %v5751_v48 = vrot.slane %v10597_v21, %v9109_v24  ;;  %v6543_v42 = vcombine.high %v10468_v39, %v10468_v39  ;;  %v3335_v11 = vrot.slane %v3273_v4, %v9109_v24  ;;  %v5971_v29 = vrot.slane %v10602_v1, %v9109_v24 }
 0x4a5   : > { %v4925_v63 = vadd.f32 %v4909_v49, %v4705_v55  ;;  %v3555_v6 = vrot.slane %v3493_v59, %v9109_v24  ;;  %v3775_v41 = vrot.slane %v3713_v19, %v9109_v24  ;;  %v4153_v38 = vcombine.high %v10359_v58, %v10359_v58 }
 0x4a6   : > { %v5569_v37 = vmul.f32 %v11170_v56, %v5531_v0  ;;  %v6191_v39 = vrot.slane %v10607_v36, %v9109_v24  ;;  %v3370_v33 = vmul.f32 %v3335_v11, %v8761_v57  ;;  %v6757_v55 = vcombine.high %v10491_v62, %v10491_v62  ;;  %7436 = vmatpush3.bf16.msra.mxu1 %v7558_v52 }
 0x4a7   : > { %v5145_v7 = vadd.f32 %v5129_v40, %v4925_v63  ;;  %v3590_v49 = vmul.f32 %v3555_v6, %v8768_v22  ;;  %v3995_v40 = vrot.slane %v3933_v12, %v9109_v24  ;;  %v4373_v30 = vcombine.high %v10363_v16, %v10363_v16 }
 0x4a8   : > { %v10643_v63 = vrot.slane %v6543_v42, %v11233_v8  ;;  %v4593_v0 = vcombine.high %v10370_v9, %v10370_v9  ;;  %v3810_v62 = vmul.f32 %v11146_v34, %v3775_v41  ;;  %v4215_v59 = vrot.slane %v4153_v38, %v9109_v24 }
 0x4a9   : > { %v5365_v14 = vadd.f32 %v5349_v20, %v5145_v7  ;;  %v5789_v20 = vmul.f32 %v11171_v60, %v5751_v48  ;;  %v3606_v4 = vadd.f32 %v3590_v49, %v3370_v33  ;;  %v6009_v12 = vmul.f32 %v5971_v29, %v11172_v3 }
 0x4aa   : > { %v6411_v16 = vrot.slane %v10612_v28, %v9109_v24  ;;  %v4813_v7 = vcombine.high %v10402_v54, %v10402_v54  ;;  %v6229_v48 = vmul.f32 %v6191_v39, %v11173_v17  ;;  %v4030_v9 = vmul.f32 %v11148_v44, %v3995_v40 }
 0x4ab   : > { %v5585_v58 = vadd.f32 %v5569_v37, %v5365_v14  ;;  %v3826_v42 = vadd.f32 %v3810_v62, %v3606_v4  ;;  %v4435_v11 = vrot.slane %v4373_v30, %v9109_v24  ;;  %v6631_v6 = vrot.slane %v10643_v63, %v9109_v24 }
 0x4ac   : > { %v10660_v41 = vrot.slane %v6757_v55, %v11233_v8  ;;  %v4655_v29 = vrot.slane %v4593_v0, %v9109_v24  ;;  %v4250_v14 = vmul.f32 %v4215_v59, %v11151_v61  ;;  %v5033_v54 = vcombine.high %v10406_v26, %v10406_v26 }
 0x4ad   : > { %v5805_v19 = vadd.f32 %v5789_v20, %v5585_v58  ;;  %v4046_v38 = vadd.f32 %v4030_v9, %v3826_v42  ;;  %v5253_v37 = vcombine.high %v10428_v50, %v10428_v50  ;;  %v6449_v33 = vmul.f32 %v11174_v13, %v6411_v16  ;;  %v11256_v42 = vld [vmem:[#allocation51_spill] sm:$0xff] }
 0x4ae   : > { %v4875_v49 = vrot.slane %v4813_v7, %v9109_v24  ;;  %v4470_v8 = vmul.f32 %v4435_v11, %v11165_v5  ;;  %v5473_v55 = vcombine.high %v10432_v23, %v10432_v23  ;;  %v6669_v58 = vmul.f32 %v11175_v15, %v6631_v6  ;;  %v11257_v6 = vld [vmem:[#allocation64_spill] sm:$0xff] }
 0x4af   : > { %v6025_v52 = vadd.f32 %v6009_v12, %v5805_v19  ;;  %v4266_v40 = vadd.f32 %v4250_v14, %v4046_v38  ;;  %v6845_v26 = vrot.slane %v10660_v41, %v9109_v24  ;;  %v4690_v20 = vmul.f32 %v11166_v43, %v4655_v29  ;;  %v11255_v12 = vld [vmem:[#allocation63_spill] sm:$0xff] }
 0x4b0   : > { %v5095_v0 = vrot.slane %v5033_v54, %v9109_v24  ;;  %v5315_v4 = vrot.slane %v5253_v37, %v9109_v24  ;;  %v3275_v62 = vcombine.high %v10494_v47, %v10494_v47  ;;  %v4910_v19 = vmul.f32 %v11167_v18, %v4875_v49 }
 0x4b1   : > { %v6245_v39 = vadd.f32 %v6229_v48, %v6025_v52  ;;  %v4486_v50 = vadd.f32 %v4470_v8, %v4266_v40  ;;  %v5693_v23 = vcombine.high %v10436_v10, %v10436_v10  ;;  %v3495_v16 = vcombine.high %v11255_v12, %v11255_v12 }
 0x4b2   : > { %v5535_v48 = vrot.slane %v5473_v55, %v9109_v24  ;;  %v5913_v9 = vcombine.high %v11256_v42, %v11256_v42  ;;  %v3339_v11 = vrot.slane %v3275_v62, %v9109_v24  ;;  %v3715_v29 = vcombine.high %v11257_v6, %v11257_v6 }
 0x4b3   : > { %v6465_v30 = vadd.f32 %v6449_v33, %v6245_v39  ;;  %v4706_v7 = vadd.f32 %v4690_v20, %v4486_v50  ;;  %v3559_v47 = vrot.slane %v3495_v16, %v9109_v24  ;;  %v3935_v10 = vcombine.high %v10536_v25, %v10536_v25  ;;  %v11260_v16 = vld [vmem:[#allocation62_spill] sm:$0xff] }
 0x4b4   : > { %v5130_v14 = vmul.f32 %v5095_v0, %v11168_v45  ;;  %v3371_v54 = vmul.f32 %v3339_v11, %v8761_v57  ;;  %v4155_v37 = vcombine.high %v10539_v46, %v10539_v46  ;;  %v3779_v33 = vrot.slane %v3715_v29, %v9109_v24  ;;  %v11259_v0 = vld [vmem:[#allocation60_spill] sm:$0xff] }
 0x4b5   : > { %v6685_v59 = vadd.f32 %v6669_v58, %v6465_v30  ;;  %v4926_v38 = vadd.f32 %v4910_v19, %v4706_v7  ;;  %v3591_v39 = vmul.f32 %v3559_v47, %v8768_v22  ;;  %v3999_v49 = vrot.slane %v3935_v10, %v9109_v24  ;;  %v11258_v30 = vld [vmem:[#allocation13_spill] sm:$0xff] }
 0x4b6   : > { %v4375_v40 = vcombine.high %v10542_v2, %v10542_v2  ;;  %v5350_v25 = vmul.f32 %v5315_v4, %v11169_v35  ;;  %v5755_v55 = vrot.slane %v5693_v23, %v9109_v24  ;;  %v6133_v57 = vcombine.high %v11258_v30, %v11258_v30 }
 0x4b7   : > { %v6883_v52 = vmul.f32 %v6845_v26, %v6685_v59  ;;  %v5146_v8 = vadd.f32 %v5130_v14, %v4926_v38  ;;  %v3607_v58 = vadd.f32 %v3591_v39, %v3371_v54  ;;  %v3811_v46 = vmul.f32 %v11146_v34, %v3779_v33  ;;  %v11261_v54 = vld [vmem:[#allocation65_spill] sm:$0xff] }
 0x4b8   : > { %v4219_v22 = vrot.slane %v4155_v37, %v9109_v24  ;;  %v4595_v26 = vcombine.high %v10545_v27, %v10545_v27  ;;  %v5570_v50 = vmul.f32 %v11170_v56, %v5535_v48  ;;  %v5975_v2 = vrot.slane %v5913_v9, %v9109_v24 }
 0x4b9   : > { %6899 = vxpose.xlu1.b32.cont [14/16] %v6883_v52, 128  ;;  %v5366_v20 = vadd.f32 %v5350_v25, %v5146_v8  ;;  %v6353_v4 = vcombine.high %v11259_v0, %v11259_v0  ;;  %v3827_v62 = vadd.f32 %v3811_v46, %v3607_v58  ;;  %v4031_v59 = vmul.f32 %v11148_v44, %v3999_v49 }
 0x4ba   : > { %v4439_v19 = vrot.slane %v4375_v40, %v9109_v24  ;;  %v4815_v34 = vcombine.high %v10556_v31, %v10556_v31  ;;  %v5790_v12 = vmul.f32 %v11171_v60, %v5755_v55  ;;  %v6195_v27 = vrot.slane %v6133_v57, %v9109_v24 }
 0x4bb   : > { %v5586_v23 = vadd.f32 %v5570_v50, %v5366_v20  ;;  %v6573_v7 = vcombine.high %v11260_v16, %v11260_v16  ;;  %v4047_v48 = vadd.f32 %v4031_v59, %v3827_v62  ;;  %v4251_v42 = vmul.f32 %v4219_v22, %v11151_v61 }
 0x4bc   : > { %v4659_v9 = vrot.slane %v4595_v26, %v9109_v24  ;;  %v5035_v44 = vcombine.high %v10568_v32, %v10568_v32  ;;  %v6010_v52 = vmul.f32 %v5975_v2, %v11172_v3  ;;  %v6415_v31 = vrot.slane %v6353_v4, %v9109_v24 }
 0x4bd   : > { %v5806_v11 = vadd.f32 %v5790_v12, %v5586_v23  ;;  %v4267_v47 = vadd.f32 %v4251_v42, %v4047_v48  ;;  %v4471_v6 = vmul.f32 %v4439_v19, %v11165_v5  ;;  %v4879_v29 = vrot.slane %v4815_v34, %v9109_v24 }
 0x4be   : > { %v5255_v10 = vcombine.high %v10571_v53, %v10571_v53  ;;  %v6230_v61 = vmul.f32 %v6195_v27, %v11173_v17  ;;  %v6635_v14 = vrot.slane %v6573_v7, %v9109_v24  ;;  %v6787_v32 = vcombine.high %v11261_v54, %v11261_v54 }
 0x4bf   : > { %v6026_v38 = vadd.f32 %v6010_v52, %v5806_v11  ;;  %v4487_v37 = vadd.f32 %v4471_v6, %v4267_v47  ;;  %v4691_v39 = vmul.f32 %v11166_v43, %v4659_v9  ;;  %v5099_v33 = vrot.slane %v5035_v44, %v9109_v24 }
 0x4c0   : > { %v5475_v5 = vcombine.high %v10589_v51, %v10589_v51  ;;  %v6450_v40 = vmul.f32 %v11174_v13, %v6415_v31  ;;  %v4911_v8 = vmul.f32 %v11167_v18, %v4879_v29  ;;  %v5319_v25 = vrot.slane %v5255_v10, %v9109_v24 }
 0x4c1   : > { %v6246_v49 = vadd.f32 %v6230_v61, %v6026_v38  ;;  %v4707_v53 = vadd.f32 %v4691_v39, %v4487_v37  ;;  %v5695_v55 = vcombine.high %v10597_v21, %v10597_v21  ;;  %v6670_v57 = vmul.f32 %v11175_v15, %v6635_v14 }
 0x4c2   : > { %v6849_v43 = vrot.slane %v6787_v32, %v9109_v24  ;;  %v5131_v46 = vmul.f32 %v5099_v33, %v11168_v45  ;;  %v5539_v51 = vrot.slane %v5475_v5, %v9109_v24  ;;  %v5915_v22 = vcombine.high %v10602_v1, %v10602_v1 }
 0x4c3   : > { %v6466_v30 = vadd.f32 %v6450_v40, %v6246_v49  ;;  %v4927_v58 = vadd.f32 %v4911_v8, %v4707_v53  ;;  %v5351_v20 = vmul.f32 %v5319_v25, %v11169_v35  ;;  %v5759_v50 = vrot.slane %v5695_v55, %v9109_v24 }
 0x4c4   : > { %v6135_v21 = vcombine.high %v10607_v36, %v10607_v36  ;;  %v5571_v4 = vmul.f32 %v11170_v56, %v5539_v51  ;;  %v5979_v45 = vrot.slane %v5915_v22, %v9109_v24  ;;  %v6355_v62 = vcombine.high %v10612_v28, %v10612_v28 }
 0x4c5   : > { %v6686_v26 = vadd.f32 %v6670_v57, %v6466_v30  ;;  %v5147_v18 = vadd.f32 %v5131_v46, %v4927_v58  ;;  %v5791_v59 = vmul.f32 %v11171_v60, %v5759_v50  ;;  %v6575_v19 = vcombine.high %v10643_v63, %v10643_v63 }
 0x4c6   : > { %v6199_v35 = vrot.slane %v6135_v21, %v9109_v24  ;;  %v6011_v36 = vmul.f32 %v5979_v45, %v11172_v3  ;;  %v6419_v23 = vrot.slane %v6355_v62, %v9109_v24  ;;  %v6789_v28 = vcombine.high %v10660_v41, %v10660_v41 }
 0x4c7   : > { %v6884_v2 = vmul.f32 %v6849_v43, %v6686_v26  ;;  %v5367_v0 = vadd.f32 %v5351_v20, %v5147_v18  ;;  %v6639_v27 = vrot.slane %v6575_v19, %v9109_v24 }
 0x4c8   : > { %v6231_v12 = vmul.f32 %v6199_v35, %v11173_v17  ;;  %v6451_v60 = vmul.f32 %v11174_v13, %v6419_v23  ;;  %v6853_v63 = vrot.slane %v6789_v28, %v9109_v24 }
 0x4c9   : > { %6900 = vxpose.xlu1.b32.cont [15/16] %v6884_v2, 128  ;;  %v5587_v1 = vadd.f32 %v5571_v4, %v5367_v0  ;;  %v6671_v48 = vmul.f32 %v11175_v15, %v6639_v27 }
 0x4cb   : > { %v5807_v34 = vadd.f32 %v5791_v59, %v5587_v1 }
 0x4cd   : > { %v6027_v56 = vadd.f32 %v6011_v36, %v5807_v34 }
 0x4cf   : > { %v6247_v16 = vadd.f32 %v6231_v12, %v6027_v56 }
 0x4d1   : > { %v6467_v7 = vadd.f32 %v6451_v60, %v6247_v16 }
 0x4d3   : > { %v6687_v42 = vadd.f32 %v6671_v48, %v6467_v7 }
 0x4d5   : > { %v6885_v3 = vmul.f32 %v6853_v63, %v6687_v42 }
 0x4d7   : > { %6901 = vxpose.xlu1.b32.end [16/16] %v6885_v3, 128 }
 0x51b   : > { %v6902_v9 = vpop.trf.xlu1 }
 0x51f   : > { %v6903_v44 = vpop.trf.xlu1 }
 0x520   : > { %v6918_v11 = vpack.c.bf16 %v6903_v44, %v6902_v9 }
 0x522   : > { %7437 = vmatprep.mubr.bf16.mxu1 %v6918_v11 }
 0x523   : > { %v6904_v17 = vpop.trf.xlu1 }
 0x527   : > { %v6905_v52 = vpop.trf.xlu1 }
 0x528   : > { %v6919_v31 = vpack.c.bf16 %v6905_v52, %v6904_v17 }
 0x52a   : > { %7438 = vmatmul.mubr.bf16.vlgmr.msra.gmra.mrb[16].mxu1 %v6919_v31 }
 0x52b   : > { %v6906_v41 = vpop.trf.xlu1 }
 0x52f   : > { %v6907_v47 = vpop.trf.xlu1 }
 0x530   : > { %v6920_v6 = vpack.c.bf16 %v6907_v47, %v6906_v41 }
 0x532   : > { %7441 = vmatprep.mubr.bf16.mxu1 %v6920_v6 }
 0x533   : > { %v6908_v13 = vpop.trf.xlu1 }
 0x537   : > { %v6909_v29 = vpop.trf.xlu1 }
 0x538   : > { %v6921_v15 = vpack.c.bf16 %v6909_v29, %v6908_v13 }
 0x53a   : > { %7442 = vmatmul.mubr.bf16.gmra.mrb[20].mxu1 %v6921_v15 }
 0x53b   : > { %v6910_v24 = vpop.trf.xlu1 }
 0x53f   : > { %v6911_v10 = vpop.trf.xlu1 }
 0x540   : > { %v6922_v38 = vpack.c.bf16 %v6911_v10, %v6910_v24 }
 0x542   : > { %7445 = vmatprep.mubr.bf16.mxu1 %v6922_v38 }
 0x543   : > { %v6912_v61 = vpop.trf.xlu1 }
 0x547   : > { %v6913_v14 = vpop.trf.xlu1 }
 0x548   : > { %v6923_v54 = vpack.c.bf16 %v6913_v14, %v6912_v61 }
 0x54a   : > { %7446 = vmatmul.mubr.bf16.gmra.mrb[24].mxu1 %v6923_v54 }
 0x54b   : > { %v6914_v32 = vpop.trf.xlu1 }
 0x54f   : > { %v6915_v37 = vpop.trf.xlu1 }
 0x550   : > { %v6924_v39 = vpack.c.bf16 %v6915_v37, %v6914_v32 }
 0x552   : > { %7449 = vmatprep.mubr.bf16.mxu1 %v6924_v39 }
 0x553   : > { %v6916_v33 = vpop.trf.xlu1 }
 0x557   : > { %v6917_v5 = vpop.trf.xlu1 }
 0x558   : > { %v6925_v49 = vpack.c.bf16 %v6917_v5, %v6916_v33 }
 0x55a   : > { %7450 = vmatmul.mubr.bf16.gmra.mrb[28].mxu1 %v6925_v49 }
 0x5fd   : > { %v7439_v40 = vpop.f32.mrb[16].mxu1 }
 0x5fe   : > { %7089 = vst [vmem:[%s10776_s18 + $0x10] sm:$0xff] %v7439_v40  ;;  %v7024_v53 = vpop.f32.mrb[17].mxu1 }
 0x5ff   : > { %7087 = vst [vmem:[%s10776_s18] sm:$0xff] %v7024_v53  ;;  %v7440_v8 = vpop.f32.mrb[18].mxu1 }
 0x600   : > { %7090 = vst [vmem:[%s10776_s18 + $0x18] sm:$0xff] %v7440_v8  ;;  %v7027_v25 = vpop.f32.mrb[19].mxu1 }
 0x601   : > { %7088 = vst [vmem:[%s10776_s18 + $0x8] sm:$0xff] %v7027_v25 }
 0x60d   : > { %v7443_v55 = vpop.f32.mrb[20].mxu1 }
 0x60e   : > { %7093 = vst [vmem:[%s10776_s18 + $0x30] sm:$0xff] %v7443_v55  ;;  %v7040_v30 = vpop.f32.mrb[21].mxu1 }
 0x60f   : > { %7091 = vst [vmem:[%s10776_s18 + $0x20] sm:$0xff] %v7040_v30  ;;  %v7444_v57 = vpop.f32.mrb[22].mxu1 }
 0x610   : > { %7094 = vst [vmem:[%s10776_s18 + $0x38] sm:$0xff] %v7444_v57  ;;  %v7043_v43 = vpop.f32.mrb[23].mxu1 }
 0x611   : > { %7092 = vst [vmem:[%s10776_s18 + $0x28] sm:$0xff] %v7043_v43 }
 0x61d   : > { %v7447_v58 = vpop.f32.mrb[24].mxu1 }
 0x61e   : > { %7097 = vst [vmem:[%s10776_s18 + $0x50] sm:$0xff] %v7447_v58  ;;  %v7056_v46 = vpop.f32.mrb[25].mxu1 }
 0x61f   : > { %7095 = vst [vmem:[%s10776_s18 + $0x40] sm:$0xff] %v7056_v46  ;;  %v7448_v51 = vpop.f32.mrb[26].mxu1 }
 0x620   : > { %7098 = vst [vmem:[%s10776_s18 + $0x58] sm:$0xff] %v7448_v51  ;;  %v7059_v22 = vpop.f32.mrb[27].mxu1 }
 0x621   : > { %7096 = vst [vmem:[%s10776_s18 + $0x48] sm:$0xff] %v7059_v22 }
 0x62d   : > { %v7451_v26 = vpop.f32.mrb[28].mxu1 }
 0x62e   : > { %7101 = vst [vmem:[%s10776_s18 + $0x70] sm:$0xff] %v7451_v26  ;;  %v7072_v18 = vpop.f32.mrb[29].mxu1 }
 0x62f   : > { %7099 = vst [vmem:[%s10776_s18 + $0x60] sm:$0xff] %v7072_v18  ;;  %v7452_v20 = vpop.f32.mrb[30].mxu1 }
 0x630   : > { %7102 = vst [vmem:[%s10776_s18 + $0x78] sm:$0xff] %v7452_v20  ;;  %v7075_v50 = vpop.f32.mrb[31].mxu1 }
 0x631   : > { %7100 = vst [vmem:[%s10776_s18 + $0x68] sm:$0xff] %v7075_v50 }
 0x632   : > { %7712 = shalt.err (!%p7709_p2)
}
 0x633   : > { %s7713_s25 = scalar_lea.hbm %s10796_s27, 2048  ;;  %s7717_s21 = scalar_lea.hbm %s10848_s3, 4096 }
 0x634   : > { %p7714_p13 = scmp.ne.s32.totalorder %s10796_s27, %s7713_s25  ;;  %p7718_p4 = scmp.lt.u32.totalorder %s10796_s27, %s10848_s3 }
 0x635   : > { %p7719_p5 = scmp.lt.u32.totalorder %s7717_s21, %s7713_s25  ;;  %p7721_p11 = scmp.lt.u32.totalorder %s7713_s25, %s10796_s27 }
 0x636   : > { %p7715_p6 = pnand %p7714_p13, %p11262_p0 }
 0x637   : > { %p7720_p8 = por %p7719_p5, %p7718_p4 }
 0x638   : > { %p7716_p10 = pneg %p7715_p6 }
 0x639   : > { %p7722_p1 = por %p7721_p11, %p7720_p8 }
 0x63b   : > { %p7723_p3 = pnand %p7722_p1, %p7716_p10 }
 0x63d   : > { %7726 = shalt.err (!%p7723_p3)
}
 0x63e   : > { %s7780_s30 = smov 128   ;;  %s7781_s18 = smov 8  }
 0x63f   : > { %7463 = dma.vmem_to_hbm [thread:$0]  (%p11262_p0), %s10798_s17, 2048, %s10796_s27, %s7104_s16, %s7780_s30, %s7780_s30, %s7781_s18  }
 0x640 PF: > { %s7132_s20 = sand.u32 1, %s7757_s12   ;;  %p11263_p7 = scmp.ne.s32.totalorder %s10985_s19, 0 }
 0x641   : > { %p11264_p9 = scmp.ge.s32.totalorder %s7769_s15, 2  ;;  %s7133_s24 = scalar_lea.sflag [#allocation4], %s7132_s20 }
 0x643   : > { %p7477_p12 = pnand %p11264_p9, %p11263_p7 }
 0x645   : > { %7752 = dma.done.wait (!%p7477_p12), %s7133_s24, 2048  }
 0x646   : > { %7754 = vsyncadd (!%p7477_p12), %s7133_s24, 4294965248  ;;  %p17_p2 = scmp.ge.s32.totalorder %s7912_s4, 4   ;;  %s11265_s12 = smov %s7761_s13 }
 0x647   : > { %s11266_s13 = smov %s7765_s14  ;;  %s11267_s14 = smov %s7928_s9 }
 0x648   : > { %s11268_s15 = smov %s7912_s4  ;;  %19 = sbr.rel (!%p17_p2) target bundleno = 6 (0x6), region = 85 }
 0x64f   :  { %7138 = vsyncpa [#allocation3], 1 }
 0x650   :  { %7140 = vsyncpa [#allocation3 + $0x1], 1 }
 0x651   :  { %7141 = vsyncpa [#allocation6], 1 }
 0x652   :  { %7142 = vsyncpa [#allocation4], 1 }
 0x653   :  { %7144 = vsyncpa [#allocation4 + $0x1], 1 }

</bundles_post_ra>
